<compile_context>
chip_gen: v6e
topology: v6e:2x2x1
jax: 0.10.0
libtpu: 0.0.40
codegen_flags: <defaults>
</compile_context>

<pallas_src>
import functools

import jax
import jax.numpy as jnp
from jax.experimental import pallas as pl
from jax.experimental.pallas import tpu as pltpu

ACT_DTYPE = jnp.bfloat16      # activations / weights at the pallas boundary
ACC_DTYPE = jnp.float32       # accumulator dtype


def _round_up(a, b):
    return (a + b - 1) // b * b


@functools.lru_cache(maxsize=1)
def _vmem_capacity_bytes():
    try:
        return int(pltpu.get_tpu_info().vmem_capacity_bytes)
    except Exception:
        return 64 << 20       # conservative: v7x physical VMEM


def _vmem_limit(need_bytes):
    cap = int(_vmem_capacity_bytes() * 0.85)
    return int(max(32 << 20, min(int(need_bytes) + (16 << 20), cap)))


def _arg_bytes(arrays):
    return int(sum(a.size * a.dtype.itemsize for a in arrays))


def _fit_rows(a, rows):
    if a.shape[0] < rows:
        return jnp.pad(a, ((0, rows - a.shape[0]), (0, 0)))
    if a.shape[0] > rows:
        return a[:rows]
    return a


# ---------------------------------------------------------------------------
# Fused 3x3x3 stride-1 conv kernel (grouped aligned taps, value accumulator).
#   grid = (num M tiles,)  [parallel]
#   refs = x_0..x_{n-1} (widened padded-flat, whole in VMEM),
#          w_0..w_{n-1} [9, 3*Cin_i, Cout], bias [1,Cout],
#          (residual tile [TM,Cout]), out tile [TM,Cout]
# ---------------------------------------------------------------------------
def _conv3x3_kernel_factory(n_inputs, offsets, tm, has_res, relu):
    def kernel(*refs):
        xs = refs[:n_inputs]
        ws = refs[n_inputs:2 * n_inputs]
        b_ref = refs[2 * n_inputs]
        idx = 2 * n_inputs + 1
        res_ref = refs[idx] if has_res else None
        o_ref = refs[idx + 1] if has_res else refs[idx]

        row0 = pl.program_id(0) * tm

        acc = None
        for g, off in enumerate(offsets):          # 9 aligned tap groups, unrolled
            start = pl.multiple_of(row0 + off, 8)  # off % 8 == 0, tm % 8 == 0
            for i in range(n_inputs):
                contrib = jnp.dot(
                    xs[i][pl.ds(start, tm), :],
                    ws[i][g],
                    preferred_element_type=jnp.float32,
                )
                acc = contrib if acc is None else acc + contrib

        y = acc + b_ref[...].astype(jnp.float32)
        if has_res:
            y = y + res_ref[...].astype(jnp.float32)
        if relu:
            y = jnp.maximum(y, 0.0)
        o_ref[...] = y.astype(o_ref.dtype)         # single store, no acc RMW

    return kernel


def _pad_widen(x, Wq, rows_in):
    """x: [N,D,H,W,C] -> zero-halo padded (aligned W pitch Wq), flattened, and
    W-widened to [rows_in, 3*C] where row r = concat(flat[r], flat[r+1], flat[r+2])."""
    N, D, H, W, C = x.shape
    xp = jnp.pad(x, ((0, 0), (1, 1), (1, 1), (1, Wq - W - 1), (0, 0)))
    flat = xp.reshape(N * (D + 2) * (H + 2) * Wq, C)
    total = rows_in + 2
    if flat.shape[0] < total:
        flat = jnp.pad(flat, ((0, total - flat.shape[0]), (0, 0)))
    return jnp.concatenate(
        [flat[0:rows_in], flat[1:rows_in + 1], flat[2:rows_in + 2]], axis=-1)


def _pick_tm(m_need, cout, tm_max=512, acc_budget_bytes=128 * 1024):
    # Cap the tile so the value-carried f32 accumulator is ~vreg-file sized;
    # any spill beyond that is bounded by the 9 grouped adds.
    cap = (acc_budget_bytes // (cout * 4)) // 8 * 8
    cap = max(64, min(tm_max, cap))
    if m_need <= cap:
        return max(8, _round_up(m_need, 8))
    return cap


def conv3x3(inputs, b, residual=None, relu=False, out_dtype=ACT_DTYPE):
    """3x3x3, stride 1, padding 1 convolution with fused bias/residual/ReLU.

    inputs  : list of (x [N,D,H,W,Cin_i], w [27, Cin_i, Cout]) pairs whose channel
              concatenation forms the conv input (skip-concat fusion).
    b       : [Cout] bias.      residual: [N,D,H,W,Cout] or None.
    Batch is folded into the flattened M axis.
    """
    N, D, H, W = inputs[0][0].shape[:4]
    Cout = inputs[0][1].shape[2]
    Dp, Hp = D + 2, H + 2
    Wq = _round_up(W + 2, 8)          # aligned row pitch (sublane multiple)
    plane = Hp * Wq                   # multiple of 8
    S = Dp * plane                    # flat rows per sample

    # tap-group offsets (kw folded into channels); all multiples of 8
    offsets = [kd * plane + kh * Wq for kd in range(3) for kh in range(3)]
    max_off = offsets[-1]             # 2*plane + 2*Wq

    # last valid output base row: sample N-1, (d,h,w) = (D-1,H-1,W-1)
    m_need = (N - 1) * S + (D - 1) * plane + (H - 1) * Wq + W
    tm = _pick_tm(m_need, Cout)
    m_compute = _round_up(m_need, tm)
    rows_in = m_compute + max_off

    xs, ws = [], []
    for x, w in inputs:
        cin = x.shape[-1]
        if cin % 8 != 0:              # pad tiny channel counts (first layer)
            pad_c = _round_up(cin, 8) - cin
            x = jnp.pad(x, ((0, 0),) * 4 + ((0, pad_c),))
            w = jnp.pad(w, ((0, 0), (0, pad_c), (0, 0)))
        cin_p = w.shape[1]
        xs.append(_pad_widen(x.astype(ACT_DTYPE), Wq, rows_in))
        # [27, Cin, Cout] (taps kd,kh,kw) -> [9, 3*Cin, Cout], kw-major within a
        # group, matching the widened (shift, cin) channel order.
        ws.append(w.astype(ACT_DTYPE).reshape(9, 3 * cin_p, Cout))

    args = xs + ws + [b.reshape(1, Cout).astype(jnp.float32)]
    in_specs = ([pl.BlockSpec(x.shape, lambda m: (0, 0)) for x in xs]
                + [pl.BlockSpec(w.shape, lambda m: (0, 0, 0)) for w in ws]
                + [pl.BlockSpec((1, Cout), lambda m: (0, 0))])

    has_res = residual is not None
    if has_res:
        rp = jnp.pad(residual.astype(ACT_DTYPE),
                     ((0, 0), (0, 2), (0, 2), (0, Wq - W), (0, 0)))
        rflat = _fit_rows(rp.reshape(N * S, Cout), m_compute)
        args.append(rflat)
        in_specs.append(pl.BlockSpec((tm, Cout), lambda m: (m, 0)))   # tiled

    kernel = _conv3x3_kernel_factory(len(xs), offsets, tm, has_res, relu)

    resident = _arg_bytes(xs + ws) + Cout * 4
    tile_bytes = tm * Cout * (8 + (4 if has_res else 0)) + tm * Cout * 4
    vmem_limit = _vmem_limit(2 * resident + tile_bytes)

    out_flat = pl.pallas_call(
        kernel,
        out_shape=jax.ShapeDtypeStruct((m_compute, Cout), out_dtype),
        grid_spec=pltpu.PrefetchScalarGridSpec(
            num_scalar_prefetch=0,
            grid=(m_compute // tm,),
            in_specs=in_specs,
            out_specs=pl.BlockSpec((tm, Cout), lambda m: (m, 0)),
        ),
        compiler_params=pltpu.CompilerParams(
            dimension_semantics=("parallel",),
            vmem_limit_bytes=vmem_limit,
        ),
    )(*args)

    # Valid outputs live at flat rows n*S + d*plane + h*Wq + w.
    out_flat = _fit_rows(out_flat, N * S)
    return out_flat.reshape(N, Dp, Hp, Wq, Cout)[:, :D, :H, :W, :]


# ---------------------------------------------------------------------------
# Tiled matmul + bias (+ReLU) kernel: M-tiled "parallel", K-tiled "arbitrary"
# with an f32 accumulator scratch.  Used for stride-2 convs (im2col folded into
# K), the 2x2x2 transposed conv and the 1x1 output head.
# ---------------------------------------------------------------------------
def _matmul_bias_single_k(relu):
    def kernel(x_ref, w_ref, b_ref, o_ref):
        y = jnp.dot(x_ref[...], w_ref[...], preferred_element_type=jnp.float32)
        y = y + b_ref[...].astype(jnp.float32)
        if relu:
            y = jnp.maximum(y, 0.0)
        o_ref[...] = y.astype(o_ref.dtype)
    return kernel


def _matmul_bias_multi_k(relu):
    def kernel(x_ref, w_ref, b_ref, o_ref, acc_ref):
        @pl.when(pl.program_id(1) == 0)
        def _():
            acc_ref[...] = jnp.zeros_like(acc_ref)
        acc_ref[...] += jnp.dot(x_ref[...], w_ref[...],
                                preferred_element_type=jnp.float32)

        @pl.when(pl.program_id(1) == pl.num_programs(1) - 1)
        def _():
            y = acc_ref[...] + b_ref[...].astype(jnp.float32)
            if relu:
                y = jnp.maximum(y, 0.0)
            o_ref[...] = y.astype(o_ref.dtype)
    return kernel


def matmul_bias(x, w, b, relu=False, out_dtype=ACT_DTYPE, tm_max=512, tk_max=1024):
    """x: [M, K], w: [K, N], b: [N]."""
    M, K = x.shape
    N = w.shape[1]
    x = x.astype(ACT_DTYPE)
    w = w.astype(ACT_DTYPE)

    tm = min(tm_max, _round_up(M, 8))
    tk = min(tk_max, _round_up(K, 128))
    Mp, Kp = _round_up(M, tm), _round_up(K, tk)
    if (Mp, Kp) != (M, K):
        x = jnp.pad(x, ((0, Mp - M), (0, Kp - K)))
    if Kp != K:
        w = jnp.pad(w, ((0, Kp - K), (0, 0)))
    b2 = b.reshape(1, N).astype(jnp.float32)

    n_m, n_k = Mp // tm, Kp // tk
    out_isz = jnp.dtype(out_dtype).itemsize
    tile_bytes = (2 * (tm * tk * 2 + tk * N * 2)     # double-buffered x/w tiles
                  + tm * N * (4 + 2 * out_isz)       # acc scratch + out tiles
                  + N * 8)
    vmem_limit = _vmem_limit(tile_bytes)

    if n_k == 1:
        kernel, scratch = _matmul_bias_single_k(relu), []
    else:
        kernel, scratch = _matmul_bias_multi_k(relu), [pltpu.VMEM((tm, N), ACC_DTYPE)]

    out = pl.pallas_call(
        kernel,
        out_shape=jax.ShapeDtypeStruct((Mp, N), out_dtype),
        grid_spec=pltpu.PrefetchScalarGridSpec(
            num_scalar_prefetch=0,
            grid=(n_m, n_k),
            in_specs=[pl.BlockSpec((tm, tk), lambda i, k: (i, k)),
                      pl.BlockSpec((tk, N), lambda i, k: (k, 0)),
                      pl.BlockSpec((1, N), lambda i, k: (0, 0))],
            out_specs=pl.BlockSpec((tm, N), lambda i, k: (i, 0)),
            scratch_shapes=scratch,
        ),
        compiler_params=pltpu.CompilerParams(
            dimension_semantics=("parallel", "arbitrary"),
            vmem_limit_bytes=vmem_limit,
        ),
    )(x, w, b2)
    return out if Mp == M else out[:M]


def conv3x3_stride2(x, w, b, out_dtype=ACT_DTYPE):
    """3x3x3, stride 2, padding 1 conv via im2col folded into K. x: [N,D,H,W,C]."""
    N, D, H, W, C = x.shape
    Cout = w.shape[2]
    xp = jnp.pad(x, ((0, 0), (1, 1), (1, 1), (1, 1), (0, 0)))
    Do, Ho, Wo = (D - 1) // 2 + 1, (H - 1) // 2 + 1, (W - 1) // 2 + 1
    taps = []
    for kd in range(3):
        for kh in range(3):
            for kw in range(3):
                sl = xp[:, kd:kd + 2 * (Do - 1) + 1:2,
                        kh:kh + 2 * (Ho - 1) + 1:2,
                        kw:kw + 2 * (Wo - 1) + 1:2, :]
                taps.append(sl.reshape(N * Do * Ho * Wo, C))
    patches = jnp.concatenate(taps, axis=-1)                 # [N*Mout, 27*C]
    out = matmul_bias(patches, w.reshape(27 * C, Cout), b,
                      relu=False, out_dtype=out_dtype)
    return out.reshape(N, Do, Ho, Wo, Cout)


def deconv2x2(x, w, b, out_dtype=ACT_DTYPE):
    """ConvTranspose3d(kernel=2, stride=2). x: [N,D,H,W,Cin], w: [Cin, 8, Cout]."""
    N, D, H, W, Cin = x.shape
    Cout = w.shape[2]
    out = matmul_bias(x.reshape(N * D * H * W, Cin), w.reshape(Cin, 8 * Cout),
                      jnp.tile(b, 8), relu=False, out_dtype=out_dtype)
    out = out.reshape(N, D, H, W, 2, 2, 2, Cout)
    # TODO(synk): scatter the 8 tap groups directly from the kernel instead of
    #             this XLA transpose (one extra pass over the upsampled tensor).
    out = out.transpose(0, 1, 4, 2, 5, 3, 6, 7).reshape(N, 2 * D, 2 * H, 2 * W, Cout)
    return out


def conv1x1(x, w, b, out_dtype=jnp.float32):
    """x: [N,D,H,W,Cin], w: [1, Cin, Cout]."""
    N, D, H, W, C = x.shape
    Cout = w.shape[2]
    out = matmul_bias(x.reshape(N * D * H * W, C), w.reshape(C, Cout), b,
                      relu=False, out_dtype=out_dtype)
    return out.reshape(N, D, H, W, Cout)


# ---------------------------------------------------------------------------
# Deterministic synthetic parameters (He-style init, zero bias), float32.
# ---------------------------------------------------------------------------
def _conv_params(key, cin, cout, k=3):
    fan_in = cin * k ** 3
    scale = (2.0 / fan_in) ** 0.5
    w = jax.random.normal(key, (k ** 3, cin, cout), jnp.float32) * scale
    return {"w": w, "b": jnp.zeros((cout,), jnp.float32)}


def _deconv_params(key, cin, cout):
    fan_in = cin * 8
    scale = (2.0 / fan_in) ** 0.5
    w = jax.random.normal(key, (cin, 8, cout), jnp.float32) * scale
    return {"w": w, "b": jnp.zeros((cout,), jnp.float32)}


def init_cr(key, cin, cout):
    return {"conv": _conv_params(key, cin, cout)}


def init_rb(key, c):
    k1, k2 = jax.random.split(key)
    return {"cr": init_cr(k1, c, c), "conv": _conv_params(k2, c, c)}


def init_down(key, cin, cout):
    k1, k2, k3 = jax.random.split(key, 3)
    return {"strided": _conv_params(k1, cin, cin),
            "cr": init_cr(k2, cin, cout),
            "rb": init_rb(k3, cout)}


def init_up(key, cin, cout):
    k1, k2, k3 = jax.random.split(key, 3)
    return {"deconv": _deconv_params(k1, cin, cin),
            "cr": init_cr(k2, cin + cout, cout),
            "rb": init_rb(k3, cout)}


def init_unet(key, init_channels=1, class_num=1):
    keys = jax.random.split(key, 11)
    return {
        "in1": init_cr(keys[0], init_channels, 32),
        "in2": init_cr(keys[1], 32, 32),
        "down1": init_down(keys[2], 32, 64),
        "down2": init_down(keys[3], 64, 128),
        "down3": init_down(keys[4], 128, 256),
        "down4": init_down(keys[5], 256, 512),
        # down5 / up5 exist in the PyTorch module but are unused in forward().
        "up4": init_up(keys[6], 512, 256),
        "up3": init_up(keys[7], 256, 128),
        "up2": init_up(keys[8], 128, 64),
        "up1": init_up(keys[9], 64, 32),
        "out": _conv_params(keys[10], 32, class_num, k=1),
    }


# ---------------------------------------------------------------------------
# Module forwards (all batched: activations are [N, D, H, W, C])
# ---------------------------------------------------------------------------
def cr_fwd(p, x):
    return conv3x3([(x, p["conv"]["w"])], p["conv"]["b"], relu=True)


def cr_fwd_dual(p, x_a, x_b):
    """CR applied to channel-concat([x_a, x_b]) without materializing the concat."""
    ca = x_a.shape[-1]
    w = p["conv"]["w"]
    return conv3x3([(x_a, w[:, :ca, :]), (x_b, w[:, ca:, :])],
                   p["conv"]["b"], relu=True)


def rb_fwd(p, x):
    h = cr_fwd(p["cr"], x)
    # relu(conv(h) + x) with the residual add fused in the kernel finalize
    return conv3x3([(h, p["conv"]["w"])], p["conv"]["b"], relu=True, residual=x)


def down_fwd(p, x):
    h = conv3x3_stride2(x, p["strided"]["w"], p["strided"]["b"])
    h = cr_fwd(p["cr"], h)
    return rb_fwd(p["rb"], h)


def up_fwd(p, x, y):
    u = deconv2x2(y, p["deconv"]["w"], p["deconv"]["b"])
    h = cr_fwd_dual(p["cr"], x, u)          # fused torch.cat((x, up(y)), 1) -> CR
    return rb_fwd(p["rb"], h)


def unet3d_forward(params, x_ncdhw):
    """x_ncdhw: [N, C, D, H, W] float32 (PyTorch layout)."""
    x = jnp.transpose(x_ncdhw, (0, 2, 3, 4, 1)).astype(ACT_DTYPE)   # [N,D,H,W,C]
    x0 = cr_fwd(params["in2"], cr_fwd(params["in1"], x))
    x1 = down_fwd(params["down1"], x0)
    x2 = down_fwd(params["down2"], x1)
    x3 = down_fwd(params["down3"], x2)
    x4 = down_fwd(params["down4"], x3)
    h = up_fwd(params["up4"], x3, x4)
    h = up_fwd(params["up3"], x2, h)
    h = up_fwd(params["up2"], x1, h)
    h = up_fwd(params["up1"], x0, h)
    h = conv1x1(h, params["out"]["w"], params["out"]["b"], out_dtype=jnp.float32)
    out = jnp.transpose(h, (0, 4, 1, 2, 3))                         # [N,C,D,H,W]
    return jax.nn.softmax(out, axis=1)                              # nn.Softmax(dim=1)


# ---------------------------------------------------------------------------
# Pure-XLA reference conv (for the self-checks)
# ---------------------------------------------------------------------------
def _ref_conv3x3(x, w, b, stride=1):
    cin, cout = w.shape[1], w.shape[2]
    k = w.reshape(3, 3, 3, cin, cout).astype(jnp.float32)
    y = jax.lax.conv_general_dilated(
        x.astype(jnp.float32), k,
        window_strides=(stride, stride, stride), padding=[(1, 1)] * 3,
        dimension_numbers=("NDHWC", "DHWIO", "NDHWC"))
    return y + b.astype(jnp.float32)


# ---------------------------------------------------------------------------
if __name__ == "__main__":
    key = jax.random.PRNGKey(0)
    kp, kx, ktest = jax.random.split(key, 3)

    # ---- unit checks: grouped-tap conv vs XLA reference conv (batched) ------
    tks = jax.random.split(ktest, 6)
    xa = jax.random.normal(tks[0], (2, 4, 5, 6, 3), jnp.float32)
    wa = jax.random.normal(tks[1], (27, 3, 16), jnp.float32) * 0.1
    ba = jax.random.normal(tks[2], (16,), jnp.float32)
    ra = jax.random.normal(tks[3], (2, 4, 5, 6, 16), jnp.float32)

    got = conv3x3([(xa, wa)], ba, residual=ra, relu=True).astype(jnp.float32)
    want = jnp.maximum(_ref_conv3x3(xa, wa, ba) + ra, 0.0)
    tol = 0.05 * float(jnp.max(jnp.abs(want))) + 0.05
    assert float(jnp.max(jnp.abs(got - want))) <= tol, "conv3x3 residual mismatch"

    xb = jax.random.normal(tks[4], (2, 4, 5, 6, 16), jnp.float32)
    wb = jax.random.normal(tks[5], (27, 16, 16), jnp.float32) * 0.1
    got2 = conv3x3([(xa, wa), (xb, wb)], ba, relu=True).astype(jnp.float32)
    want2 = jnp.maximum(
        _ref_conv3x3(jnp.concatenate([xa, xb], -1),
                     jnp.concatenate([wa, wb], axis=1), ba), 0.0)
    tol2 = 0.05 * float(jnp.max(jnp.abs(want2))) + 0.05
    assert float(jnp.max(jnp.abs(got2 - want2))) <= tol2, "conv3x3 dual mismatch"

    xs_t = jax.random.normal(tks[0], (2, 6, 5, 8, 8), jnp.float32)
    ws_t = jax.random.normal(tks[1], (27, 8, 16), jnp.float32) * 0.1
    bs_t = jax.random.normal(tks[2], (16,), jnp.float32)
    got3 = conv3x3_stride2(xs_t, ws_t, bs_t, out_dtype=jnp.float32)
    want3 = _ref_conv3x3(xs_t, ws_t, bs_t, stride=2)
    tol3 = 0.05 * float(jnp.max(jnp.abs(want3))) + 0.05
    assert float(jnp.max(jnp.abs(got3.astype(jnp.float32) - want3))) <= tol3, \
        "stride-2 conv mismatch"

    # ---- full network ------------------------------------------------------
    params = init_unet(kp, init_channels=1, class_num=2)

    # Spatial extent must survive 4 stride-2 downsamples; batch folded into M.
    x = jax.random.normal(kx, (2, 1, 16, 16, 16), dtype=jnp.float32)  # NCDHW

    fwd = jax.jit(unet3d_forward)
    out = jax.block_until_ready(fwd(params, x))

    assert out.shape == (2, 2, 16, 16, 16), out.shape
    assert bool(jnp.all(jnp.isfinite(out)))
    assert bool(jnp.allclose(jnp.sum(out, axis=1), 1.0, atol=1e-3))

    print("KERNEL_OK")
</pallas_src>

<mosaic_0001>
module attributes {stable_mosaic.version = 11 : i64} {
  func.func @kernel(%arg0: i32, %arg1: memref<1152x24xbf16, #tpu.memory_space<vmem>>, %arg2: memref<9x24x16xbf16, #tpu.memory_space<vmem>>, %arg3: memref<1x16xf32, #tpu.memory_space<vmem>>, %arg4: memref<512x16xbf16, #tpu.memory_space<vmem>>, %arg5: memref<512x16xbf16, #tpu.memory_space<vmem>>) attributes {dimension_semantics = [#tpu.dimension_semantics<parallel>], iteration_bounds = array<i64: 2>, scalar_prefetch = 0 : i64, scratch_operands = 0 : i64, tpu.core_type = #tpu.core_type<tc>, window_params = [{pipeline_mode = #tpu.pipeline_mode<synchronous>, transform_indices = @transform_0, window_bounds = array<i64: 1152, 24>}, {pipeline_mode = #tpu.pipeline_mode<synchronous>, transform_indices = @transform_1, window_bounds = array<i64: 9, 24, 16>}, {pipeline_mode = #tpu.pipeline_mode<synchronous>, transform_indices = @transform_2, window_bounds = array<i64: 1, 16>}, {transform_indices = @transform_3, window_bounds = array<i64: 512, 16>}, {transform_indices = @transform_4, window_bounds = array<i64: 512, 16>}]} {
    %c512_i32 = arith.constant 512 : i32
    %0 = arith.muli %arg0, %c512_i32 : i32
    %c0_i32 = arith.constant 0 : i32
    %1 = arith.addi %0, %c0_i32 : i32
    %2 = tpu.assume_multiple %1, 8 : i32
    %3 = arith.index_cast %2 : i32 to index
    %c0 = arith.constant 0 : index
    %4 = vector.load %arg1[%3, %c0] : memref<1152x24xbf16, #tpu.memory_space<vmem>>, vector<512x24xbf16>
    %c0_0 = arith.constant 0 : index
    %c0_1 = arith.constant 0 : index
    %c0_2 = arith.constant 0 : index
    %5 = vector.load %arg2[%c0_0, %c0_1, %c0_2] : memref<9x24x16xbf16, #tpu.memory_space<vmem>>, vector<1x24x16xbf16>
    %6 = vector.shape_cast %5 : vector<1x24x16xbf16> to vector<24x16xbf16>
    %cst = arith.constant dense<0.000000e+00> : vector<512x16xf32>
    %7 = tpu.matmul %4, %6, %cst {dimension_numbers = #tpu.dot_dimension_numbers<[1], [0], [0], [1], [0, 0, 1, 1], [], []>} : vector<512x24xbf16>, vector<24x16xbf16>, vector<512x16xf32> -> vector<512x16xf32>
    %c8_i32 = arith.constant 8 : i32
    %8 = arith.addi %0, %c8_i32 : i32
    %9 = tpu.assume_multiple %8, 8 : i32
    %10 = arith.index_cast %9 : i32 to index
    %c0_3 = arith.constant 0 : index
    %11 = vector.load %arg1[%10, %c0_3] : memref<1152x24xbf16, #tpu.memory_space<vmem>>, vector<512x24xbf16>
    %c1 = arith.constant 1 : index
    %c0_4 = arith.constant 0 : index
    %c0_5 = arith.constant 0 : index
    %12 = vector.load %arg2[%c1, %c0_4, %c0_5] : memref<9x24x16xbf16, #tpu.memory_space<vmem>>, vector<1x24x16xbf16>
    %13 = vector.shape_cast %12 : vector<1x24x16xbf16> to vector<24x16xbf16>
    %cst_6 = arith.constant dense<0.000000e+00> : vector<512x16xf32>
    %14 = tpu.matmul %11, %13, %cst_6 {dimension_numbers = #tpu.dot_dimension_numbers<[1], [0], [0], [1], [0, 0, 1, 1], [], []>} : vector<512x24xbf16>, vector<24x16xbf16>, vector<512x16xf32> -> vector<512x16xf32>
    %15 = arith.addf %7, %14 : vector<512x16xf32>
    %c16_i32 = arith.constant 16 : i32
    %16 = arith.addi %0, %c16_i32 : i32
    %17 = tpu.assume_multiple %16, 8 : i32
    %18 = arith.index_cast %17 : i32 to index
    %c0_7 = arith.constant 0 : index
    %19 = vector.load %arg1[%18, %c0_7] : memref<1152x24xbf16, #tpu.memory_space<vmem>>, vector<512x24xbf16>
    %c2 = arith.constant 2 : index
    %c0_8 = arith.constant 0 : index
    %c0_9 = arith.constant 0 : index
    %20 = vector.load %arg2[%c2, %c0_8, %c0_9] : memref<9x24x16xbf16, #tpu.memory_space<vmem>>, vector<1x24x16xbf16>
    %21 = vector.shape_cast %20 : vector<1x24x16xbf16> to vector<24x16xbf16>
    %cst_10 = arith.constant dense<0.000000e+00> : vector<512x16xf32>
    %22 = tpu.matmul %19, %21, %cst_10 {dimension_numbers = #tpu.dot_dimension_numbers<[1], [0], [0], [1], [0, 0, 1, 1], [], []>} : vector<512x24xbf16>, vector<24x16xbf16>, vector<512x16xf32> -> vector<512x16xf32>
    %23 = arith.addf %15, %22 : vector<512x16xf32>
    %c56_i32 = arith.constant 56 : i32
    %24 = arith.addi %0, %c56_i32 : i32
    %25 = tpu.assume_multiple %24, 8 : i32
    %26 = arith.index_cast %25 : i32 to index
    %c0_11 = arith.constant 0 : index
    %27 = vector.load %arg1[%26, %c0_11] : memref<1152x24xbf16, #tpu.memory_space<vmem>>, vector<512x24xbf16>
    %c3 = arith.constant 3 : index
    %c0_12 = arith.constant 0 : index
    %c0_13 = arith.constant 0 : index
    %28 = vector.load %arg2[%c3, %c0_12, %c0_13] : memref<9x24x16xbf16, #tpu.memory_space<vmem>>, vector<1x24x16xbf16>
    %29 = vector.shape_cast %28 : vector<1x24x16xbf16> to vector<24x16xbf16>
    %cst_14 = arith.constant dense<0.000000e+00> : vector<512x16xf32>
    %30 = tpu.matmul %27, %29, %cst_14 {dimension_numbers = #tpu.dot_dimension_numbers<[1], [0], [0], [1], [0, 0, 1, 1], [], []>} : vector<512x24xbf16>, vector<24x16xbf16>, vector<512x16xf32> -> vector<512x16xf32>
    %31 = arith.addf %23, %30 : vector<512x16xf32>
    %c64_i32 = arith.constant 64 : i32
    %32 = arith.addi %0, %c64_i32 : i32
    %33 = tpu.assume_multiple %32, 8 : i32
    %34 = arith.index_cast %33 : i32 to index
    %c0_15 = arith.constant 0 : index
    %35 = vector.load %arg1[%34, %c0_15] : memref<1152x24xbf16, #tpu.memory_space<vmem>>, vector<512x24xbf16>
    %c4 = arith.constant 4 : index
    %c0_16 = arith.constant 0 : index
    %c0_17 = arith.constant 0 : index
    %36 = vector.load %arg2[%c4, %c0_16, %c0_17] : memref<9x24x16xbf16, #tpu.memory_space<vmem>>, vector<1x24x16xbf16>
    %37 = vector.shape_cast %36 : vector<1x24x16xbf16> to vector<24x16xbf16>
    %cst_18 = arith.constant dense<0.000000e+00> : vector<512x16xf32>
    %38 = tpu.matmul %35, %37, %cst_18 {dimension_numbers = #tpu.dot_dimension_numbers<[1], [0], [0], [1], [0, 0, 1, 1], [], []>} : vector<512x24xbf16>, vector<24x16xbf16>, vector<512x16xf32> -> vector<512x16xf32>
    %39 = arith.addf %31, %38 : vector<512x16xf32>
    %c72_i32 = arith.constant 72 : i32
    %40 = arith.addi %0, %c72_i32 : i32
    %41 = tpu.assume_multiple %40, 8 : i32
    %42 = arith.index_cast %41 : i32 to index
    %c0_19 = arith.constant 0 : index
    %43 = vector.load %arg1[%42, %c0_19] : memref<1152x24xbf16, #tpu.memory_space<vmem>>, vector<512x24xbf16>
    %c5 = arith.constant 5 : index
    %c0_20 = arith.constant 0 : index
    %c0_21 = arith.constant 0 : index
    %44 = vector.load %arg2[%c5, %c0_20, %c0_21] : memref<9x24x16xbf16, #tpu.memory_space<vmem>>, vector<1x24x16xbf16>
    %45 = vector.shape_cast %44 : vector<1x24x16xbf16> to vector<24x16xbf16>
    %cst_22 = arith.constant dense<0.000000e+00> : vector<512x16xf32>
    %46 = tpu.matmul %43, %45, %cst_22 {dimension_numbers = #tpu.dot_dimension_numbers<[1], [0], [0], [1], [0, 0, 1, 1], [], []>} : vector<512x24xbf16>, vector<24x16xbf16>, vector<512x16xf32> -> vector<512x16xf32>
    %47 = arith.addf %39, %46 : vector<512x16xf32>
    %c112_i32 = arith.constant 112 : i32
    %48 = arith.addi %0, %c112_i32 : i32
    %49 = tpu.assume_multiple %48, 8 : i32
    %50 = arith.index_cast %49 : i32 to index
    %c0_23 = arith.constant 0 : index
    %51 = vector.load %arg1[%50, %c0_23] : memref<1152x24xbf16, #tpu.memory_space<vmem>>, vector<512x24xbf16>
    %c6 = arith.constant 6 : index
    %c0_24 = arith.constant 0 : index
    %c0_25 = arith.constant 0 : index
    %52 = vector.load %arg2[%c6, %c0_24, %c0_25] : memref<9x24x16xbf16, #tpu.memory_space<vmem>>, vector<1x24x16xbf16>
    %53 = vector.shape_cast %52 : vector<1x24x16xbf16> to vector<24x16xbf16>
    %cst_26 = arith.constant dense<0.000000e+00> : vector<512x16xf32>
    %54 = tpu.matmul %51, %53, %cst_26 {dimension_numbers = #tpu.dot_dimension_numbers<[1], [0], [0], [1], [0, 0, 1, 1], [], []>} : vector<512x24xbf16>, vector<24x16xbf16>, vector<512x16xf32> -> vector<512x16xf32>
    %55 = arith.addf %47, %54 : vector<512x16xf32>
    %c120_i32 = arith.constant 120 : i32
    %56 = arith.addi %0, %c120_i32 : i32
    %57 = tpu.assume_multiple %56, 8 : i32
    %58 = arith.index_cast %57 : i32 to index
    %c0_27 = arith.constant 0 : index
    %59 = vector.load %arg1[%58, %c0_27] : memref<1152x24xbf16, #tpu.memory_space<vmem>>, vector<512x24xbf16>
    %c7 = arith.constant 7 : index
    %c0_28 = arith.constant 0 : index
    %c0_29 = arith.constant 0 : index
    %60 = vector.load %arg2[%c7, %c0_28, %c0_29] : memref<9x24x16xbf16, #tpu.memory_space<vmem>>, vector<1x24x16xbf16>
    %61 = vector.shape_cast %60 : vector<1x24x16xbf16> to vector<24x16xbf16>
    %cst_30 = arith.constant dense<0.000000e+00> : vector<512x16xf32>
    %62 = tpu.matmul %59, %61, %cst_30 {dimension_numbers = #tpu.dot_dimension_numbers<[1], [0], [0], [1], [0, 0, 1, 1], [], []>} : vector<512x24xbf16>, vector<24x16xbf16>, vector<512x16xf32> -> vector<512x16xf32>
    %63 = arith.addf %55, %62 : vector<512x16xf32>
    %c128_i32 = arith.constant 128 : i32
    %64 = arith.addi %0, %c128_i32 : i32
    %65 = tpu.assume_multiple %64, 8 : i32
    %66 = arith.index_cast %65 : i32 to index
    %c0_31 = arith.constant 0 : index
    %67 = vector.load %arg1[%66, %c0_31] : memref<1152x24xbf16, #tpu.memory_space<vmem>>, vector<512x24xbf16>
    %c8 = arith.constant 8 : index
    %c0_32 = arith.constant 0 : index
    %c0_33 = arith.constant 0 : index
    %68 = vector.load %arg2[%c8, %c0_32, %c0_33] : memref<9x24x16xbf16, #tpu.memory_space<vmem>>, vector<1x24x16xbf16>
    %69 = vector.shape_cast %68 : vector<1x24x16xbf16> to vector<24x16xbf16>
    %cst_34 = arith.constant dense<0.000000e+00> : vector<512x16xf32>
    %70 = tpu.matmul %67, %69, %cst_34 {dimension_numbers = #tpu.dot_dimension_numbers<[1], [0], [0], [1], [0, 0, 1, 1], [], []>} : vector<512x24xbf16>, vector<24x16xbf16>, vector<512x16xf32> -> vector<512x16xf32>
    %71 = arith.addf %63, %70 : vector<512x16xf32>
    %c0_35 = arith.constant 0 : index
    %c0_36 = arith.constant 0 : index
    %72 = vector.load %arg3[%c0_35, %c0_36] : memref<1x16xf32, #tpu.memory_space<vmem>>, vector<1x16xf32>
    %73 = vector.broadcast %72 : vector<1x16xf32> to vector<512x16xf32>
    %74 = arith.addf %71, %73 : vector<512x16xf32>
    %c0_37 = arith.constant 0 : index
    %c0_38 = arith.constant 0 : index
    %75 = vector.load %arg4[%c0_37, %c0_38] : memref<512x16xbf16, #tpu.memory_space<vmem>>, vector<512x16xbf16>
    %76 = arith.extf %75 : vector<512x16xbf16> to vector<512x16xf32>
    %77 = arith.addf %74, %76 : vector<512x16xf32>
    %cst_39 = arith.constant 0.000000e+00 : f32
    %78 = vector.broadcast %cst_39 : f32 to vector<512x16xf32>
    %79 = arith.maximumf %77, %78 : vector<512x16xf32>
    %80 = arith.truncf %79 : vector<512x16xf32> to vector<512x16xbf16>
    %c0_40 = arith.constant 0 : index
    %c0_41 = arith.constant 0 : index
    %81 = vector.load %arg5[%c0_40, %c0_41] : memref<512x16xbf16, #tpu.memory_space<vmem>>, vector<512x16xbf16>
    tpu.vector_store %arg5[%c0_40, %c0_41], %80 {strides = array<i32>} : memref<512x16xbf16, #tpu.memory_space<vmem>>, vector<512x16xbf16>,
    return
  }
  func.func @transform_0(%arg0: i32) -> (i32, i32) {
    %c0_i32 = arith.constant 0 : i32
    %c0_i32_0 = arith.constant 0 : i32
    %c0_i32_1 = arith.constant 0 : i32
    return %c0_i32, %c0_i32_0 : i32, i32
  }
  func.func @transform_1(%arg0: i32) -> (i32, i32, i32) {
    %c0_i32 = arith.constant 0 : i32
    %c0_i32_0 = arith.constant 0 : i32
    %c0_i32_1 = arith.constant 0 : i32
    %c0_i32_2 = arith.constant 0 : i32
    return %c0_i32, %c0_i32_0, %c0_i32_1 : i32, i32, i32
  }
  func.func @transform_2(%arg0: i32) -> (i32, i32) {
    %c0_i32 = arith.constant 0 : i32
    %c0_i32_0 = arith.constant 0 : i32
    %c0_i32_1 = arith.constant 0 : i32
    return %c0_i32, %c0_i32_0 : i32, i32
  }
  func.func @transform_3(%arg0: i32) -> (i32, i32) {
    %c0_i32 = arith.constant 0 : i32
    %c0_i32_0 = arith.constant 0 : i32
    return %arg0, %c0_i32 : i32, i32
  }
  func.func @transform_4(%arg0: i32) -> (i32, i32) {
    %c0_i32 = arith.constant 0 : i32
    %c0_i32_0 = arith.constant 0 : i32
    return %arg0, %c0_i32 : i32, i32
  }
}

</mosaic_0001>

<bundles_post_ra>
// kernel: tpu_custom_call.1
= control target key start
LH: loop header
LB: loop body
LE: loop exit
PB: predicated region body
PF: predicated region fallthrough
CT: control target
= control target key end

     0   :  { %s9250_s15 = smov 0   ;;  %s11045_s0 = inlined_call_operand.vmem [shape: bf16[1152,24], index: 0, kind: input, shape index: {}]   ;;  %s11046_s1 = inlined_call_operand.vmem [shape: bf16[9,24,16], index: 1, kind: input, shape index: {}]   ;;  %s11047_s2 = inlined_call_operand.vmem [shape: f32[1,16], index: 2, kind: input, shape index: {}]   ;;  %s11048_s3 = inlined_call_operand.vmem [shape: bf16[1024,16], index: 3, kind: input, shape index: {}]   ;;  %s11049_s4 = inlined_call_operand.vmem [shape: bf16[1024,16], index: 4, kind: output, shape index: {}]  }
   0x1 LB: > { %s7043_s16 = sadd.s32 4294967295, %s9223_s15   ;;  %p7047_p0 = scmp.ge.s32.totalorder %s9223_s15, 1  ;;  %s9223_s15 = sphi %s9250_s15, %s14_s15  }
   0x2   : > { %p163_p1 = scmp.lt.s32.totalorder %s9223_s15, 3 }
   0x4   : > { %p164_p2 = pnand %p7047_p0, %p163_p1 }
   0x6   : > { %167 = sbr.rel (%p164_p2) target bundleno = 800 (0x320), region = 36 }
   0xb   : > { %v8910_v0 = vld [vmem:[%s11046_s1 + $0x14] ss:$0 sps:$4 sm:$0xff]   ;;  %vm613_vm0 = vcmask 1043456   ;;  %v8911_v1 = vld [vmem:[%s11046_s1 + $0xc] sm:$0xff]   ;;  %s9266_s21 = sshll.u32 %s7043_s16, 9  ;;  %vm516_vm1 = vcmask 195584  }
   0xc   : > { %8892 = vmatprep.subr.msk.bf16.mxu0 %vm613_vm0, %v8910_v0  ;;  %8893 = vmatprep.subr.msk.bf16.mxu1 %vm613_vm0, %v8910_v0  ;;  %v615_v2 = vsel %vm613_vm0, %v8910_v0, 0  ;;  %s274_s22 = sadd.s32 8, %s9266_s21  ;;  %v8916_v3 = vld [vmem:[%s11046_s1 + $0x8] ss:$0 sps:$4 sm:$0xff]   ;;  %v8917_v4 = vld [vmem:[%s11046_s1 + $0x20] ss:$0 sps:$4 sm:$0xff]  }
   0xd   : > { %8277 = vmatpush3.bf16.msra.mxu0 %v615_v2  ;;  %8890 = vmatpush3.bf16.msra.mxu1 %v615_v2  ;;  %s275_s25 = sshra.s32 %s274_s22, 3  ;;  %v8934_v7 = vld [vmem:[%s11046_s1] sm:$0xff]   ;;  %v1802_v9 = vsel %vm613_vm0, %v8917_v4, 0  ;;  %v8935_v10 = vld [vmem:[%s11046_s1 + $0x18] sm:$0xff]   ;;  %v1172_v12 = vsel %vm613_vm0, %v8916_v3, 0  ;;  %s1463_s10 = sadd.s32 16, %s9266_s21 }
   0xe   : > { %8278 = vmatprep.subr.bf16.mxu0 %v8911_v1  ;;  %8889 = vmatprep.subr.bf16.mxu1 %v8911_v1  ;;  %s7054_s28 = sshll.u32 %s275_s25, 2  ;;  %s203_s11 = sshra.s32 %s9266_s21, 3  ;;  %v8952_v31 = vld [vmem:[%s11046_s1 + $0x2c] ss:$0 sps:$4 sm:$0xff]   ;;  %v8953_v32 = vld [vmem:[%s11046_s1 + $0x38] ss:$0 sps:$4 sm:$0xff]  }
   0xf   : > { %s9281_s5 = scalar_lea.vmem %s11045_s0, %s7054_s28  ;;  %s1464_s12 = sshra.s32 %s1463_s10, 3  ;;  %v3190_v47 = vsel %vm613_vm0, %v8953_v32, 0  ;;  %v2496_v49 = vsel %vm613_vm0, %v8952_v31, 0  ;;  %v8986_v51 = vld [vmem:[%s11046_s1 + $0x24] sm:$0xff]   ;;  %v8987_v53 = vld [vmem:[%s11046_s1 + $0x30] sm:$0xff]   ;;  %vm6904_vm2 = vcmask 125952  }
  0x10   : > { %v8912_v5 = vld [vmem:[%s9281_s5] sm:$0xff]   ;;  %v8914_v8 = vld [vmem:[%s9281_s5 + $0x8] sm:$0xff]   ;;  %v8918_v13 = vld [vmem:[%s9281_s5 + $0x10] sm:$0xff]   ;;  %s7053_s13 = sshll.u32 %s203_s11, 2  ;;  %s7190_s14 = sshll.u32 %s1464_s12, 2 }
  0x11   : > { %8279 = vmatpush3.bf16.msra.mxu0 %v8911_v1  ;;  %8891 = vmatpush3.bf16.msra.mxu1 %v8911_v1  ;;  %v8913_v6 = vld [vmem:[%s9281_s5 + $0x80] sm:$0xff]   ;;  %v8915_v11 = vld [vmem:[%s9281_s5 + $0x88] sm:$0xff]   ;;  %v8919_v14 = vld [vmem:[%s9281_s5 + $0x90] sm:$0xff]   ;;  %s9335_s19 = scalar_lea.vmem %s11045_s0, %s7053_s13  ;;  %s9341_s23 = scalar_lea.vmem %s11045_s0, %s7190_s14 }
  0x12   : > { %8280 = vmatprep.mubr.msk.bf16.mxu0 %vm516_vm1, %v8912_v5  ;;  %8894 = vmatprep.subr.msk.bf16.mxu1 %vm613_vm0, %v8916_v3  ;;  %v8920_v15 = vld [vmem:[%s9281_s5 + $0x18] sm:$0xff]   ;;  %v8922_v17 = vld [vmem:[%s9281_s5 + $0x20] sm:$0xff]   ;;  %v8924_v19 = vld [vmem:[%s9281_s5 + $0x28] sm:$0xff]   ;;  %s2157_s6 = sadd.s32 56, %s9266_s21  ;;  %s2851_s7 = sadd.s32 64, %s9266_s21 }
  0x13   : > { %8312 = vmatprep.mubr.msk.bf16.mxu1 %vm516_vm1, %v8913_v6  ;;  %8895 = vmatprep.subr.msk.bf16.mxu0 %vm613_vm0, %v8917_v4  ;;  %v8921_v16 = vld [vmem:[%s9281_s5 + $0x98] sm:$0xff]   ;;  %v8923_v18 = vld [vmem:[%s9281_s5 + $0xa0] sm:$0xff]   ;;  %v8925_v20 = vld [vmem:[%s9281_s5 + $0xa8] sm:$0xff]   ;;  %s2158_s8 = sshra.s32 %s2157_s6, 3  ;;  %s2852_s9 = sshra.s32 %s2851_s7, 3 }
  0x14   : > { %8281 = vmatmul.mubr.msk.bf16.vlgmr.msra.gmra.mxu0 %vm516_vm1, %v8914_v8  ;;  %8313 = vmatmul.mubr.msk.bf16.vlgmr.msra.gmra.mxu1 %vm516_vm1, %v8915_v11  ;;  %v8926_v21 = vld [vmem:[%s9281_s5 + $0x30] sm:$0xff]   ;;  %v8928_v23 = vld [vmem:[%s9281_s5 + $0x38] sm:$0xff]   ;;  %v8930_v25 = vld [vmem:[%s9281_s5 + $0x40] sm:$0xff]   ;;  %s7260_s10 = sshll.u32 %s2158_s8, 2  ;;  %s7330_s11 = sshll.u32 %s2852_s9, 2 }
  0x15   : > { %8413 = vmatpush3.bf16.msra.mxu0 %v1802_v9  ;;  %8345 = vmatpush3.bf16.msra.mxu1 %v1172_v12  ;;  %v8927_v22 = vld [vmem:[%s9281_s5 + $0xb0] sm:$0xff]   ;;  %v8929_v24 = vld [vmem:[%s9281_s5 + $0xb8] sm:$0xff]   ;;  %v8931_v26 = vld [vmem:[%s9281_s5 + $0xc0] sm:$0xff]   ;;  %s9430_s14 = scalar_lea.vmem %s11045_s0, %s7260_s10  ;;  %s9435_s20 = scalar_lea.vmem %s11045_s0, %s7330_s11 }
  0x16   : > { %8284 = vmatprep.mubr.msk.bf16.mxu0 %vm516_vm1, %v8918_v13  ;;  %8316 = vmatprep.mubr.msk.bf16.mxu1 %vm516_vm1, %v8919_v14  ;;  %v8932_v27 = vld [vmem:[%s9281_s5 + $0x48] sm:$0xff]   ;;  %v8936_v29 = vld [vmem:[%s9281_s5 + $0x50] sm:$0xff]   ;;  %v8938_v33 = vld [vmem:[%s9281_s5 + $0x58] sm:$0xff]   ;;  %s3545_s27 = sadd.s32 72, %s9266_s21  ;;  %s4239_s28 = sadd.s32 112, %s9266_s21 }
  0x17   : > { %8346 = vmatprep.subr.bf16.mxu1 %v8934_v7  ;;  %8414 = vmatprep.subr.bf16.mxu0 %v8935_v10  ;;  %v8933_v28 = vld [vmem:[%s9281_s5 + $0xc8] sm:$0xff]   ;;  %v8937_v30 = vld [vmem:[%s9281_s5 + $0xd0] sm:$0xff]   ;;  %v8939_v34 = vld [vmem:[%s9281_s5 + $0xd8] sm:$0xff]   ;;  %s3546_s29 = sshra.s32 %s3545_s27, 3  ;;  %s4240_s30 = sshra.s32 %s4239_s28, 3 }
  0x18   : > { %v8940_v35 = vld [vmem:[%s9281_s5 + $0x60] sm:$0xff]   ;;  %v8942_v37 = vld [vmem:[%s9281_s5 + $0x68] sm:$0xff]   ;;  %v8944_v39 = vld [vmem:[%s9281_s5 + $0x70] sm:$0xff]  }
  0x19   : > { %8415 = vmatpush3.bf16.msra.mxu0 %v8935_v10  ;;  %8347 = vmatpush3.bf16.msra.mxu1 %v8934_v7  ;;  %v8941_v36 = vld [vmem:[%s9281_s5 + $0xe0] sm:$0xff]   ;;  %v8943_v38 = vld [vmem:[%s9281_s5 + $0xe8] sm:$0xff]   ;;  %v8945_v40 = vld [vmem:[%s9281_s5 + $0xf0] sm:$0xff]  }
  0x1a   : > { %8896 = vmatprep.subr.msk.bf16.mxu1 %vm613_vm0, %v8952_v31  ;;  %8897 = vmatprep.subr.msk.bf16.mxu0 %vm613_vm0, %v8953_v32  ;;  %v8946_v41 = vld [vmem:[%s9281_s5 + $0x78] sm:$0xff]   ;;  %v8949_v43 = vld [vmem:[%s9341_s23] sm:$0xff]   ;;  %v8951_v45 = vld [vmem:[%s9341_s23 + $0x8] sm:$0xff]  }
  0x1b   : > { %v8947_v42 = vld [vmem:[%s9281_s5 + $0xf8] sm:$0xff]   ;;  %v8948_v44 = vld [vmem:[%s9335_s19] sm:$0xff]   ;;  %v8950_v46 = vld [vmem:[%s9335_s19 + $0x8] sm:$0xff]   ;;  %s7400_s5 = sshll.u32 %s3546_s29, 2 }
  0x1c   : > { %8285 = vmatmul.mubr.msk.bf16.gmra.mxu0 %vm516_vm1, %v8920_v15  ;;  %8317 = vmatmul.mubr.msk.bf16.gmra.mxu1 %vm516_vm1, %v8921_v16  ;;  %v8954_v48 = vld [vmem:[%s9335_s19 + $0x10] sm:$0xff]   ;;  %v8956_v52 = vld [vmem:[%s9335_s19 + $0x18] sm:$0xff]   ;;  %v8959_v55 = vld [vmem:[%s9341_s23 + $0x20] sm:$0xff]   ;;  %s9551_s7 = scalar_lea.vmem %s11045_s0, %s7400_s5 }
  0x1d   : > { %8288 = vmatprep.mubr.msk.bf16.mxu0 %vm516_vm1, %v8922_v17  ;;  %8320 = vmatprep.mubr.msk.bf16.mxu1 %vm516_vm1, %v8923_v18  ;;  %v8955_v50 = vld [vmem:[%s9341_s23 + $0x10] sm:$0xff]   ;;  %v8957_v54 = vld [vmem:[%s9341_s23 + $0x18] sm:$0xff]   ;;  %v8958_v56 = vld [vmem:[%s9335_s19 + $0x20] sm:$0xff]  }
  0x1e   : > { %v8960_v57 = vld [vmem:[%s9335_s19 + $0x28] sm:$0xff]   ;;  %v8963_v59 = vld [vmem:[%s9341_s23 + $0x30] sm:$0xff]   ;;  %v8964_v61 = vld [vmem:[%s9335_s19 + $0x38] sm:$0xff]  }
  0x1f   : > { %v8961_v58 = vld [vmem:[%s9341_s23 + $0x28] sm:$0xff]   ;;  %v8962_v60 = vld [vmem:[%s9335_s19 + $0x30] sm:$0xff]   ;;  %v8965_v62 = vld [vmem:[%s9341_s23 + $0x38] sm:$0xff]  }
  0x20   : > { %v8967_v63 = vld [vmem:[%s9341_s23 + $0x40] sm:$0xff]   ;;  %v8968_v1 = vld [vmem:[%s9335_s19 + $0x48] sm:$0xff]   ;;  %v8971_v3 = vld [vmem:[%s9341_s23 + $0x50] sm:$0xff]  }
  0x21   : > { %v8966_v0 = vld [vmem:[%s9335_s19 + $0x40] sm:$0xff]   ;;  %v8969_v2 = vld [vmem:[%s9341_s23 + $0x48] sm:$0xff]   ;;  %v8970_v4 = vld [vmem:[%s9335_s19 + $0x50] sm:$0xff]  }
  0x22   : > { %v8972_v5 = vld [vmem:[%s9335_s19 + $0x58] sm:$0xff]   ;;  %v9446_v7 = vld [vmem:[%s11046_s1 + $0x44] ss:$0 sps:$4 sm:$0xff]   ;;  %v9451_v8 = vld [vmem:[%s11046_s1 + $0x50] ss:$0 sps:$4 sm:$0xff]  }
  0x23   : > { %v8973_v6 = vld [vmem:[%s9341_s23 + $0x58] sm:$0xff]   ;;  %v8975_v9 = vld [vmem:[%s9341_s23 + $0x60] sm:$0xff]   ;;  %v8976_v11 = vld [vmem:[%s9335_s19 + $0x68] sm:$0xff]  }
  0x24   : > { %8289 = vmatmul.mubr.msk.bf16.gmra.mxu0 %vm516_vm1, %v8924_v19  ;;  %8321 = vmatmul.mubr.msk.bf16.gmra.mxu1 %vm516_vm1, %v8925_v20  ;;  %v8974_v10 = vld [vmem:[%s9335_s19 + $0x60] sm:$0xff]   ;;  %v8977_v12 = vld [vmem:[%s9341_s23 + $0x68] sm:$0xff]   ;;  %v8979_v13 = vld [vmem:[%s9341_s23 + $0x70] sm:$0xff]  }
  0x25   : > { %8292 = vmatprep.mubr.msk.bf16.mxu0 %vm516_vm1, %v8926_v21  ;;  %8324 = vmatprep.mubr.msk.bf16.mxu1 %vm516_vm1, %v8927_v22  ;;  %v8978_v14 = vld [vmem:[%s9335_s19 + $0x70] sm:$0xff]   ;;  %v8980_v15 = vld [vmem:[%s9335_s19 + $0x78] sm:$0xff]   ;;  %v8983_v17 = vld [vmem:[%s9341_s23 + $0x80] sm:$0xff]  }
  0x26   : > { %v8981_v16 = vld [vmem:[%s9341_s23 + $0x78] sm:$0xff]   ;;  %v8982_v18 = vld [vmem:[%s9335_s19 + $0x80] sm:$0xff]   ;;  %v8984_v19 = vld [vmem:[%s9335_s19 + $0x88] sm:$0xff]  }
  0x27   : > { %v8985_v20 = vld [vmem:[%s9341_s23 + $0x88] sm:$0xff]   ;;  %v8989_v21 = vld [vmem:[%s9341_s23 + $0x90] sm:$0xff]   ;;  %v8999_v31 = vld [vmem:[%s9341_s23 + $0xb8] sm:$0xff]  }
  0x28   : > { %v8988_v22 = vld [vmem:[%s9335_s19 + $0x90] sm:$0xff]   ;;  %v8998_v32 = vld [vmem:[%s9335_s19 + $0xb8] sm:$0xff]  }
  0x2c   : > { %8293 = vmatmul.mubr.msk.bf16.gmra.mxu0 %vm516_vm1, %v8928_v23  ;;  %8325 = vmatmul.mubr.msk.bf16.gmra.mxu1 %vm516_vm1, %v8929_v24  ;;  %v8990_v23 = vld [vmem:[%s9335_s19 + $0x98] sm:$0xff]  }
  0x2d   : > { %8296 = vmatprep.mubr.msk.bf16.mxu0 %vm516_vm1, %v8930_v25  ;;  %8328 = vmatprep.mubr.msk.bf16.mxu1 %vm516_vm1, %v8931_v26  ;;  %v8991_v24 = vld [vmem:[%s9341_s23 + $0x98] sm:$0xff]   ;;  %v8993_v25 = vld [vmem:[%s9341_s23 + $0xa0] sm:$0xff]  }
  0x2e   : > { %v8992_v26 = vld [vmem:[%s9335_s19 + $0xa0] sm:$0xff]  }
  0x34   : > { %8297 = vmatmul.mubr.msk.bf16.gmra.mxu0 %vm516_vm1, %v8932_v27  ;;  %8329 = vmatmul.mubr.msk.bf16.gmra.mxu1 %vm516_vm1, %v8933_v28  ;;  %v8995_v27 = vld [vmem:[%s9341_s23 + $0xa8] sm:$0xff]  }
  0x35   : > { %8300 = vmatprep.mubr.msk.bf16.mxu0 %vm516_vm1, %v8936_v29  ;;  %8332 = vmatprep.mubr.msk.bf16.mxu1 %vm516_vm1, %v8937_v30  ;;  %v8994_v28 = vld [vmem:[%s9335_s19 + $0xa8] sm:$0xff]   ;;  %v8997_v29 = vld [vmem:[%s9341_s23 + $0xb0] sm:$0xff]  }
  0x36   : > { %v8996_v30 = vld [vmem:[%s9335_s19 + $0xb0] sm:$0xff]  }
  0x3c   : > { %8301 = vmatmul.mubr.msk.bf16.gmra.mxu0 %vm516_vm1, %v8938_v33  ;;  %8333 = vmatmul.mubr.msk.bf16.gmra.mxu1 %vm516_vm1, %v8939_v34  ;;  %v9001_v33 = vld [vmem:[%s9341_s23 + $0xc0] sm:$0xff]  }
  0x3d   : > { %8304 = vmatprep.mubr.msk.bf16.mxu0 %vm516_vm1, %v8940_v35  ;;  %8336 = vmatprep.mubr.msk.bf16.mxu1 %vm516_vm1, %v8941_v36  ;;  %v9000_v34 = vld [vmem:[%s9335_s19 + $0xc0] sm:$0xff]   ;;  %v9003_v35 = vld [vmem:[%s9341_s23 + $0xc8] sm:$0xff]  }
  0x3e   : > { %v9002_v36 = vld [vmem:[%s9335_s19 + $0xc8] sm:$0xff]  }
  0x44   : > { %8305 = vmatmul.mubr.msk.bf16.gmra.mxu0 %vm516_vm1, %v8942_v37  ;;  %8337 = vmatmul.mubr.msk.bf16.gmra.mxu1 %vm516_vm1, %v8943_v38  ;;  %v9005_v37 = vld [vmem:[%s9341_s23 + $0xd0] sm:$0xff]  }
  0x45   : > { %8308 = vmatprep.mubr.msk.bf16.mxu0 %vm516_vm1, %v8944_v39  ;;  %8340 = vmatprep.mubr.msk.bf16.mxu1 %vm516_vm1, %v8945_v40  ;;  %v9004_v38 = vld [vmem:[%s9335_s19 + $0xd0] sm:$0xff]   ;;  %v9007_v39 = vld [vmem:[%s9341_s23 + $0xd8] sm:$0xff]  }
  0x46   : > { %v9006_v40 = vld [vmem:[%s9335_s19 + $0xd8] sm:$0xff]  }
  0x4c   : > { %8309 = vmatmul.mubr.msk.bf16.gmra.mxu0 %vm516_vm1, %v8946_v41  ;;  %8341 = vmatmul.mubr.msk.bf16.gmra.mxu1 %vm516_vm1, %v8947_v42  ;;  %v9009_v41 = vld [vmem:[%s9341_s23 + $0xe0] sm:$0xff]  }
  0x4d   : > { %8416 = vmatprep.mubr.msk.bf16.mxu0 %vm516_vm1, %v8949_v43  ;;  %8348 = vmatprep.mubr.msk.bf16.mxu1 %vm516_vm1, %v8948_v44  ;;  %v9008_v42 = vld [vmem:[%s9335_s19 + $0xe0] sm:$0xff]   ;;  %v9011_v43 = vld [vmem:[%s9341_s23 + $0xe8] sm:$0xff]  }
  0x4e   : > { %v9010_v44 = vld [vmem:[%s9335_s19 + $0xe8] sm:$0xff]  }
  0x54   : > { %8417 = vmatmul.mubr.msk.bf16.vlgmr.msra.gmra.mxu0 %vm516_vm1, %v8951_v45  ;;  %8349 = vmatmul.mubr.msk.bf16.vlgmr.msra.gmra.mxu1 %vm516_vm1, %v8950_v46  ;;  %v9013_v45 = vld [vmem:[%s9341_s23 + $0xf0] sm:$0xff]  }
  0x55   : > { %8549 = vmatpush3.bf16.msra.mxu0 %v3190_v47  ;;  %8481 = vmatpush3.bf16.msra.mxu1 %v2496_v49  ;;  %v9012_v46 = vld [vmem:[%s9335_s19 + $0xf0] sm:$0xff]   ;;  %v9015_v47 = vld [vmem:[%s9341_s23 + $0xf8] sm:$0xff]   ;;  %v9017_v49 = vld [vmem:[%s9435_s20] sm:$0xff]   ;;  %s7470_s23 = sshll.u32 %s4240_s30, 2 }
  0x56   : > { %8352 = vmatprep.mubr.msk.bf16.mxu1 %vm516_vm1, %v8954_v48  ;;  %8420 = vmatprep.mubr.msk.bf16.mxu0 %vm516_vm1, %v8955_v50  ;;  %v9014_v48 = vld [vmem:[%s9335_s19 + $0xf8] sm:$0xff]   ;;  %v9016_v50 = vld [vmem:[%s9430_s14] sm:$0xff]   ;;  %s9559_s10 = scalar_lea.vmem %s11045_s0, %s7470_s23 }
  0x57   : > { %8482 = vmatprep.subr.bf16.mxu1 %v8986_v51  ;;  %8550 = vmatprep.subr.bf16.mxu0 %v8987_v53 }
  0x59   : > { %8483 = vmatpush3.bf16.msra.mxu1 %v8986_v51  ;;  %8551 = vmatpush3.bf16.msra.mxu0 %v8987_v53  ;;  %v9019_v51 = vld [vmem:[%s9435_s20 + $0x8] sm:$0xff]   ;;  %v9022_v53 = vld [vmem:[%s9430_s14 + $0x10] sm:$0xff]  }
  0x5a   : > { %8898 = vmatprep.subr.msk.bf16.mxu1 %vm613_vm0, %v9446_v7  ;;  %8899 = vmatprep.subr.msk.bf16.mxu0 %vm613_vm0, %v9451_v8 }
  0x5c   : > { %8421 = vmatmul.mubr.msk.bf16.gmra.mxu0 %vm516_vm1, %v8957_v54  ;;  %8353 = vmatmul.mubr.msk.bf16.gmra.mxu1 %vm516_vm1, %v8956_v52  ;;  %v9018_v52 = vld [vmem:[%s9430_s14 + $0x8] sm:$0xff]   ;;  %v4578_v54 = vsel %vm613_vm0, %v9451_v8, 0 }
  0x5d   : > { %8424 = vmatprep.mubr.msk.bf16.mxu0 %vm516_vm1, %v8959_v55  ;;  %8356 = vmatprep.mubr.msk.bf16.mxu1 %vm516_vm1, %v8958_v56  ;;  %v9023_v55 = vld [vmem:[%s9435_s20 + $0x10] sm:$0xff]   ;;  %v3884_v56 = vsel %vm613_vm0, %v9446_v7, 0  ;;  %v9599_v7 = vld [vmem:[%s11046_s1 + $0x68] ss:$0 sps:$4 sm:$0xff]  }
  0x64   : > { %8425 = vmatmul.mubr.msk.bf16.gmra.mxu0 %vm516_vm1, %v8961_v58  ;;  %8357 = vmatmul.mubr.msk.bf16.gmra.mxu1 %vm516_vm1, %v8960_v57  ;;  %v9054_v57 = vld [vmem:[%s11046_s1 + $0x3c] sm:$0xff]  }
  0x65   : > { %8428 = vmatprep.mubr.msk.bf16.mxu0 %vm516_vm1, %v8963_v59  ;;  %8360 = vmatprep.mubr.msk.bf16.mxu1 %vm516_vm1, %v8962_v60  ;;  %v9055_v59 = vld [vmem:[%s11046_s1 + $0x48] sm:$0xff]  }
  0x6c   : > { %8429 = vmatmul.mubr.msk.bf16.gmra.mxu0 %vm516_vm1, %v8965_v62  ;;  %8361 = vmatmul.mubr.msk.bf16.gmra.mxu1 %vm516_vm1, %v8964_v61  ;;  %v9025_v62 = vld [vmem:[%s9435_s20 + $0x18] sm:$0xff]  }
  0x6d   : > { %8432 = vmatprep.mubr.msk.bf16.mxu0 %vm516_vm1, %v8967_v63  ;;  %8364 = vmatprep.mubr.msk.bf16.mxu1 %vm516_vm1, %v8966_v0  ;;  %v9024_v0 = vld [vmem:[%s9430_s14 + $0x18] sm:$0xff]  }
  0x74   : > { %8433 = vmatmul.mubr.msk.bf16.gmra.mxu0 %vm516_vm1, %v8969_v2  ;;  %8365 = vmatmul.mubr.msk.bf16.gmra.mxu1 %vm516_vm1, %v8968_v1  ;;  %v9027_v1 = vld [vmem:[%s9435_s20 + $0x20] sm:$0xff]  }
  0x75   : > { %8436 = vmatprep.mubr.msk.bf16.mxu0 %vm516_vm1, %v8971_v3  ;;  %8368 = vmatprep.mubr.msk.bf16.mxu1 %vm516_vm1, %v8970_v4  ;;  %v9589_v3 = vld [vmem:[%s11046_s1 + $0x5c] ss:$0 sps:$4 sm:$0xff]  }
  0x7c   : > { %8437 = vmatmul.mubr.msk.bf16.gmra.mxu0 %vm516_vm1, %v8973_v6  ;;  %8369 = vmatmul.mubr.msk.bf16.gmra.mxu1 %vm516_vm1, %v8972_v5  ;;  %v9026_v6 = vld [vmem:[%s9430_s14 + $0x20] sm:$0xff]  }
  0x7d   : > { %8440 = vmatprep.mubr.msk.bf16.mxu0 %vm516_vm1, %v8975_v9  ;;  %8372 = vmatprep.mubr.msk.bf16.mxu1 %vm516_vm1, %v8974_v10 }
  0x84   : > { %8441 = vmatmul.mubr.msk.bf16.gmra.mxu0 %vm516_vm1, %v8977_v12  ;;  %8373 = vmatmul.mubr.msk.bf16.gmra.mxu1 %vm516_vm1, %v8976_v11  ;;  %v9029_v12 = vld [vmem:[%s9435_s20 + $0x28] sm:$0xff]  }
  0x85   : > { %8444 = vmatprep.mubr.msk.bf16.mxu0 %vm516_vm1, %v8979_v13  ;;  %8376 = vmatprep.mubr.msk.bf16.mxu1 %vm516_vm1, %v8978_v14  ;;  %v9028_v14 = vld [vmem:[%s9430_s14 + $0x28] sm:$0xff]  }
  0x8c   : > { %8445 = vmatmul.mubr.msk.bf16.gmra.mxu0 %vm516_vm1, %v8981_v16  ;;  %8377 = vmatmul.mubr.msk.bf16.gmra.mxu1 %vm516_vm1, %v8980_v15  ;;  %v9031_v15 = vld [vmem:[%s9435_s20 + $0x30] sm:$0xff]  }
  0x8d   : > { %8448 = vmatprep.mubr.msk.bf16.mxu0 %vm516_vm1, %v8983_v17  ;;  %8380 = vmatprep.mubr.msk.bf16.mxu1 %vm516_vm1, %v8982_v18 }
  0x94   : > { %8449 = vmatmul.mubr.msk.bf16.gmra.mxu0 %vm516_vm1, %v8985_v20  ;;  %8381 = vmatmul.mubr.msk.bf16.gmra.mxu1 %vm516_vm1, %v8984_v19  ;;  %v9030_v19 = vld [vmem:[%s9430_s14 + $0x30] sm:$0xff]  }
  0x95   : > { %8452 = vmatprep.mubr.msk.bf16.mxu0 %vm516_vm1, %v8989_v21  ;;  %8384 = vmatprep.mubr.msk.bf16.mxu1 %vm516_vm1, %v8988_v22 }
  0x9c   : > { %8453 = vmatmul.mubr.msk.bf16.gmra.mxu0 %vm516_vm1, %v8991_v24  ;;  %8385 = vmatmul.mubr.msk.bf16.gmra.mxu1 %vm516_vm1, %v8990_v23  ;;  %v9033_v24 = vld [vmem:[%s9435_s20 + $0x38] sm:$0xff]  }
  0x9d   : > { %8456 = vmatprep.mubr.msk.bf16.mxu0 %vm516_vm1, %v8993_v25  ;;  %8388 = vmatprep.mubr.msk.bf16.mxu1 %vm516_vm1, %v8992_v26  ;;  %v9032_v26 = vld [vmem:[%s9430_s14 + $0x38] sm:$0xff]  }
  0xa4   : > { %8457 = vmatmul.mubr.msk.bf16.gmra.mxu0 %vm516_vm1, %v8995_v27  ;;  %8389 = vmatmul.mubr.msk.bf16.gmra.mxu1 %vm516_vm1, %v8994_v28  ;;  %v9035_v27 = vld [vmem:[%s9435_s20 + $0x40] sm:$0xff]  }
  0xa5   : > { %8460 = vmatprep.mubr.msk.bf16.mxu0 %vm516_vm1, %v8997_v29  ;;  %8392 = vmatprep.mubr.msk.bf16.mxu1 %vm516_vm1, %v8996_v30 }
  0xac   : > { %8461 = vmatmul.mubr.msk.bf16.gmra.mxu0 %vm516_vm1, %v8999_v31  ;;  %8393 = vmatmul.mubr.msk.bf16.gmra.mxu1 %vm516_vm1, %v8998_v32  ;;  %v9034_v31 = vld [vmem:[%s9430_s14 + $0x40] sm:$0xff]  }
  0xad   : > { %8464 = vmatprep.mubr.msk.bf16.mxu0 %vm516_vm1, %v9001_v33  ;;  %8396 = vmatprep.mubr.msk.bf16.mxu1 %vm516_vm1, %v9000_v34 }
  0xb4   : > { %8465 = vmatmul.mubr.msk.bf16.gmra.mxu0 %vm516_vm1, %v9003_v35  ;;  %8397 = vmatmul.mubr.msk.bf16.gmra.mxu1 %vm516_vm1, %v9002_v36  ;;  %v9037_v36 = vld [vmem:[%s9435_s20 + $0x48] sm:$0xff]  }
  0xb5   : > { %8468 = vmatprep.mubr.msk.bf16.mxu0 %vm516_vm1, %v9005_v37  ;;  %8400 = vmatprep.mubr.msk.bf16.mxu1 %vm516_vm1, %v9004_v38  ;;  %v9036_v38 = vld [vmem:[%s9430_s14 + $0x48] sm:$0xff]  }
  0xbc   : > { %8469 = vmatmul.mubr.msk.bf16.gmra.mxu0 %vm516_vm1, %v9007_v39  ;;  %8401 = vmatmul.mubr.msk.bf16.gmra.mxu1 %vm516_vm1, %v9006_v40  ;;  %v9039_v39 = vld [vmem:[%s9435_s20 + $0x50] sm:$0xff]  }
  0xbd   : > { %8472 = vmatprep.mubr.msk.bf16.mxu0 %vm516_vm1, %v9009_v41  ;;  %8404 = vmatprep.mubr.msk.bf16.mxu1 %vm516_vm1, %v9008_v42 }
  0xc4   : > { %8473 = vmatmul.mubr.msk.bf16.gmra.mxu0 %vm516_vm1, %v9011_v43  ;;  %8405 = vmatmul.mubr.msk.bf16.gmra.mxu1 %vm516_vm1, %v9010_v44  ;;  %v9038_v43 = vld [vmem:[%s9430_s14 + $0x50] sm:$0xff]  }
  0xc5   : > { %8476 = vmatprep.mubr.msk.bf16.mxu0 %vm516_vm1, %v9013_v45  ;;  %8408 = vmatprep.mubr.msk.bf16.mxu1 %vm516_vm1, %v9012_v46 }
  0xcc   : > { %8477 = vmatmul.mubr.msk.bf16.gmra.mxu0 %vm516_vm1, %v9015_v47  ;;  %8409 = vmatmul.mubr.msk.bf16.gmra.mxu1 %vm516_vm1, %v9014_v48  ;;  %v9041_v48 = vld [vmem:[%s9435_s20 + $0x58] sm:$0xff]  }
  0xcd   : > { %8552 = vmatprep.mubr.msk.bf16.mxu0 %vm516_vm1, %v9017_v49  ;;  %8484 = vmatprep.mubr.msk.bf16.mxu1 %vm516_vm1, %v9016_v50  ;;  %v9040_v50 = vld [vmem:[%s9430_s14 + $0x58] sm:$0xff]  }
  0xd4   : > { %v9566_v58 = vpop.f32.mrf.mxu0  ;;  %8553 = vmatmul.mubr.msk.bf16.vlgmr.msra.gmra.mxu0 %vm516_vm1, %v9019_v51  ;;  %v9572_v60 = vpop.f32.mrf.mxu1  ;;  %8485 = vmatmul.mubr.msk.bf16.vlgmr.msra.gmra.mxu1 %vm516_vm1, %v9018_v52  ;;  %v9043_v51 = vld [vmem:[%s9435_s20 + $0x60] sm:$0xff]  }
  0xd5   : > { %8685 = vmatpush3.bf16.msra.mxu0 %v4578_v54  ;;  %8617 = vmatpush3.bf16.msra.mxu1 %v3884_v56 }
  0xd6   : > { %v9575_v61 = vpop.f32.mrf.mxu0  ;;  %8488 = vmatprep.mubr.msk.bf16.mxu1 %vm516_vm1, %v9022_v53  ;;  %v9579_v63 = vpop.f32.mrf.mxu1  ;;  %8556 = vmatprep.mubr.msk.bf16.mxu0 %vm516_vm1, %v9023_v55  ;;  %v9042_v55 = vld [vmem:[%s9430_s14 + $0x60] sm:$0xff]  }
  0xd7   : > { %8618 = vmatprep.subr.bf16.mxu1 %v9054_v57  ;;  %8686 = vmatprep.subr.bf16.mxu0 %v9055_v59 }
  0xd8   : > { %v9584_v2 = vpop.f32.mrf.mxu0  ;;  %v9591_v4 = vpop.f32.mrf.mxu1 }
  0xd9   : > { %8687 = vmatpush3.bf16.msra.mxu0 %v9055_v59  ;;  %8619 = vmatpush3.bf16.msra.mxu1 %v9054_v57 }
  0xda   : > { %v9593_v5 = vpop.f32.mrf.mxu0  ;;  %v9601_v8 = vpop.f32.mrf.mxu1  ;;  %8900 = vmatprep.subr.msk.bf16.mxu1 %vm613_vm0, %v9589_v3  ;;  %8901 = vmatprep.subr.msk.bf16.mxu0 %vm613_vm0, %v9599_v7 }
  0xdc   : > { %v9605_v9 = vpop.f32.mrf.mxu0  ;;  %8557 = vmatmul.mubr.msk.bf16.gmra.mxu0 %vm516_vm1, %v9025_v62  ;;  %v9610_v10 = vpop.f32.mrf.mxu1  ;;  %8489 = vmatmul.mubr.msk.bf16.gmra.mxu1 %vm516_vm1, %v9024_v0  ;;  %v9045_v0 = vld [vmem:[%s9435_s20 + $0x68] sm:$0xff]  }
  0xdd   : > { %8560 = vmatprep.mubr.msk.bf16.mxu0 %vm516_vm1, %v9027_v1  ;;  %8492 = vmatprep.mubr.msk.bf16.mxu1 %vm516_vm1, %v9026_v6  ;;  %v9044_v6 = vld [vmem:[%s9430_s14 + $0x68] sm:$0xff]  }
  0xde   : > { %v9614_v11 = vpop.f32.mrf.mxu0  ;;  %v9618_v13 = vpop.f32.mrf.mxu1 }
  0xe0   : > { %v9622_v16 = vpop.f32.mrf.mxu0  ;;  %v9624_v17 = vpop.f32.mrf.mxu1 }
  0xe2   : > { %v9626_v18 = vpop.f32.mrf.mxu0  ;;  %v9629_v20 = vpop.f32.mrf.mxu1 }
  0xe4   : > { %v9631_v21 = vpop.f32.mrf.mxu0  ;;  %8561 = vmatmul.mubr.msk.bf16.gmra.mxu0 %vm516_vm1, %v9029_v12  ;;  %v9634_v22 = vpop.f32.mrf.mxu1  ;;  %8493 = vmatmul.mubr.msk.bf16.gmra.mxu1 %vm516_vm1, %v9028_v14  ;;  %v9047_v12 = vld [vmem:[%s9435_s20 + $0x70] sm:$0xff]  }
  0xe5   : > { %8564 = vmatprep.mubr.msk.bf16.mxu0 %vm516_vm1, %v9031_v15  ;;  %8496 = vmatprep.mubr.msk.bf16.mxu1 %vm516_vm1, %v9030_v19 }
  0xe6   : > { %v9638_v23 = vpop.f32.mrf.mxu0  ;;  %v9642_v25 = vpop.f32.mrf.mxu1 }
  0xe8   : > { %v9646_v28 = vpop.f32.mrf.mxu0  ;;  %v9648_v29 = vpop.f32.mrf.mxu1 }
  0xea   : > { %v9650_v30 = vpop.f32.mrf.mxu0  ;;  %v9653_v32 = vpop.f32.mrf.mxu1 }
  0xec   : > { %v9655_v33 = vpop.f32.mrf.mxu0  ;;  %8565 = vmatmul.mubr.msk.bf16.gmra.mxu0 %vm516_vm1, %v9033_v24  ;;  %v9658_v34 = vpop.f32.mrf.mxu1  ;;  %8497 = vmatmul.mubr.msk.bf16.gmra.mxu1 %vm516_vm1, %v9032_v26  ;;  %v9046_v24 = vld [vmem:[%s9430_s14 + $0x70] sm:$0xff]  }
  0xed   : > { %8568 = vmatprep.mubr.msk.bf16.mxu0 %vm516_vm1, %v9035_v27  ;;  %8500 = vmatprep.mubr.msk.bf16.mxu1 %vm516_vm1, %v9034_v31 }
  0xee   : > { %v9662_v35 = vpop.f32.mrf.mxu0  ;;  %v9666_v37 = vpop.f32.mrf.mxu1 }
  0xef   : > { %11050 = vst [vmem:[#allocation2_spill] sm:$0xff] %v9666_v37  ;;  %v9060_v37 = vld [vmem:[%s9430_s14 + $0xa0] sm:$0xff]  }
  0xf0   : > { %v9670_v40 = vpop.f32.mrf.mxu0  ;;  %v9672_v41 = vpop.f32.mrf.mxu1 }
  0xf1   : > { %11051 = vst [vmem:[#allocation3_spill] sm:$0xff] %v9672_v41 }
  0xf2   : > { %v9674_v42 = vpop.f32.mrf.mxu0  ;;  %v9677_v44 = vpop.f32.mrf.mxu1 }
  0xf3   : > { %11052 = vst [vmem:[#allocation4_spill] sm:$0xff] %v9677_v44  ;;  %v9061_v44 = vld [vmem:[%s9435_s20 + $0xa0] sm:$0xff]  }
  0xf4   : > { %v9679_v45 = vpop.f32.mrf.mxu0  ;;  %8569 = vmatmul.mubr.msk.bf16.gmra.mxu0 %vm516_vm1, %v9037_v36  ;;  %v9682_v46 = vpop.f32.mrf.mxu1  ;;  %8501 = vmatmul.mubr.msk.bf16.gmra.mxu1 %vm516_vm1, %v9036_v38 }
  0xf5   : > { %11053 = vst [vmem:[#allocation5_spill] sm:$0xff] %v9682_v46  ;;  %8572 = vmatprep.mubr.msk.bf16.mxu0 %vm516_vm1, %v9039_v39  ;;  %8504 = vmatprep.mubr.msk.bf16.mxu1 %vm516_vm1, %v9038_v43  ;;  %v9049_v43 = vld [vmem:[%s9435_s20 + $0x78] sm:$0xff]  }
  0xf6   : > { %v9686_v47 = vpop.f32.mrf.mxu0  ;;  %v9690_v49 = vpop.f32.mrf.mxu1 }
  0xf7   : > { %11054 = vst [vmem:[#allocation6_spill] sm:$0xff] %v9690_v49  ;;  %v9059_v49 = vld [vmem:[%s9435_s20 + $0x98] sm:$0xff]  }
  0xf8   : > { %v9694_v52 = vpop.f32.mrf.mxu0  ;;  %v9696_v53 = vpop.f32.mrf.mxu1 }
  0xf9   : > { %11055 = vst [vmem:[#allocation7_spill] sm:$0xff] %v9696_v53 }
  0xfa   : > { %v9698_v54 = vpop.f32.mrf.mxu0  ;;  %v9701_v56 = vpop.f32.mrf.mxu1 }
  0xfb   : > { %11056 = vst [vmem:[#allocation8_spill] sm:$0xff] %v9701_v56 }
  0xfc   : > { %v9703_v57 = vpop.f32.mrf.mxu0  ;;  %8573 = vmatmul.mubr.msk.bf16.gmra.mxu0 %vm516_vm1, %v9041_v48  ;;  %v9706_v59 = vpop.f32.mrf.mxu1  ;;  %8505 = vmatmul.mubr.msk.bf16.gmra.mxu1 %vm516_vm1, %v9040_v50  ;;  %v9048_v50 = vld [vmem:[%s9430_s14 + $0x78] sm:$0xff]  }
  0xfd   : > { %11057 = vst [vmem:[#allocation9_spill] sm:$0xff] %v9706_v59  ;;  %8576 = vmatprep.mubr.msk.bf16.mxu0 %vm516_vm1, %v9043_v51  ;;  %8508 = vmatprep.mubr.msk.bf16.mxu1 %vm516_vm1, %v9042_v55  ;;  %v9051_v51 = vld [vmem:[%s9435_s20 + $0x80] sm:$0xff]  }
  0xfe   : > { %v9710_v62 = vpop.f32.mrf.mxu0  ;;  %v9714_v1 = vpop.f32.mrf.mxu1 }
  0xff   : > { %11058 = vst [vmem:[#allocation10_spill] sm:$0xff] %v9714_v1  ;;  %v9057_v1 = vld [vmem:[%s9435_s20 + $0x90] sm:$0xff]  }
 0x100   : > { %v9718_v14 = vpop.f32.mrf.mxu0  ;;  %v9720_v15 = vpop.f32.mrf.mxu1 }
 0x101   : > { %11059 = vst [vmem:[#allocation11_spill] sm:$0xff] %v9720_v15  ;;  %v9052_v15 = vld [vmem:[%s9430_s14 + $0x88] sm:$0xff]  }
 0x102   : > { %v9722_v19 = vpop.f32.mrf.mxu0  ;;  %v9725_v26 = vpop.f32.mrf.mxu1 }
 0x103   : > { %11060 = vst [vmem:[#allocation12_spill] sm:$0xff] %v9725_v26  ;;  %v9053_v26 = vld [vmem:[%s9435_s20 + $0x88] sm:$0xff]  }
 0x104   : > { %v9727_v27 = vpop.f32.mrf.mxu0  ;;  %8577 = vmatmul.mubr.msk.bf16.gmra.mxu0 %vm516_vm1, %v9045_v0  ;;  %v9730_v31 = vpop.f32.mrf.mxu1  ;;  %8509 = vmatmul.mubr.msk.bf16.gmra.mxu1 %vm516_vm1, %v9044_v6  ;;  %v9050_v0 = vld [vmem:[%s9430_s14 + $0x80] sm:$0xff]  }
 0x105   : > { %11061 = vst [vmem:[#allocation13_spill] sm:$0xff] %v9730_v31  ;;  %8580 = vmatprep.mubr.msk.bf16.mxu0 %vm516_vm1, %v9047_v12  ;;  %8512 = vmatprep.mubr.msk.bf16.mxu1 %vm516_vm1, %v9046_v24 }
 0x106   : > { %v9734_v36 = vpop.f32.mrf.mxu0  ;;  %v9737_v38 = vpop.f32.mrf.mxu1 }
 0x107   : > { %11062 = vst [vmem:[#allocation14_spill] sm:$0xff] %v9737_v38 }
 0x108   : > { %v9739_v39 = vpop.f32.mrf.mxu0  ;;  %v9742_v48 = vpop.f32.mrf.mxu1 }
 0x109   : > { %11063 = vst [vmem:[#allocation15_spill] sm:$0xff] %v9742_v48 }
 0x10a   : > { %v9746_v55 = vpop.f32.mrf.mxu0  ;;  %v9749_v6 = vpop.f32.mrf.mxu1 }
 0x10b   : > { %11064 = vst [vmem:[#allocation16_spill] sm:$0xff] %v9749_v6 }
 0x10c   : > { %v9751_v12 = vpop.f32.mrf.mxu0  ;;  %8581 = vmatmul.mubr.msk.bf16.gmra.mxu0 %vm516_vm1, %v9049_v43  ;;  %v9754_v24 = vpop.f32.mrf.mxu1  ;;  %8513 = vmatmul.mubr.msk.bf16.gmra.mxu1 %vm516_vm1, %v9048_v50 }
 0x10d   : > { %11065 = vst [vmem:[#allocation17_spill] sm:$0xff] %v9754_v24  ;;  %8584 = vmatprep.mubr.msk.bf16.mxu0 %vm516_vm1, %v9051_v51  ;;  %8516 = vmatprep.mubr.msk.bf16.mxu1 %vm516_vm1, %v9050_v0  ;;  %v9056_v24 = vld [vmem:[%s9430_s14 + $0x90] sm:$0xff]  }
 0x10e   : > { %v9758_v48 = vpop.f32.mrf.mxu0  ;;  %v9761_v38 = vpop.f32.mrf.mxu1 }
 0x10f   : > { %11066 = vst [vmem:[#allocation18_spill] sm:$0xff] %v9761_v38 }
 0x110   : > { %v9763_v31 = vpop.f32.mrf.mxu0  ;;  %v9766_v6 = vpop.f32.mrf.mxu1 }
 0x111   : > { %11067 = vst [vmem:[#allocation19_spill] sm:$0xff] %v9766_v6 }
 0x112   : > { %v9770_v43 = vpop.f32.mrf.mxu0  ;;  %v9773_v50 = vpop.f32.mrf.mxu1 }
 0x113   : > { %11068 = vst [vmem:[#allocation20_spill] sm:$0xff] %v9773_v50 }
 0x114   : > { %v8418_v51 = vpop.f32.mrf.mxu0  ;;  %8585 = vmatmul.mubr.msk.bf16.gmra.mxu0 %vm516_vm1, %v9053_v26  ;;  %v8350_v0 = vpop.f32.mrf.mxu1  ;;  %8517 = vmatmul.mubr.msk.bf16.gmra.mxu1 %vm516_vm1, %v9052_v15  ;;  %v9058_v26 = vld [vmem:[%s9430_s14 + $0x98] sm:$0xff]  }
 0x115   : > { %8588 = vmatprep.mubr.msk.bf16.mxu0 %vm516_vm1, %v9057_v1  ;;  %v1217_v6 = vadd.f32 %v8350_v0, %v9566_v58  ;;  %8520 = vmatprep.mubr.msk.bf16.mxu1 %vm516_vm1, %v9056_v24 }
 0x116   : > { %v1838_v38 = vpop.f32.mrf.mxu0  ;;  %v1208_v59 = vpop.f32.mrf.mxu1 }
 0x117   : > { %v9780_v56 = vadd.f32 %v8418_v51, %v1217_v6  ;;  %v1209_v50 = vadd.f32 %v1208_v59, %v9575_v61 }
 0x118   : > { %v8419_v53 = vpop.f32.mrf.mxu0  ;;  %v8351_v46 = vpop.f32.mrf.mxu1 }
 0x119   : > { %v9786_v41 = vadd.f32 %v1838_v38, %v1209_v50  ;;  %v1220_v15 = vadd.f32 %v8351_v46, %v9584_v2 }
 0x11a   : > { %v1841_v1 = vpop.f32.mrf.mxu0  ;;  %v1211_v58 = vpop.f32.mrf.mxu1 }
 0x11b   : > { %v9790_v0 = vadd.f32 %v8419_v53, %v1220_v15  ;;  %v1212_v6 = vadd.f32 %v1211_v58, %v9593_v5  ;;  %v9062_v15 = vld [vmem:[%s9430_s14 + $0xa8] sm:$0xff]  }
 0x11c   : > { %v8422_v24 = vpop.f32.mrf.mxu0  ;;  %8589 = vmatmul.mubr.msk.bf16.gmra.mxu0 %vm516_vm1, %v9059_v49  ;;  %v8354_v61 = vpop.f32.mrf.mxu1  ;;  %8521 = vmatmul.mubr.msk.bf16.gmra.mxu1 %vm516_vm1, %v9058_v26  ;;  %v9063_v49 = vld [vmem:[%s9435_s20 + $0xa8] sm:$0xff]   ;;  %v9065_v26 = vld [vmem:[%s9435_s20 + $0xb0] sm:$0xff]  }
 0x11d   : > { %8592 = vmatprep.mubr.msk.bf16.mxu0 %vm516_vm1, %v9061_v44  ;;  %v9796_v2 = vadd.f32 %v1841_v1, %v1212_v6  ;;  %v1233_v46 = vadd.f32 %v8354_v61, %v9605_v9  ;;  %8524 = vmatprep.mubr.msk.bf16.mxu1 %vm516_vm1, %v9060_v37  ;;  %v9064_v6 = vld [vmem:[%s9430_s14 + $0xb0] sm:$0xff]  }
 0x11e   : > { %v1854_v59 = vpop.f32.mrf.mxu0  ;;  %v1224_v53 = vpop.f32.mrf.mxu1 }
 0x11f   : > { %v9800_v5 = vadd.f32 %v8422_v24, %v1233_v46  ;;  %v1225_v38 = vadd.f32 %v1224_v53, %v9614_v11 }
 0x120   : > { %v8423_v50 = vpop.f32.mrf.mxu0  ;;  %v8355_v51 = vpop.f32.mrf.mxu1 }
 0x121   : > { %v9806_v58 = vadd.f32 %v1854_v59, %v1225_v38  ;;  %v1236_v44 = vadd.f32 %v8355_v51, %v9622_v16 }
 0x122   : > { %v1857_v1 = vpop.f32.mrf.mxu0  ;;  %v1227_v9 = vpop.f32.mrf.mxu1 }
 0x123   : > { %v9810_v61 = vadd.f32 %v8423_v50, %v1236_v44  ;;  %v1228_v37 = vadd.f32 %v1227_v9, %v9626_v18  ;;  %v9066_v44 = vld [vmem:[%s9430_s14 + $0xb8] sm:$0xff]  }
 0x124   : > { %v8426_v24 = vpop.f32.mrf.mxu0  ;;  %8593 = vmatmul.mubr.msk.bf16.gmra.mxu0 %vm516_vm1, %v9063_v49  ;;  %v8358_v11 = vpop.f32.mrf.mxu1  ;;  %8525 = vmatmul.mubr.msk.bf16.gmra.mxu1 %vm516_vm1, %v9062_v15  ;;  %v9067_v49 = vld [vmem:[%s9435_s20 + $0xb8] sm:$0xff]   ;;  %v9069_v15 = vld [vmem:[%s9435_s20 + $0xc0] sm:$0xff]  }
 0x125   : > { %8596 = vmatprep.mubr.msk.bf16.mxu0 %vm516_vm1, %v9065_v26  ;;  %v9816_v16 = vadd.f32 %v1857_v1, %v1228_v37  ;;  %v1249_v46 = vadd.f32 %v8358_v11, %v9631_v21  ;;  %8528 = vmatprep.mubr.msk.bf16.mxu1 %vm516_vm1, %v9064_v6  ;;  %v9068_v37 = vld [vmem:[%s9430_s14 + $0xc0] sm:$0xff]  }
 0x126   : > { %v1870_v59 = vpop.f32.mrf.mxu0  ;;  %v1240_v53 = vpop.f32.mrf.mxu1 }
 0x127   : > { %v9820_v18 = vadd.f32 %v8426_v24, %v1249_v46  ;;  %v1241_v38 = vadd.f32 %v1240_v53, %v9638_v23 }
 0x128   : > { %v8427_v50 = vpop.f32.mrf.mxu0  ;;  %v8359_v51 = vpop.f32.mrf.mxu1 }
 0x129   : > { %v9826_v9 = vadd.f32 %v1870_v59, %v1241_v38  ;;  %v1252_v26 = vadd.f32 %v8359_v51, %v9646_v28 }
 0x12a   : > { %v1873_v1 = vpop.f32.mrf.mxu0  ;;  %v1243_v21 = vpop.f32.mrf.mxu1 }
 0x12b   : > { %v9830_v11 = vadd.f32 %v8427_v50, %v1252_v26  ;;  %v1244_v6 = vadd.f32 %v1243_v21, %v9650_v30  ;;  %v9070_v26 = vld [vmem:[%s9430_s14 + $0xc8] sm:$0xff]  }
 0x12c   : > { %v8430_v24 = vpop.f32.mrf.mxu0  ;;  %8597 = vmatmul.mubr.msk.bf16.gmra.mxu0 %vm516_vm1, %v9067_v49  ;;  %v8362_v23 = vpop.f32.mrf.mxu1  ;;  %8529 = vmatmul.mubr.msk.bf16.gmra.mxu1 %vm516_vm1, %v9066_v44  ;;  %v9071_v49 = vld [vmem:[%s9435_s20 + $0xc8] sm:$0xff]   ;;  %v9073_v44 = vld [vmem:[%s9435_s20 + $0xd0] sm:$0xff]  }
 0x12d   : > { %8600 = vmatprep.mubr.msk.bf16.mxu0 %vm516_vm1, %v9069_v15  ;;  %v9836_v28 = vadd.f32 %v1873_v1, %v1244_v6  ;;  %v1265_v46 = vadd.f32 %v8362_v23, %v9655_v33  ;;  %8532 = vmatprep.mubr.msk.bf16.mxu1 %vm516_vm1, %v9068_v37  ;;  %v9072_v6 = vld [vmem:[%s9430_s14 + $0xd0] sm:$0xff]  }
 0x12e   : > { %v1886_v59 = vpop.f32.mrf.mxu0  ;;  %v1256_v53 = vpop.f32.mrf.mxu1 }
 0x12f   : > { %v9840_v30 = vadd.f32 %v8430_v24, %v1265_v46  ;;  %v1257_v38 = vadd.f32 %v1256_v53, %v9662_v35 }
 0x130   : > { %v8431_v50 = vpop.f32.mrf.mxu0  ;;  %v8363_v51 = vpop.f32.mrf.mxu1 }
 0x131   : > { %v9846_v21 = vadd.f32 %v1886_v59, %v1257_v38  ;;  %v1268_v15 = vadd.f32 %v8363_v51, %v9670_v40 }
 0x132   : > { %v1889_v1 = vpop.f32.mrf.mxu0  ;;  %v1259_v33 = vpop.f32.mrf.mxu1 }
 0x133   : > { %v9850_v23 = vadd.f32 %v8431_v50, %v1268_v15  ;;  %v1260_v37 = vadd.f32 %v1259_v33, %v9674_v42  ;;  %v9074_v15 = vld [vmem:[%s9430_s14 + $0xd8] sm:$0xff]  }
 0x134   : > { %v8434_v24 = vpop.f32.mrf.mxu0  ;;  %8601 = vmatmul.mubr.msk.bf16.gmra.mxu0 %vm516_vm1, %v9071_v49  ;;  %v8366_v35 = vpop.f32.mrf.mxu1  ;;  %8533 = vmatmul.mubr.msk.bf16.gmra.mxu1 %vm516_vm1, %v9070_v26  ;;  %v9075_v49 = vld [vmem:[%s9435_s20 + $0xd8] sm:$0xff]   ;;  %v9077_v26 = vld [vmem:[%s9435_s20 + $0xe0] sm:$0xff]  }
 0x135   : > { %8604 = vmatprep.mubr.msk.bf16.mxu0 %vm516_vm1, %v9073_v44  ;;  %v9856_v40 = vadd.f32 %v1889_v1, %v1260_v37  ;;  %v1281_v46 = vadd.f32 %v8366_v35, %v9679_v45  ;;  %8536 = vmatprep.mubr.msk.bf16.mxu1 %vm516_vm1, %v9072_v6  ;;  %v9076_v37 = vld [vmem:[%s9430_s14 + $0xe0] sm:$0xff]  }
 0x136   : > { %v1902_v59 = vpop.f32.mrf.mxu0  ;;  %v1272_v53 = vpop.f32.mrf.mxu1 }
 0x137   : > { %v9860_v42 = vadd.f32 %v8434_v24, %v1281_v46  ;;  %v1273_v38 = vadd.f32 %v1272_v53, %v9686_v47 }
 0x138   : > { %v8435_v50 = vpop.f32.mrf.mxu0  ;;  %v8367_v51 = vpop.f32.mrf.mxu1 }
 0x139   : > { %v9866_v33 = vadd.f32 %v1902_v59, %v1273_v38  ;;  %v1284_v44 = vadd.f32 %v8367_v51, %v9694_v52 }
 0x13a   : > { %v1905_v1 = vpop.f32.mrf.mxu0  ;;  %v1275_v45 = vpop.f32.mrf.mxu1 }
 0x13b   : > { %v9870_v35 = vadd.f32 %v8435_v50, %v1284_v44  ;;  %v1276_v6 = vadd.f32 %v1275_v45, %v9698_v54  ;;  %v9078_v44 = vld [vmem:[%s9430_s14 + $0xe8] sm:$0xff]  }
 0x13c   : > { %v8438_v24 = vpop.f32.mrf.mxu0  ;;  %8605 = vmatmul.mubr.msk.bf16.gmra.mxu0 %vm516_vm1, %v9075_v49  ;;  %v8370_v47 = vpop.f32.mrf.mxu1  ;;  %8537 = vmatmul.mubr.msk.bf16.gmra.mxu1 %vm516_vm1, %v9074_v15  ;;  %v9079_v49 = vld [vmem:[%s9435_s20 + $0xe8] sm:$0xff]   ;;  %v9081_v15 = vld [vmem:[%s9435_s20 + $0xf0] sm:$0xff]  }
 0x13d   : > { %8608 = vmatprep.mubr.msk.bf16.mxu0 %vm516_vm1, %v9077_v26  ;;  %v9876_v52 = vadd.f32 %v1905_v1, %v1276_v6  ;;  %v1297_v46 = vadd.f32 %v8370_v47, %v9703_v57  ;;  %8540 = vmatprep.mubr.msk.bf16.mxu1 %vm516_vm1, %v9076_v37  ;;  %v9080_v6 = vld [vmem:[%s9430_s14 + $0xf0] sm:$0xff]  }
 0x13e   : > { %v1918_v59 = vpop.f32.mrf.mxu0  ;;  %v1288_v53 = vpop.f32.mrf.mxu1 }
 0x13f   : > { %v9880_v54 = vadd.f32 %v8438_v24, %v1297_v46  ;;  %v1289_v38 = vadd.f32 %v1288_v53, %v9710_v62 }
 0x140   : > { %v8439_v50 = vpop.f32.mrf.mxu0  ;;  %v8371_v51 = vpop.f32.mrf.mxu1 }
 0x141   : > { %v9886_v45 = vadd.f32 %v1918_v59, %v1289_v38  ;;  %v1300_v26 = vadd.f32 %v8371_v51, %v9718_v14 }
 0x142   : > { %v1921_v1 = vpop.f32.mrf.mxu0  ;;  %v1291_v57 = vpop.f32.mrf.mxu1 }
 0x143   : > { %v9890_v47 = vadd.f32 %v8439_v50, %v1300_v26  ;;  %v1292_v37 = vadd.f32 %v1291_v57, %v9722_v19  ;;  %v9082_v26 = vld [vmem:[%s9430_s14 + $0xf8] sm:$0xff]   ;;  %s4933_s14 = sadd.s32 120, %s9266_s21 }
 0x144   : > { %v8442_v24 = vpop.f32.mrf.mxu0  ;;  %8609 = vmatmul.mubr.msk.bf16.gmra.mxu0 %vm516_vm1, %v9079_v49  ;;  %v8374_v62 = vpop.f32.mrf.mxu1  ;;  %8541 = vmatmul.mubr.msk.bf16.gmra.mxu1 %vm516_vm1, %v9078_v44  ;;  %v9083_v49 = vld [vmem:[%s9435_s20 + $0xf8] sm:$0xff]   ;;  %v9085_v44 = vld [vmem:[%s9559_s10] sm:$0xff]   ;;  %s5627_s20 = sadd.s32 128, %s9266_s21  ;;  %s4934_s26 = sshra.s32 %s4933_s14, 3 }
 0x145   : > { %8612 = vmatprep.mubr.msk.bf16.mxu0 %vm516_vm1, %v9081_v15  ;;  %v9896_v14 = vadd.f32 %v1921_v1, %v1292_v37  ;;  %v1313_v46 = vadd.f32 %v8374_v62, %v9727_v27  ;;  %8544 = vmatprep.mubr.msk.bf16.mxu1 %vm516_vm1, %v9080_v6  ;;  %v9084_v1 = vld [vmem:[%s9551_s7] sm:$0xff]   ;;  %s5628_s27 = sshra.s32 %s5627_s20, 3  ;;  %s7540_s28 = sshll.u32 %s4934_s26, 2 }
 0x146   : > { %v1934_v59 = vpop.f32.mrf.mxu0  ;;  %v1304_v53 = vpop.f32.mrf.mxu1  ;;  %s7610_s29 = sshll.u32 %s5628_s27, 2  ;;  %s9931_s23 = scalar_lea.vmem %s11045_s0, %s7540_s28 }
 0x147   : > { %v9900_v19 = vadd.f32 %v8442_v24, %v1313_v46  ;;  %v1305_v38 = vadd.f32 %v1304_v53, %v9734_v36  ;;  %s9942_s6 = scalar_lea.vmem %s11045_s0, %s7610_s29 }
 0x148   : > { %v8443_v50 = vpop.f32.mrf.mxu0  ;;  %v8375_v51 = vpop.f32.mrf.mxu1 }
 0x149   : > { %v9906_v57 = vadd.f32 %v1934_v59, %v1305_v38  ;;  %v1316_v15 = vadd.f32 %v8375_v51, %v9739_v39 }
 0x14a   : > { %v1937_v27 = vpop.f32.mrf.mxu0  ;;  %v1307_v37 = vpop.f32.mrf.mxu1 }
 0x14b   : > { %v9910_v6 = vadd.f32 %v8443_v50, %v1316_v15  ;;  %v1308_v24 = vadd.f32 %v1307_v37, %v9746_v55 }
 0x14c   : > { %v8446_v62 = vpop.f32.mrf.mxu0  ;;  %8613 = vmatmul.mubr.msk.bf16.gmra.mxu0 %vm516_vm1, %v9083_v49  ;;  %v8378_v36 = vpop.f32.mrf.mxu1  ;;  %8545 = vmatmul.mubr.msk.bf16.gmra.mxu1 %vm516_vm1, %v9082_v26  ;;  %v9087_v49 = vld [vmem:[%s9559_s10 + $0x8] sm:$0xff]   ;;  %v9090_v26 = vld [vmem:[%s9551_s7 + $0x10] sm:$0xff]  }
 0x14d   : > { %8688 = vmatprep.mubr.msk.bf16.mxu0 %vm516_vm1, %v9085_v44  ;;  %v9916_v46 = vadd.f32 %v1937_v27, %v1308_v24  ;;  %v1329_v39 = vadd.f32 %v8378_v36, %v9751_v12  ;;  %8620 = vmatprep.mubr.msk.bf16.mxu1 %vm516_vm1, %v9084_v1  ;;  %v9086_v12 = vld [vmem:[%s9551_s7 + $0x8] sm:$0xff]   ;;  %v9091_v1 = vld [vmem:[%s9559_s10 + $0x10] sm:$0xff]   ;;  %v5272_v24 = vsel %vm613_vm0, %v9589_v3, 0 }
 0x14e   : > { %v1950_v59 = vpop.f32.mrf.mxu0  ;;  %v1320_v55 = vpop.f32.mrf.mxu1 }
 0x14f   : > { %v9922_v53 = vadd.f32 %v8446_v62, %v1329_v39  ;;  %v1321_v38 = vadd.f32 %v1320_v55, %v9758_v48  ;;  %v5966_v48 = vsel %vm613_vm0, %v9599_v7, 0  ;;  %v9122_v62 = vld [vmem:[%s11046_s1 + $0x54] sm:$0xff]   ;;  %v9123_v39 = vld [vmem:[%s11046_s1 + $0x60] sm:$0xff]  }
 0x150   : > { %v8447_v50 = vpop.f32.mrf.mxu0  ;;  %v8379_v51 = vpop.f32.mrf.mxu1 }
 0x151   : > { %v9933_v44 = vadd.f32 %v1950_v59, %v1321_v38  ;;  %v1332_v15 = vadd.f32 %v8379_v51, %v9763_v31  ;;  %v9095_v51 = vld [vmem:[%s9559_s10 + $0x20] sm:$0xff]  }
 0x152   : > { %v1953_v27 = vpop.f32.mrf.mxu0  ;;  %v1323_v37 = vpop.f32.mrf.mxu1 }
 0x153   : > { %v9949_v31 = vadd.f32 %v8447_v50, %v1332_v15  ;;  %v1324_v7 = vadd.f32 %v1323_v37, %v9770_v43  ;;  %v9093_v43 = vld [vmem:[%s9559_s10 + $0x18] sm:$0xff]  }
 0x154   : > { %v8450_v36 = vpop.f32.mrf.mxu0  ;;  %8689 = vmatmul.mubr.msk.bf16.vlgmr.msra.gmra.mxu0 %vm516_vm1, %v9087_v49  ;;  %v8382_v59 = vpop.f32.mrf.mxu1  ;;  %8621 = vmatmul.mubr.msk.bf16.vlgmr.msra.gmra.mxu1 %vm516_vm1, %v9086_v12  ;;  %v9092_v49 = vld [vmem:[%s9551_s7 + $0x18] sm:$0xff]  }
 0x155   : > { %8821 = vmatpush3.bf16.msra.mxu0 %v5966_v48  ;;  %v9957_v3 = vadd.f32 %v1953_v27, %v1324_v7  ;;  %v1345_v55 = vadd.f32 %v8382_v59, %v9572_v60  ;;  %8753 = vmatpush3.bf16.msra.mxu1 %v5272_v24  ;;  %v9094_v24 = vld [vmem:[%s9551_s7 + $0x20] sm:$0xff]  }
 0x156   : > { %v1966_v38 = vpop.f32.mrf.mxu0  ;;  %8624 = vmatprep.mubr.msk.bf16.mxu1 %vm516_vm1, %v9090_v26  ;;  %v1336_v50 = vpop.f32.mrf.mxu1  ;;  %8692 = vmatprep.mubr.msk.bf16.mxu0 %vm516_vm1, %v9091_v1 }
 0x157   : > { %8754 = vmatprep.subr.bf16.mxu1 %v9122_v62  ;;  %v9965_v15 = vadd.f32 %v8450_v36, %v1345_v55  ;;  %v1337_v12 = vadd.f32 %v1336_v50, %v9579_v63  ;;  %8822 = vmatprep.subr.bf16.mxu0 %v9123_v39  ;;  %v9097_v55 = vld [vmem:[%s9559_s10 + $0x28] sm:$0xff]  }
 0x158   : > { %v8451_v27 = vpop.f32.mrf.mxu0  ;;  %v8383_v48 = vpop.f32.mrf.mxu1  ;;  %v9096_v50 = vld [vmem:[%s9551_s7 + $0x28] sm:$0xff]  }
 0x159   : > { %8823 = vmatpush3.bf16.msra.mxu0 %v9123_v39  ;;  %v9968_v60 = vadd.f32 %v1966_v38, %v1337_v12  ;;  %v1348_v26 = vadd.f32 %v8383_v48, %v9591_v4  ;;  %8755 = vmatpush3.bf16.msra.mxu1 %v9122_v62 }
 0x15a   : > { %v1969_v37 = vpop.f32.mrf.mxu0  ;;  %v1339_v1 = vpop.f32.mrf.mxu1 }
 0x15b   : > { %v9972_v7 = vadd.f32 %v8451_v27, %v1348_v26  ;;  %v1340_v36 = vadd.f32 %v1339_v1, %v9601_v8  ;;  %v9099_v8 = vld [vmem:[%s9559_s10 + $0x30] sm:$0xff]  }
 0x15c   : > { %v8454_v63 = vpop.f32.mrf.mxu0  ;;  %8693 = vmatmul.mubr.msk.bf16.gmra.mxu0 %vm516_vm1, %v9093_v43  ;;  %v8386_v59 = vpop.f32.mrf.mxu1  ;;  %8625 = vmatmul.mubr.msk.bf16.gmra.mxu1 %vm516_vm1, %v9092_v49 }
 0x15d   : > { %8696 = vmatprep.mubr.msk.bf16.mxu0 %vm516_vm1, %v9095_v51  ;;  %v9978_v4 = vadd.f32 %v1969_v37, %v1340_v36  ;;  %v1361_v39 = vadd.f32 %v8386_v59, %v9610_v10  ;;  %8628 = vmatprep.mubr.msk.bf16.mxu1 %vm516_vm1, %v9094_v24  ;;  %v9098_v10 = vld [vmem:[%s9551_s7 + $0x30] sm:$0xff]  }
 0x15e   : > { %v1982_v62 = vpop.f32.mrf.mxu0  ;;  %v1352_v38 = vpop.f32.mrf.mxu1 }
 0x15f   : > { %v9985_v12 = vadd.f32 %v8454_v63, %v1361_v39  ;;  %v1353_v43 = vadd.f32 %v1352_v38, %v9618_v13  ;;  %v9101_v39 = vld [vmem:[%s9559_s10 + $0x38] sm:$0xff]  }
 0x160   : > { %v8455_v27 = vpop.f32.mrf.mxu0  ;;  %v8387_v49 = vpop.f32.mrf.mxu1  ;;  %v9100_v38 = vld [vmem:[%s9551_s7 + $0x38] sm:$0xff]  }
 0x161   : > { %v9988_v48 = vadd.f32 %v1982_v62, %v1353_v43  ;;  %v1364_v51 = vadd.f32 %v8387_v49, %v9624_v17 }
 0x162   : > { %v1985_v26 = vpop.f32.mrf.mxu0  ;;  %v1355_v37 = vpop.f32.mrf.mxu1 }
 0x163   : > { %v9992_v24 = vadd.f32 %v8455_v27, %v1364_v51  ;;  %v1356_v1 = vadd.f32 %v1355_v37, %v9629_v20  ;;  %v9103_v20 = vld [vmem:[%s9559_s10 + $0x40] sm:$0xff]  }
 0x164   : > { %v8458_v36 = vpop.f32.mrf.mxu0  ;;  %8697 = vmatmul.mubr.msk.bf16.gmra.mxu0 %vm516_vm1, %v9097_v55  ;;  %v8390_v13 = vpop.f32.mrf.mxu1  ;;  %8629 = vmatmul.mubr.msk.bf16.gmra.mxu1 %vm516_vm1, %v9096_v50 }
 0x165   : > { %8700 = vmatprep.mubr.msk.bf16.mxu0 %vm516_vm1, %v9099_v8  ;;  %v9998_v63 = vadd.f32 %v1985_v26, %v1356_v1  ;;  %v1377_v17 = vadd.f32 %v8390_v13, %v9634_v22  ;;  %8632 = vmatprep.mubr.msk.bf16.mxu1 %vm516_vm1, %v9098_v10  ;;  %v9102_v22 = vld [vmem:[%s9551_s7 + $0x40] sm:$0xff]  }
 0x166   : > { %v1998_v59 = vpop.f32.mrf.mxu0  ;;  %v1368_v62 = vpop.f32.mrf.mxu1 }
 0x167   : > { %v10005_v43 = vadd.f32 %v8458_v36, %v1377_v17  ;;  %v1369_v55 = vadd.f32 %v1368_v62, %v9642_v25  ;;  %v9105_v17 = vld [vmem:[%s9559_s10 + $0x48] sm:$0xff]  }
 0x168   : > { %v8459_v27 = vpop.f32.mrf.mxu0  ;;  %v8391_v50 = vpop.f32.mrf.mxu1  ;;  %v9104_v62 = vld [vmem:[%s9551_s7 + $0x48] sm:$0xff]  }
 0x169   : > { %v10008_v49 = vadd.f32 %v1998_v59, %v1369_v55  ;;  %v1380_v8 = vadd.f32 %v8391_v50, %v9648_v29 }
 0x16a   : > { %v2001_v51 = vpop.f32.mrf.mxu0  ;;  %v1371_v26 = vpop.f32.mrf.mxu1 }
 0x16b   : > { %v10012_v10 = vadd.f32 %v8459_v27, %v1380_v8  ;;  %v1372_v37 = vadd.f32 %v1371_v26, %v9653_v32  ;;  %v9107_v32 = vld [vmem:[%s9559_s10 + $0x50] sm:$0xff]  }
 0x16c   : > { %v8462_v1 = vpop.f32.mrf.mxu0  ;;  %8701 = vmatmul.mubr.msk.bf16.gmra.mxu0 %vm516_vm1, %v9101_v39  ;;  %v8394_v25 = vpop.f32.mrf.mxu1  ;;  %8633 = vmatmul.mubr.msk.bf16.gmra.mxu1 %vm516_vm1, %v9100_v38  ;;  %v11072_v39 = vld [vmem:[#allocation2_spill] sm:$0xff] }
 0x16d   : > { %11069 = vst [vmem:[#allocation21_spill] sm:$0xff] %v10012_v10  ;;  %8704 = vmatprep.mubr.msk.bf16.mxu0 %vm516_vm1, %v9103_v20  ;;  %v10018_v36 = vadd.f32 %v2001_v51, %v1372_v37  ;;  %v1393_v29 = vadd.f32 %v8394_v25, %v9658_v34  ;;  %8636 = vmatprep.mubr.msk.bf16.mxu1 %vm516_vm1, %v9102_v22  ;;  %v11074_v20 = vld [vmem:[#allocation3_spill] sm:$0xff]  ;;  %v9106_v34 = vld [vmem:[%s9551_s7 + $0x50] sm:$0xff]  }
 0x16e   : > { %v2014_v13 = vpop.f32.mrf.mxu0  ;;  %v1384_v59 = vpop.f32.mrf.mxu1  ;;  %v11076_v25 = vld [vmem:[#allocation4_spill] sm:$0xff] }
 0x16f   : > { %11070 = vst [vmem:[#allocation22_spill] sm:$0xff] %v10018_v36  ;;  %v10025_v55 = vadd.f32 %v8462_v1, %v1393_v29  ;;  %v1385_v27 = vadd.f32 %v1384_v59, %v11072_v39  ;;  %v11078_v59 = vld [vmem:[#allocation5_spill] sm:$0xff] }
 0x170   : > { %v8463_v50 = vpop.f32.mrf.mxu0  ;;  %v8395_v38 = vpop.f32.mrf.mxu1 }
 0x171   : > { %11071 = vst [vmem:[#allocation23_spill] sm:$0xff] %v10025_v55  ;;  %v10028_v8 = vadd.f32 %v2014_v13, %v1385_v27  ;;  %v1396_v51 = vadd.f32 %v8395_v38, %v11074_v20  ;;  %v9108_v20 = vld [vmem:[%s9551_s7 + $0x58] sm:$0xff]  }
 0x172   : > { %v2017_v26 = vpop.f32.mrf.mxu0  ;;  %v1387_v22 = vpop.f32.mrf.mxu1 }
 0x173   : > { %11073 = vst [vmem:[#allocation2_spill] sm:$0xff] %v10028_v8  ;;  %v10032_v37 = vadd.f32 %v8463_v50, %v1396_v51  ;;  %v1388_v36 = vadd.f32 %v1387_v22, %v11076_v25  ;;  %v9109_v50 = vld [vmem:[%s9559_s10 + $0x58] sm:$0xff]   ;;  %v9111_v51 = vld [vmem:[%s9559_s10 + $0x60] sm:$0xff]  }
 0x174   : > { %v8466_v1 = vpop.f32.mrf.mxu0  ;;  %8705 = vmatmul.mubr.msk.bf16.gmra.mxu0 %vm516_vm1, %v9105_v17  ;;  %v8398_v29 = vpop.f32.mrf.mxu1  ;;  %8637 = vmatmul.mubr.msk.bf16.gmra.mxu1 %vm516_vm1, %v9104_v62  ;;  %v11080_v17 = vld [vmem:[#allocation6_spill] sm:$0xff] }
 0x175   : > { %11075 = vst [vmem:[#allocation3_spill] sm:$0xff] %v10032_v37  ;;  %8708 = vmatprep.mubr.msk.bf16.mxu0 %vm516_vm1, %v9107_v32  ;;  %v10038_v13 = vadd.f32 %v2017_v26, %v1388_v36  ;;  %v1409_v39 = vadd.f32 %v8398_v29, %v11078_v59  ;;  %8640 = vmatprep.mubr.msk.bf16.mxu1 %vm516_vm1, %v9106_v34  ;;  %v11082_v32 = vld [vmem:[#allocation7_spill] sm:$0xff]  ;;  %v9110_v29 = vld [vmem:[%s9551_s7 + $0x60] sm:$0xff]  }
 0x176   : > { %v2030_v27 = vpop.f32.mrf.mxu0  ;;  %v1400_v38 = vpop.f32.mrf.mxu1 }
 0x177   : > { %11077 = vst [vmem:[#allocation4_spill] sm:$0xff] %v10038_v13  ;;  %v10045_v22 = vadd.f32 %v8466_v1, %v1409_v39  ;;  %v1401_v25 = vadd.f32 %v1400_v38, %v11080_v17  ;;  %v11084_v13 = vld [vmem:[#allocation8_spill] sm:$0xff]  ;;  %v11086_v38 = vld [vmem:[#allocation9_spill] sm:$0xff] }
 0x178   : > { %v8467_v37 = vpop.f32.mrf.mxu0  ;;  %v8399_v62 = vpop.f32.mrf.mxu1 }
 0x179   : > { %11079 = vst [vmem:[#allocation5_spill] sm:$0xff] %v10045_v22  ;;  %v10048_v8 = vadd.f32 %v2030_v27, %v1401_v25  ;;  %v1412_v36 = vadd.f32 %v8399_v62, %v11082_v32  ;;  %v9112_v32 = vld [vmem:[%s9551_s7 + $0x68] sm:$0xff]  }
 0x17a   : > { %v2033_v26 = vpop.f32.mrf.mxu0  ;;  %v1403_v34 = vpop.f32.mrf.mxu1 }
 0x17b   : > { %11081 = vst [vmem:[#allocation6_spill] sm:$0xff] %v10048_v8  ;;  %v10052_v59 = vadd.f32 %v8467_v37, %v1412_v36  ;;  %v1404_v55 = vadd.f32 %v1403_v34, %v11084_v13  ;;  %v9113_v37 = vld [vmem:[%s9559_s10 + $0x68] sm:$0xff]   ;;  %v9115_v13 = vld [vmem:[%s9559_s10 + $0x70] sm:$0xff]  }
 0x17c   : > { %v8470_v1 = vpop.f32.mrf.mxu0  ;;  %8709 = vmatmul.mubr.msk.bf16.gmra.mxu0 %vm516_vm1, %v9109_v50  ;;  %v8402_v39 = vpop.f32.mrf.mxu1  ;;  %8641 = vmatmul.mubr.msk.bf16.gmra.mxu1 %vm516_vm1, %v9108_v20  ;;  %v11087_v50 = vld [vmem:[#allocation10_spill] sm:$0xff] }
 0x17d   : > { %11083 = vst [vmem:[#allocation7_spill] sm:$0xff] %v10052_v59  ;;  %8712 = vmatprep.mubr.msk.bf16.mxu0 %vm516_vm1, %v9111_v51  ;;  %v10058_v27 = vadd.f32 %v2033_v26, %v1404_v55  ;;  %v1425_v17 = vadd.f32 %v8402_v39, %v11086_v38  ;;  %8644 = vmatprep.mubr.msk.bf16.mxu1 %vm516_vm1, %v9110_v29  ;;  %v11088_v51 = vld [vmem:[#allocation11_spill] sm:$0xff]  ;;  %v11090_v29 = vld [vmem:[#allocation12_spill] sm:$0xff] }
 0x17e   : > { %v2046_v25 = vpop.f32.mrf.mxu0  ;;  %v1416_v62 = vpop.f32.mrf.mxu1 }
 0x17f   : > { %11085 = vst [vmem:[#allocation8_spill] sm:$0xff] %v10058_v27  ;;  %v10065_v36 = vadd.f32 %v8470_v1, %v1425_v17  ;;  %v1417_v34 = vadd.f32 %v1416_v62, %v11087_v50  ;;  %v9114_v27 = vld [vmem:[%s9551_s7 + $0x70] sm:$0xff]  }
 0x180   : > { %v8471_v59 = vpop.f32.mrf.mxu0  ;;  %v8403_v20 = vpop.f32.mrf.mxu1 }
 0x181   : > { %v10068_v8 = vadd.f32 %v2046_v25, %v1417_v34  ;;  %v1428_v55 = vadd.f32 %v8403_v20, %v11088_v51  ;;  %v11092_v25 = vld [vmem:[#allocation13_spill] sm:$0xff]  ;;  %v11094_v20 = vld [vmem:[#allocation14_spill] sm:$0xff] }
 0x182   : > { %v2049_v26 = vpop.f32.mrf.mxu0  ;;  %v1419_v39 = vpop.f32.mrf.mxu1 }
 0x183   : > { %v10072_v38 = vadd.f32 %v8471_v59, %v1428_v55  ;;  %v1420_v22 = vadd.f32 %v1419_v39, %v11090_v29  ;;  %v9116_v29 = vld [vmem:[%s9551_s7 + $0x78] sm:$0xff]  }
 0x184   : > { %v8474_v10 = vpop.f32.mrf.mxu0  ;;  %8713 = vmatmul.mubr.msk.bf16.gmra.mxu0 %vm516_vm1, %v9113_v37  ;;  %v8406_v1 = vpop.f32.mrf.mxu1  ;;  %8645 = vmatmul.mubr.msk.bf16.gmra.mxu1 %vm516_vm1, %v9112_v32  ;;  %v9117_v37 = vld [vmem:[%s9559_s10 + $0x78] sm:$0xff]   ;;  %v9119_v32 = vld [vmem:[%s9559_s10 + $0x80] sm:$0xff]  }
 0x185   : > { %11089 = vst [vmem:[#allocation9_spill] sm:$0xff] %v10072_v38  ;;  %8716 = vmatprep.mubr.msk.bf16.mxu0 %vm516_vm1, %v9115_v13  ;;  %v10078_v17 = vadd.f32 %v2049_v26, %v1420_v22  ;;  %v1441_v62 = vadd.f32 %v8406_v1, %v11092_v25  ;;  %8648 = vmatprep.mubr.msk.bf16.mxu1 %vm516_vm1, %v9114_v27  ;;  %v11096_v13 = vld [vmem:[#allocation15_spill] sm:$0xff]  ;;  %v11098_v27 = vld [vmem:[#allocation16_spill] sm:$0xff] }
 0x186   : > { %v2062_v50 = vpop.f32.mrf.mxu0  ;;  %v1432_v59 = vpop.f32.mrf.mxu1 }
 0x187   : > { %11091 = vst [vmem:[#allocation10_spill] sm:$0xff] %v10078_v17  ;;  %v10082_v34 = vadd.f32 %v8474_v10, %v1441_v62  ;;  %v1433_v51 = vadd.f32 %v1432_v59, %v11094_v20  ;;  %v9118_v17 = vld [vmem:[%s9551_s7 + $0x80] sm:$0xff]   ;;  %v11100_v20 = vld [vmem:[#allocation17_spill] sm:$0xff] }
 0x188   : > { %v8475_v55 = vpop.f32.mrf.mxu0  ;;  %v8407_v39 = vpop.f32.mrf.mxu1 }
 0x189   : > { %11093 = vst [vmem:[#allocation11_spill] sm:$0xff] %v10082_v34  ;;  %v10088_v38 = vadd.f32 %v2062_v50, %v1433_v51  ;;  %v1444_v22 = vadd.f32 %v8407_v39, %v11096_v13 }
 0x18a   : > { %v2065_v26 = vpop.f32.mrf.mxu0  ;;  %v1435_v1 = vpop.f32.mrf.mxu1 }
 0x18b   : > { %11095 = vst [vmem:[#allocation12_spill] sm:$0xff] %v10088_v38  ;;  %v10092_v25 = vadd.f32 %v8475_v55, %v1444_v22  ;;  %v1436_v10 = vadd.f32 %v1435_v1, %v11098_v27  ;;  %v11101_v22 = vld [vmem:[#allocation18_spill] sm:$0xff]  ;;  %v9120_v38 = vld [vmem:[%s9551_s7 + $0x88] sm:$0xff]  }
 0x18c   : > { %v8478_v62 = vpop.f32.mrf.mxu0  ;;  %8717 = vmatmul.mubr.msk.bf16.gmra.mxu0 %vm516_vm1, %v9117_v37  ;;  %v8410_v59 = vpop.f32.mrf.mxu1  ;;  %8649 = vmatmul.mubr.msk.bf16.gmra.mxu1 %vm516_vm1, %v9116_v29  ;;  %v9121_v37 = vld [vmem:[%s9559_s10 + $0x88] sm:$0xff]   ;;  %v9125_v29 = vld [vmem:[%s9559_s10 + $0x90] sm:$0xff]  }
 0x18d   : > { %11097 = vst [vmem:[#allocation13_spill] sm:$0xff] %v10092_v25  ;;  %8720 = vmatprep.mubr.msk.bf16.mxu0 %vm516_vm1, %v9119_v32  ;;  %v10098_v50 = vadd.f32 %v2065_v26, %v1436_v10  ;;  %v1457_v51 = vadd.f32 %v8410_v59, %v11100_v20  ;;  %8652 = vmatprep.mubr.msk.bf16.mxu1 %vm516_vm1, %v9118_v17  ;;  %v11102_v32 = vld [vmem:[#allocation19_spill] sm:$0xff]  ;;  %v11104_v17 = vld [vmem:[#allocation20_spill] sm:$0xff] }
 0x18e   : > { %v2078_v39 = vpop.f32.mrf.mxu0  ;;  %v1448_v55 = vpop.f32.mrf.mxu1 }
 0x18f   : > { %11099 = vst [vmem:[#allocation14_spill] sm:$0xff] %v10098_v50  ;;  %v10102_v13 = vadd.f32 %v8478_v62, %v1457_v51  ;;  %v1449_v1 = vadd.f32 %v1448_v55, %v11101_v22  ;;  %v9124_v50 = vld [vmem:[%s9551_s7 + $0x90] sm:$0xff]  }
 0x190   : > { %v8479_v27 = vpop.f32.mrf.mxu0  ;;  %v8411_v25 = vpop.f32.mrf.mxu1 }
 0x191   : > { %v10108_v34 = vadd.f32 %v2078_v39, %v1449_v1  ;;  %v1460_v26 = vadd.f32 %v8411_v25, %v11102_v32 }
 0x192   : > { %v2081_v10 = vpop.f32.mrf.mxu0  ;;  %v1451_v59 = vpop.f32.mrf.mxu1 }
 0x193   : > { %v10112_v20 = vadd.f32 %v8479_v27, %v1460_v26  ;;  %v1452_v62 = vadd.f32 %v1451_v59, %v11104_v17  ;;  %v9126_v17 = vld [vmem:[%s9551_s7 + $0x98] sm:$0xff]  }
 0x194   : > { %v8554_v51 = vpop.f32.mrf.mxu0  ;;  %8721 = vmatmul.mubr.msk.bf16.gmra.mxu0 %vm516_vm1, %v9121_v37  ;;  %v8486_v55 = vpop.f32.mrf.mxu1  ;;  %8653 = vmatmul.mubr.msk.bf16.gmra.mxu1 %vm516_vm1, %v9120_v38  ;;  %v9127_v37 = vld [vmem:[%s9559_s10 + $0x98] sm:$0xff]   ;;  %v9129_v38 = vld [vmem:[%s9559_s10 + $0xa0] sm:$0xff]  }
 0x195   : > { %11103 = vst [vmem:[#allocation15_spill] sm:$0xff] %v10112_v20  ;;  %8724 = vmatprep.mubr.msk.bf16.mxu0 %vm516_vm1, %v9125_v29  ;;  %v10118_v25 = vadd.f32 %v2081_v10, %v1452_v62  ;;  %v2789_v39 = vadd.f32 %v8486_v55, %v9780_v56  ;;  %8656 = vmatprep.mubr.msk.bf16.mxu1 %vm516_vm1, %v9124_v50  ;;  %v9128_v62 = vld [vmem:[%s9551_s7 + $0xa0] sm:$0xff]  }
 0x196   : > { %v3226_v22 = vpop.f32.mrf.mxu0  ;;  %v2532_v1 = vpop.f32.mrf.mxu1 }
 0x197   : > { %v10122_v27 = vadd.f32 %v8554_v51, %v2789_v39  ;;  %v2787_v32 = vadd.f32 %v2532_v1, %v9786_v41 }
 0x198   : > { %v8555_v26 = vpop.f32.mrf.mxu0  ;;  %v8487_v59 = vpop.f32.mrf.mxu1 }
 0x199   : > { %v10128_v20 = vadd.f32 %v3226_v22, %v2787_v32  ;;  %v2790_v29 = vadd.f32 %v8487_v59, %v9790_v0 }
 0x19a   : > { %v3229_v10 = vpop.f32.mrf.mxu0  ;;  %v2535_v56 = vpop.f32.mrf.mxu1 }
 0x19b   : > { %v10132_v55 = vadd.f32 %v8555_v26, %v2790_v29  ;;  %v2788_v50 = vadd.f32 %v2535_v56, %v9796_v2  ;;  %v9130_v29 = vld [vmem:[%s9551_s7 + $0xa8] sm:$0xff]  }
 0x19c   : > { %v8558_v51 = vpop.f32.mrf.mxu0  ;;  %8725 = vmatmul.mubr.msk.bf16.gmra.mxu0 %vm516_vm1, %v9127_v37  ;;  %v8490_v41 = vpop.f32.mrf.mxu1  ;;  %8657 = vmatmul.mubr.msk.bf16.gmra.mxu1 %vm516_vm1, %v9126_v17  ;;  %v9131_v37 = vld [vmem:[%s9559_s10 + $0xa8] sm:$0xff]   ;;  %v9133_v17 = vld [vmem:[%s9559_s10 + $0xb0] sm:$0xff]  }
 0x19d   : > { %8728 = vmatprep.mubr.msk.bf16.mxu0 %vm516_vm1, %v9129_v38  ;;  %v10138_v0 = vadd.f32 %v3229_v10, %v2788_v50  ;;  %v2793_v39 = vadd.f32 %v8490_v41, %v9800_v5  ;;  %8660 = vmatprep.mubr.msk.bf16.mxu1 %vm516_vm1, %v9128_v62  ;;  %v9132_v50 = vld [vmem:[%s9551_s7 + $0xb0] sm:$0xff]  }
 0x19e   : > { %v3242_v22 = vpop.f32.mrf.mxu0  ;;  %v2548_v1 = vpop.f32.mrf.mxu1 }
 0x19f   : > { %v10142_v2 = vadd.f32 %v8558_v51, %v2793_v39  ;;  %v2791_v32 = vadd.f32 %v2548_v1, %v9806_v58 }
 0x1a0   : > { %v8559_v26 = vpop.f32.mrf.mxu0  ;;  %v8491_v59 = vpop.f32.mrf.mxu1 }
 0x1a1   : > { %v10148_v56 = vadd.f32 %v3242_v22, %v2791_v32  ;;  %v2794_v38 = vadd.f32 %v8491_v59, %v9810_v61 }
 0x1a2   : > { %v3245_v10 = vpop.f32.mrf.mxu0  ;;  %v2551_v5 = vpop.f32.mrf.mxu1 }
 0x1a3   : > { %v10152_v41 = vadd.f32 %v8559_v26, %v2794_v38  ;;  %v2792_v62 = vadd.f32 %v2551_v5, %v9816_v16  ;;  %v9134_v38 = vld [vmem:[%s9551_s7 + $0xb8] sm:$0xff]  }
 0x1a4   : > { %v8562_v51 = vpop.f32.mrf.mxu0  ;;  %8729 = vmatmul.mubr.msk.bf16.gmra.mxu0 %vm516_vm1, %v9131_v37  ;;  %v8494_v58 = vpop.f32.mrf.mxu1  ;;  %8661 = vmatmul.mubr.msk.bf16.gmra.mxu1 %vm516_vm1, %v9130_v29  ;;  %v9135_v37 = vld [vmem:[%s9559_s10 + $0xb8] sm:$0xff]   ;;  %v9137_v29 = vld [vmem:[%s9559_s10 + $0xc0] sm:$0xff]  }
 0x1a5   : > { %8732 = vmatprep.mubr.msk.bf16.mxu0 %vm516_vm1, %v9133_v17  ;;  %v10158_v61 = vadd.f32 %v3245_v10, %v2792_v62  ;;  %v2797_v39 = vadd.f32 %v8494_v58, %v9820_v18  ;;  %8664 = vmatprep.mubr.msk.bf16.mxu1 %vm516_vm1, %v9132_v50  ;;  %v9136_v62 = vld [vmem:[%s9551_s7 + $0xc0] sm:$0xff]  }
 0x1a6   : > { %v3258_v22 = vpop.f32.mrf.mxu0  ;;  %v2564_v1 = vpop.f32.mrf.mxu1 }
 0x1a7   : > { %v10162_v16 = vadd.f32 %v8562_v51, %v2797_v39  ;;  %v2795_v32 = vadd.f32 %v2564_v1, %v9826_v9 }
 0x1a8   : > { %v8563_v26 = vpop.f32.mrf.mxu0  ;;  %v8495_v59 = vpop.f32.mrf.mxu1 }
 0x1a9   : > { %v10168_v5 = vadd.f32 %v3258_v22, %v2795_v32  ;;  %v2798_v17 = vadd.f32 %v8495_v59, %v9830_v11 }
 0x1aa   : > { %v3261_v10 = vpop.f32.mrf.mxu0  ;;  %v2567_v18 = vpop.f32.mrf.mxu1 }
 0x1ab   : > { %v10172_v58 = vadd.f32 %v8563_v26, %v2798_v17  ;;  %v2796_v50 = vadd.f32 %v2567_v18, %v9836_v28  ;;  %v9138_v17 = vld [vmem:[%s9551_s7 + $0xc8] sm:$0xff]  }
 0x1ac   : > { %v8566_v51 = vpop.f32.mrf.mxu0  ;;  %8733 = vmatmul.mubr.msk.bf16.gmra.mxu0 %vm516_vm1, %v9135_v37  ;;  %v8498_v9 = vpop.f32.mrf.mxu1  ;;  %8665 = vmatmul.mubr.msk.bf16.gmra.mxu1 %vm516_vm1, %v9134_v38  ;;  %v9139_v37 = vld [vmem:[%s9559_s10 + $0xc8] sm:$0xff]   ;;  %v9141_v38 = vld [vmem:[%s9559_s10 + $0xd0] sm:$0xff]  }
 0x1ad   : > { %8736 = vmatprep.mubr.msk.bf16.mxu0 %vm516_vm1, %v9137_v29  ;;  %v10178_v11 = vadd.f32 %v3261_v10, %v2796_v50  ;;  %v2801_v39 = vadd.f32 %v8498_v9, %v9840_v30  ;;  %8668 = vmatprep.mubr.msk.bf16.mxu1 %vm516_vm1, %v9136_v62  ;;  %v9140_v50 = vld [vmem:[%s9551_s7 + $0xd0] sm:$0xff]  }
 0x1ae   : > { %v3274_v22 = vpop.f32.mrf.mxu0  ;;  %v2580_v1 = vpop.f32.mrf.mxu1 }
 0x1af   : > { %v10182_v28 = vadd.f32 %v8566_v51, %v2801_v39  ;;  %v2799_v32 = vadd.f32 %v2580_v1, %v9846_v21 }
 0x1b0   : > { %v8567_v26 = vpop.f32.mrf.mxu0  ;;  %v8499_v59 = vpop.f32.mrf.mxu1 }
 0x1b1   : > { %v10188_v18 = vadd.f32 %v3274_v22, %v2799_v32  ;;  %v2802_v29 = vadd.f32 %v8499_v59, %v9850_v23 }
 0x1b2   : > { %v3277_v10 = vpop.f32.mrf.mxu0  ;;  %v2583_v30 = vpop.f32.mrf.mxu1 }
 0x1b3   : > { %v10192_v9 = vadd.f32 %v8567_v26, %v2802_v29  ;;  %v2800_v62 = vadd.f32 %v2583_v30, %v9856_v40  ;;  %v9142_v29 = vld [vmem:[%s9551_s7 + $0xd8] sm:$0xff]  }
 0x1b4   : > { %v8570_v51 = vpop.f32.mrf.mxu0  ;;  %8737 = vmatmul.mubr.msk.bf16.gmra.mxu0 %vm516_vm1, %v9139_v37  ;;  %v8502_v21 = vpop.f32.mrf.mxu1  ;;  %8669 = vmatmul.mubr.msk.bf16.gmra.mxu1 %vm516_vm1, %v9138_v17  ;;  %v9143_v37 = vld [vmem:[%s9559_s10 + $0xd8] sm:$0xff]   ;;  %v9145_v17 = vld [vmem:[%s9559_s10 + $0xe0] sm:$0xff]  }
 0x1b5   : > { %8740 = vmatprep.mubr.msk.bf16.mxu0 %vm516_vm1, %v9141_v38  ;;  %v10198_v23 = vadd.f32 %v3277_v10, %v2800_v62  ;;  %v2805_v39 = vadd.f32 %v8502_v21, %v9860_v42  ;;  %8672 = vmatprep.mubr.msk.bf16.mxu1 %vm516_vm1, %v9140_v50  ;;  %v9144_v62 = vld [vmem:[%s9551_s7 + $0xe0] sm:$0xff]  }
 0x1b6   : > { %v3290_v22 = vpop.f32.mrf.mxu0  ;;  %v2596_v1 = vpop.f32.mrf.mxu1 }
 0x1b7   : > { %v10202_v40 = vadd.f32 %v8570_v51, %v2805_v39  ;;  %v2803_v32 = vadd.f32 %v2596_v1, %v9866_v33 }
 0x1b8   : > { %v8571_v26 = vpop.f32.mrf.mxu0  ;;  %v8503_v59 = vpop.f32.mrf.mxu1 }
 0x1b9   : > { %v10208_v30 = vadd.f32 %v3290_v22, %v2803_v32  ;;  %v2806_v38 = vadd.f32 %v8503_v59, %v9870_v35 }
 0x1ba   : > { %v3293_v10 = vpop.f32.mrf.mxu0  ;;  %v2599_v42 = vpop.f32.mrf.mxu1 }
 0x1bb   : > { %v10212_v21 = vadd.f32 %v8571_v26, %v2806_v38  ;;  %v2804_v50 = vadd.f32 %v2599_v42, %v9876_v52  ;;  %v9146_v38 = vld [vmem:[%s9551_s7 + $0xe8] sm:$0xff]  }
 0x1bc   : > { %v8574_v51 = vpop.f32.mrf.mxu0  ;;  %8741 = vmatmul.mubr.msk.bf16.gmra.mxu0 %vm516_vm1, %v9143_v37  ;;  %v8506_v33 = vpop.f32.mrf.mxu1  ;;  %8673 = vmatmul.mubr.msk.bf16.gmra.mxu1 %vm516_vm1, %v9142_v29  ;;  %v9147_v37 = vld [vmem:[%s9559_s10 + $0xe8] sm:$0xff]   ;;  %v9149_v29 = vld [vmem:[%s9559_s10 + $0xf0] sm:$0xff]  }
 0x1bd   : > { %8744 = vmatprep.mubr.msk.bf16.mxu0 %vm516_vm1, %v9145_v17  ;;  %v10218_v35 = vadd.f32 %v3293_v10, %v2804_v50  ;;  %v2809_v39 = vadd.f32 %v8506_v33, %v9880_v54  ;;  %8676 = vmatprep.mubr.msk.bf16.mxu1 %vm516_vm1, %v9144_v62  ;;  %v9148_v50 = vld [vmem:[%s9551_s7 + $0xf0] sm:$0xff]  }
 0x1be   : > { %v3306_v22 = vpop.f32.mrf.mxu0  ;;  %v2612_v1 = vpop.f32.mrf.mxu1 }
 0x1bf   : > { %v10222_v52 = vadd.f32 %v8574_v51, %v2809_v39  ;;  %v2807_v32 = vadd.f32 %v2612_v1, %v9886_v45 }
 0x1c0   : > { %v8575_v26 = vpop.f32.mrf.mxu0  ;;  %v8507_v59 = vpop.f32.mrf.mxu1 }
 0x1c1   : > { %v10228_v42 = vadd.f32 %v3306_v22, %v2807_v32  ;;  %v2810_v17 = vadd.f32 %v8507_v59, %v9890_v47 }
 0x1c2   : > { %v3309_v10 = vpop.f32.mrf.mxu0  ;;  %v2615_v54 = vpop.f32.mrf.mxu1 }
 0x1c3   : > { %v10232_v33 = vadd.f32 %v8575_v26, %v2810_v17  ;;  %v2808_v62 = vadd.f32 %v2615_v54, %v9896_v14  ;;  %v9150_v17 = vld [vmem:[%s9551_s7 + $0xf8] sm:$0xff]   ;;  %s7048_s7 = sshll.u32 %s7043_s16, 6 }
 0x1c4   : > { %v8578_v51 = vpop.f32.mrf.mxu0  ;;  %8745 = vmatmul.mubr.msk.bf16.gmra.mxu0 %vm516_vm1, %v9147_v37  ;;  %v8510_v45 = vpop.f32.mrf.mxu1  ;;  %8677 = vmatmul.mubr.msk.bf16.gmra.mxu1 %vm516_vm1, %v9146_v38  ;;  %v9151_v37 = vld [vmem:[%s9559_s10 + $0xf8] sm:$0xff]   ;;  %v9153_v38 = vld [vmem:[%s9942_s6] sm:$0xff]   ;;  %p190_p3 = scmp.lt.s32.totalorder %s7048_s7, 127 }
 0x1c5   : > { %8748 = vmatprep.mubr.msk.bf16.mxu0 %vm516_vm1, %v9149_v29  ;;  %v10238_v47 = vadd.f32 %v3309_v10, %v2808_v62  ;;  %v2813_v39 = vadd.f32 %v8510_v45, %v9900_v19  ;;  %8680 = vmatprep.mubr.msk.bf16.mxu1 %vm516_vm1, %v9148_v50  ;;  %v9152_v62 = vld [vmem:[%s9931_s23] sm:$0xff]  }
 0x1c6   : > { %v3322_v22 = vpop.f32.mrf.mxu0  ;;  %v2628_v1 = vpop.f32.mrf.mxu1  ;;  %s11201_s7 = smov (!%p190_p3, %s7048_s7), 127 }
 0x1c7   : > { %v10242_v14 = vadd.f32 %v8578_v51, %v2813_v39  ;;  %v2811_v32 = vadd.f32 %v2628_v1, %v9906_v57  ;;  %s7049_s16 = sshll.u32 %s11201_s7, 2 }
 0x1c8   : > { %v8579_v26 = vpop.f32.mrf.mxu0  ;;  %v8511_v59 = vpop.f32.mrf.mxu1  ;;  %s10690_s17 = scalar_lea.vmem %s11048_s3, %s7049_s16  ;;  %s10717_s14 = scalar_lea.vmem %s11049_s4, %s7049_s16 }
 0x1c9   : > { %v10248_v54 = vadd.f32 %v3322_v22, %v2811_v32  ;;  %v2814_v29 = vadd.f32 %v8511_v59, %v9910_v6 }
 0x1ca   : > { %v3325_v10 = vpop.f32.mrf.mxu0  ;;  %v2631_v19 = vpop.f32.mrf.mxu1 }
 0x1cb   : > { %v10252_v45 = vadd.f32 %v8579_v26, %v2814_v29  ;;  %v2812_v50 = vadd.f32 %v2631_v19, %v9916_v46  ;;  %v9154_v29 = vld [vmem:[%s9931_s23 + $0x8] sm:$0xff]  }
 0x1cc   : > { %v8582_v51 = vpop.f32.mrf.mxu0  ;;  %8749 = vmatmul.mubr.msk.bf16.gmra.mxu0 %vm516_vm1, %v9151_v37  ;;  %v8514_v57 = vpop.f32.mrf.mxu1  ;;  %8681 = vmatmul.mubr.msk.bf16.gmra.mxu1 %vm516_vm1, %v9150_v17  ;;  %v9155_v37 = vld [vmem:[%s9942_s6 + $0x8] sm:$0xff]   ;;  %v9157_v17 = vld [vmem:[%s9942_s6 + $0x10] sm:$0xff]  }
 0x1cd   : > { %8824 = vmatprep.mubr.msk.bf16.mxu0 %vm516_vm1, %v9153_v38  ;;  %v10258_v6 = vadd.f32 %v3325_v10, %v2812_v50  ;;  %v2817_v39 = vadd.f32 %v8514_v57, %v9922_v53  ;;  %8756 = vmatprep.mubr.msk.bf16.mxu1 %vm516_vm1, %v9152_v62  ;;  %v9156_v50 = vld [vmem:[%s9931_s23 + $0x10] sm:$0xff]  }
 0x1ce   : > { %v3338_v22 = vpop.f32.mrf.mxu0  ;;  %v2644_v1 = vpop.f32.mrf.mxu1 }
 0x1cf   : > { %v10262_v46 = vadd.f32 %v8582_v51, %v2817_v39  ;;  %v2815_v32 = vadd.f32 %v2644_v1, %v9933_v44 }
 0x1d0   : > { %v8583_v26 = vpop.f32.mrf.mxu0  ;;  %v8515_v59 = vpop.f32.mrf.mxu1 }
 0x1d1   : > { %v10268_v19 = vadd.f32 %v3338_v22, %v2815_v32  ;;  %v2818_v38 = vadd.f32 %v8515_v59, %v9949_v31 }
 0x1d2   : > { %v3341_v10 = vpop.f32.mrf.mxu0  ;;  %v2647_v53 = vpop.f32.mrf.mxu1 }
 0x1d3   : > { %v10272_v57 = vadd.f32 %v8583_v26, %v2818_v38  ;;  %v2816_v62 = vadd.f32 %v2647_v53, %v9957_v3  ;;  %v9158_v38 = vld [vmem:[%s9931_s23 + $0x18] sm:$0xff]  }
 0x1d4   : > { %v8586_v51 = vpop.f32.mrf.mxu0  ;;  %8825 = vmatmul.mubr.msk.bf16.vlgmr.msra.gmra.mxu0 %vm516_vm1, %v9155_v37  ;;  %v8518_v44 = vpop.f32.mrf.mxu1  ;;  %8757 = vmatmul.mubr.msk.bf16.vlgmr.msra.gmra.mxu1 %vm516_vm1, %v9154_v29  ;;  %v9159_v37 = vld [vmem:[%s9942_s6 + $0x18] sm:$0xff]   ;;  %v9161_v29 = vld [vmem:[%s9942_s6 + $0x20] sm:$0xff]  }
 0x1d5   : > { %8828 = vmatprep.mubr.msk.bf16.mxu0 %vm516_vm1, %v9157_v17  ;;  %v10278_v31 = vadd.f32 %v3341_v10, %v2816_v62  ;;  %v2821_v39 = vadd.f32 %v8518_v44, %v9965_v15  ;;  %8760 = vmatprep.mubr.msk.bf16.mxu1 %vm516_vm1, %v9156_v50  ;;  %v9160_v62 = vld [vmem:[%s9931_s23 + $0x20] sm:$0xff]  }
 0x1d6   : > { %v3354_v22 = vpop.f32.mrf.mxu0  ;;  %v2660_v1 = vpop.f32.mrf.mxu1 }
 0x1d7   : > { %v10282_v3 = vadd.f32 %v8586_v51, %v2821_v39  ;;  %v2819_v32 = vadd.f32 %v2660_v1, %v9968_v60 }
 0x1d8   : > { %v8587_v26 = vpop.f32.mrf.mxu0  ;;  %v8519_v59 = vpop.f32.mrf.mxu1 }
 0x1d9   : > { %v10288_v53 = vadd.f32 %v3354_v22, %v2819_v32  ;;  %v2822_v17 = vadd.f32 %v8519_v59, %v9972_v7 }
 0x1da   : > { %v3357_v10 = vpop.f32.mrf.mxu0  ;;  %v2663_v15 = vpop.f32.mrf.mxu1 }
 0x1db   : > { %v10292_v44 = vadd.f32 %v8587_v26, %v2822_v17  ;;  %v2820_v50 = vadd.f32 %v2663_v15, %v9978_v4  ;;  %v9162_v17 = vld [vmem:[%s9931_s23 + $0x28] sm:$0xff]  }
 0x1dc   : > { %v8590_v51 = vpop.f32.mrf.mxu0  ;;  %8829 = vmatmul.mubr.msk.bf16.gmra.mxu0 %vm516_vm1, %v9159_v37  ;;  %v8522_v60 = vpop.f32.mrf.mxu1  ;;  %8761 = vmatmul.mubr.msk.bf16.gmra.mxu1 %vm516_vm1, %v9158_v38  ;;  %v9163_v37 = vld [vmem:[%s9942_s6 + $0x28] sm:$0xff]   ;;  %v9165_v38 = vld [vmem:[%s9942_s6 + $0x30] sm:$0xff]  }
 0x1dd   : > { %8832 = vmatprep.mubr.msk.bf16.mxu0 %vm516_vm1, %v9161_v29  ;;  %v10298_v7 = vadd.f32 %v3357_v10, %v2820_v50  ;;  %v2825_v39 = vadd.f32 %v8522_v60, %v9985_v12  ;;  %8764 = vmatprep.mubr.msk.bf16.mxu1 %vm516_vm1, %v9160_v62  ;;  %v9164_v50 = vld [vmem:[%s9931_s23 + $0x30] sm:$0xff]  }
 0x1de   : > { %v3370_v22 = vpop.f32.mrf.mxu0  ;;  %v2676_v1 = vpop.f32.mrf.mxu1 }
 0x1df   : > { %v10302_v4 = vadd.f32 %v8590_v51, %v2825_v39  ;;  %v2823_v32 = vadd.f32 %v2676_v1, %v9988_v48 }
 0x1e0   : > { %v8591_v26 = vpop.f32.mrf.mxu0  ;;  %v8523_v59 = vpop.f32.mrf.mxu1 }
 0x1e1   : > { %v10308_v15 = vadd.f32 %v3370_v22, %v2823_v32  ;;  %v2826_v29 = vadd.f32 %v8523_v59, %v9992_v24 }
 0x1e2   : > { %v3373_v10 = vpop.f32.mrf.mxu0  ;;  %v2679_v12 = vpop.f32.mrf.mxu1 }
 0x1e3   : > { %v10312_v60 = vadd.f32 %v8591_v26, %v2826_v29  ;;  %v2824_v62 = vadd.f32 %v2679_v12, %v9998_v63  ;;  %v9166_v29 = vld [vmem:[%s9931_s23 + $0x38] sm:$0xff]  }
 0x1e4   : > { %v8594_v51 = vpop.f32.mrf.mxu0  ;;  %8833 = vmatmul.mubr.msk.bf16.gmra.mxu0 %vm516_vm1, %v9163_v37  ;;  %v8526_v48 = vpop.f32.mrf.mxu1  ;;  %8765 = vmatmul.mubr.msk.bf16.gmra.mxu1 %vm516_vm1, %v9162_v17  ;;  %v9167_v37 = vld [vmem:[%s9942_s6 + $0x38] sm:$0xff]   ;;  %v9169_v17 = vld [vmem:[%s9942_s6 + $0x40] sm:$0xff]  }
 0x1e5   : > { %8836 = vmatprep.mubr.msk.bf16.mxu0 %vm516_vm1, %v9165_v38  ;;  %v10318_v24 = vadd.f32 %v3373_v10, %v2824_v62  ;;  %v2829_v39 = vadd.f32 %v8526_v48, %v10005_v43  ;;  %8768 = vmatprep.mubr.msk.bf16.mxu1 %vm516_vm1, %v9164_v50  ;;  %v11108_v38 = vld [vmem:[#allocation21_spill] sm:$0xff]  ;;  %v11110_v50 = vld [vmem:[#allocation22_spill] sm:$0xff] }
 0x1e6   : > { %v3386_v22 = vpop.f32.mrf.mxu0  ;;  %v2692_v1 = vpop.f32.mrf.mxu1 }
 0x1e7   : > { %11105 = vst [vmem:[#allocation16_spill] sm:$0xff] %v10318_v24  ;;  %v10322_v63 = vadd.f32 %v8594_v51, %v2829_v39  ;;  %v2827_v32 = vadd.f32 %v2692_v1, %v10008_v49  ;;  %v9168_v24 = vld [vmem:[%s9931_s23 + $0x40] sm:$0xff]   ;;  %v11112_v1 = vld [vmem:[#allocation23_spill] sm:$0xff] }
 0x1e8   : > { %v8595_v26 = vpop.f32.mrf.mxu0  ;;  %v8527_v59 = vpop.f32.mrf.mxu1 }
 0x1e9   : > { %11106 = vst [vmem:[#allocation17_spill] sm:$0xff] %v10322_v63  ;;  %v10328_v12 = vadd.f32 %v3386_v22, %v2827_v32  ;;  %v2830_v10 = vadd.f32 %v8527_v59, %v11108_v38 }
 0x1ea   : > { %v3389_v62 = vpop.f32.mrf.mxu0  ;;  %v2695_v43 = vpop.f32.mrf.mxu1 }
 0x1eb   : > { %11107 = vst [vmem:[#allocation18_spill] sm:$0xff] %v10328_v12  ;;  %v10332_v48 = vadd.f32 %v8595_v26, %v2830_v10  ;;  %v2828_v51 = vadd.f32 %v2695_v43, %v11110_v50  ;;  %v11114_v10 = vld [vmem:[#allocation2_spill] sm:$0xff]  ;;  %v9170_v12 = vld [vmem:[%s9931_s23 + $0x48] sm:$0xff]  }
 0x1ec   : > { %v8598_v39 = vpop.f32.mrf.mxu0  ;;  %8837 = vmatmul.mubr.msk.bf16.gmra.mxu0 %vm516_vm1, %v9167_v37  ;;  %v8530_v49 = vpop.f32.mrf.mxu1  ;;  %8769 = vmatmul.mubr.msk.bf16.gmra.mxu1 %vm516_vm1, %v9166_v29  ;;  %v9171_v37 = vld [vmem:[%s9942_s6 + $0x48] sm:$0xff]   ;;  %v9173_v29 = vld [vmem:[%s9942_s6 + $0x50] sm:$0xff]  }
 0x1ed   : > { %11109 = vst [vmem:[#allocation19_spill] sm:$0xff] %v10332_v48  ;;  %8840 = vmatprep.mubr.msk.bf16.mxu0 %vm516_vm1, %v9169_v17  ;;  %v10338_v22 = vadd.f32 %v3389_v62, %v2828_v51  ;;  %v2833_v32 = vadd.f32 %v8530_v49, %v11112_v1  ;;  %8772 = vmatprep.mubr.msk.bf16.mxu1 %vm516_vm1, %v9168_v24  ;;  %v11116_v17 = vld [vmem:[#allocation3_spill] sm:$0xff]  ;;  %v11118_v24 = vld [vmem:[#allocation4_spill] sm:$0xff] }
 0x1ee   : > { %v3402_v59 = vpop.f32.mrf.mxu0  ;;  %v2708_v26 = vpop.f32.mrf.mxu1 }
 0x1ef   : > { %11111 = vst [vmem:[#allocation20_spill] sm:$0xff] %v10338_v22  ;;  %v10342_v38 = vadd.f32 %v8598_v39, %v2833_v32  ;;  %v2831_v43 = vadd.f32 %v2708_v26, %v11114_v10  ;;  %v9172_v22 = vld [vmem:[%s9931_s23 + $0x50] sm:$0xff]  }
 0x1f0   : > { %v8599_v50 = vpop.f32.mrf.mxu0  ;;  %v8531_v48 = vpop.f32.mrf.mxu1 }
 0x1f1   : > { %11113 = vst [vmem:[#allocation21_spill] sm:$0xff] %v10342_v38  ;;  %v10348_v63 = vadd.f32 %v3402_v59, %v2831_v43  ;;  %v2834_v62 = vadd.f32 %v8531_v48, %v11116_v17  ;;  %v11120_v59 = vld [vmem:[#allocation5_spill] sm:$0xff] }
 0x1f2   : > { %v3405_v51 = vpop.f32.mrf.mxu0  ;;  %v2711_v49 = vpop.f32.mrf.mxu1 }
 0x1f3   : > { %11115 = vst [vmem:[#allocation22_spill] sm:$0xff] %v10348_v63  ;;  %v10352_v1 = vadd.f32 %v8599_v50, %v2834_v62  ;;  %v2832_v39 = vadd.f32 %v2711_v49, %v11118_v24  ;;  %v11121_v62 = vld [vmem:[#allocation6_spill] sm:$0xff]  ;;  %v9174_v63 = vld [vmem:[%s9931_s23 + $0x58] sm:$0xff]  }
 0x1f4   : > { %v8602_v32 = vpop.f32.mrf.mxu0  ;;  %8841 = vmatmul.mubr.msk.bf16.gmra.mxu0 %vm516_vm1, %v9171_v37  ;;  %v8534_v26 = vpop.f32.mrf.mxu1  ;;  %8773 = vmatmul.mubr.msk.bf16.gmra.mxu1 %vm516_vm1, %v9170_v12  ;;  %v9175_v37 = vld [vmem:[%s9942_s6 + $0x58] sm:$0xff]   ;;  %v9177_v12 = vld [vmem:[%s9942_s6 + $0x60] sm:$0xff]  }
 0x1f5   : > { %11117 = vst [vmem:[#allocation23_spill] sm:$0xff] %v10352_v1  ;;  %8844 = vmatprep.mubr.msk.bf16.mxu0 %vm516_vm1, %v9173_v29  ;;  %v10358_v48 = vadd.f32 %v3405_v51, %v2832_v39  ;;  %v2837_v10 = vadd.f32 %v8534_v26, %v11120_v59  ;;  %8776 = vmatprep.mubr.msk.bf16.mxu1 %vm516_vm1, %v9172_v22  ;;  %v11122_v29 = vld [vmem:[#allocation7_spill] sm:$0xff]  ;;  %v11124_v22 = vld [vmem:[#allocation8_spill] sm:$0xff] }
 0x1f6   : > { %v3418_v43 = vpop.f32.mrf.mxu0  ;;  %v2724_v50 = vpop.f32.mrf.mxu1 }
 0x1f7   : > { %11119 = vst [vmem:[#allocation2_spill] sm:$0xff] %v10358_v48  ;;  %v10362_v17 = vadd.f32 %v8602_v32, %v2837_v10  ;;  %v2835_v49 = vadd.f32 %v2724_v50, %v11121_v62  ;;  %v9176_v48 = vld [vmem:[%s9931_s23 + $0x60] sm:$0xff]  }
 0x1f8   : > { %v8603_v24 = vpop.f32.mrf.mxu0  ;;  %v8535_v1 = vpop.f32.mrf.mxu1 }
 0x1f9   : > { %v10368_v38 = vadd.f32 %v3418_v43, %v2835_v49  ;;  %v2838_v51 = vadd.f32 %v8535_v1, %v11122_v29 }
 0x1fa   : > { %v3421_v39 = vpop.f32.mrf.mxu0  ;;  %v2727_v26 = vpop.f32.mrf.mxu1 }
 0x1fb   : > { %v10372_v59 = vadd.f32 %v8603_v24, %v2838_v51  ;;  %v2836_v32 = vadd.f32 %v2727_v26, %v11124_v22  ;;  %v9178_v22 = vld [vmem:[%s9931_s23 + $0x68] sm:$0xff]  }
 0x1fc   : > { %v8606_v10 = vpop.f32.mrf.mxu0  ;;  %8845 = vmatmul.mubr.msk.bf16.gmra.mxu0 %vm516_vm1, %v9175_v37  ;;  %v8538_v50 = vpop.f32.mrf.mxu1  ;;  %8777 = vmatmul.mubr.msk.bf16.gmra.mxu1 %vm516_vm1, %v9174_v63  ;;  %v9179_v37 = vld [vmem:[%s9942_s6 + $0x68] sm:$0xff]   ;;  %v9181_v63 = vld [vmem:[%s9942_s6 + $0x70] sm:$0xff]  }
 0x1fd   : > { %11123 = vst [vmem:[#allocation3_spill] sm:$0xff] %v10372_v59  ;;  %8848 = vmatprep.mubr.msk.bf16.mxu0 %vm516_vm1, %v9177_v12  ;;  %v10378_v1 = vadd.f32 %v3421_v39, %v2836_v32  ;;  %v2841_v43 = vadd.f32 %v8538_v50, %v10065_v36  ;;  %8780 = vmatprep.mubr.msk.bf16.mxu1 %vm516_vm1, %v9176_v48  ;;  %v11128_v12 = vld [vmem:[#allocation9_spill] sm:$0xff]  ;;  %v11130_v48 = vld [vmem:[#allocation10_spill] sm:$0xff] }
 0x1fe   : > { %v3434_v62 = vpop.f32.mrf.mxu0  ;;  %v2740_v49 = vpop.f32.mrf.mxu1 }
 0x1ff   : > { %11125 = vst [vmem:[#allocation4_spill] sm:$0xff] %v10378_v1  ;;  %v10382_v24 = vadd.f32 %v8606_v10, %v2841_v43  ;;  %v2839_v29 = vadd.f32 %v2740_v49, %v10068_v8  ;;  %v9180_v1 = vld [vmem:[%s9931_s23 + $0x70] sm:$0xff]   ;;  %v11132_v49 = vld [vmem:[#allocation11_spill] sm:$0xff] }
 0x200   : > { %v8607_v51 = vpop.f32.mrf.mxu0  ;;  %v8539_v26 = vpop.f32.mrf.mxu1 }
 0x201   : > { %11126 = vst [vmem:[#allocation5_spill] sm:$0xff] %v10382_v24  ;;  %v10388_v59 = vadd.f32 %v3434_v62, %v2839_v29  ;;  %v2842_v39 = vadd.f32 %v8539_v26, %v11128_v12 }
 0x202   : > { %v3437_v32 = vpop.f32.mrf.mxu0  ;;  %v2743_v36 = vpop.f32.mrf.mxu1 }
 0x203   : > { %11127 = vst [vmem:[#allocation6_spill] sm:$0xff] %v10388_v59  ;;  %v10392_v50 = vadd.f32 %v8607_v51, %v2842_v39  ;;  %v2840_v10 = vadd.f32 %v2743_v36, %v11130_v48  ;;  %v11133_v39 = vld [vmem:[#allocation12_spill] sm:$0xff]  ;;  %v9182_v59 = vld [vmem:[%s9931_s23 + $0x78] sm:$0xff]  }
 0x204   : > { %v8610_v43 = vpop.f32.mrf.mxu0  ;;  %8849 = vmatmul.mubr.msk.bf16.gmra.mxu0 %vm516_vm1, %v9179_v37  ;;  %v8542_v8 = vpop.f32.mrf.mxu1  ;;  %8781 = vmatmul.mubr.msk.bf16.gmra.mxu1 %vm516_vm1, %v9178_v22  ;;  %v9183_v37 = vld [vmem:[%s9942_s6 + $0x78] sm:$0xff]   ;;  %v9185_v22 = vld [vmem:[%s9942_s6 + $0x80] sm:$0xff]  }
 0x205   : > { %11129 = vst [vmem:[#allocation7_spill] sm:$0xff] %v10392_v50  ;;  %8852 = vmatprep.mubr.msk.bf16.mxu0 %vm516_vm1, %v9181_v63  ;;  %v10398_v62 = vadd.f32 %v3437_v32, %v2840_v10  ;;  %v2845_v29 = vadd.f32 %v8542_v8, %v11132_v49  ;;  %8784 = vmatprep.mubr.msk.bf16.mxu1 %vm516_vm1, %v9180_v1  ;;  %v11134_v63 = vld [vmem:[#allocation13_spill] sm:$0xff]  ;;  %v11136_v1 = vld [vmem:[#allocation14_spill] sm:$0xff] }
 0x206   : > { %v3450_v26 = vpop.f32.mrf.mxu0  ;;  %v2756_v51 = vpop.f32.mrf.mxu1 }
 0x207   : > { %11131 = vst [vmem:[#allocation8_spill] sm:$0xff] %v10398_v62  ;;  %v10402_v12 = vadd.f32 %v8610_v43, %v2845_v29  ;;  %v2843_v36 = vadd.f32 %v2756_v51, %v11133_v39  ;;  %v9184_v62 = vld [vmem:[%s9931_s23 + $0x80] sm:$0xff]  }
 0x208   : > { %v8611_v48 = vpop.f32.mrf.mxu0  ;;  %v8543_v50 = vpop.f32.mrf.mxu1 }
 0x209   : > { %v10408_v24 = vadd.f32 %v3450_v26, %v2843_v36  ;;  %v2846_v32 = vadd.f32 %v8543_v50, %v11134_v63 }
 0x20a   : > { %v3453_v10 = vpop.f32.mrf.mxu0  ;;  %v2759_v8 = vpop.f32.mrf.mxu1 }
 0x20b   : > { %v10412_v49 = vadd.f32 %v8611_v48, %v2846_v32  ;;  %v2844_v43 = vadd.f32 %v2759_v8, %v11136_v1  ;;  %v9186_v1 = vld [vmem:[%s9931_s23 + $0x88] sm:$0xff]  }
 0x20c   : > { %v8614_v29 = vpop.f32.mrf.mxu0  ;;  %8853 = vmatmul.mubr.msk.bf16.gmra.mxu0 %vm516_vm1, %v9183_v37  ;;  %v8546_v51 = vpop.f32.mrf.mxu1  ;;  %8785 = vmatmul.mubr.msk.bf16.gmra.mxu1 %vm516_vm1, %v9182_v59  ;;  %v9187_v37 = vld [vmem:[%s9942_s6 + $0x88] sm:$0xff]   ;;  %v9189_v59 = vld [vmem:[%s9942_s6 + $0x90] sm:$0xff]  }
 0x20d   : > { %11135 = vst [vmem:[#allocation9_spill] sm:$0xff] %v10412_v49  ;;  %8856 = vmatprep.mubr.msk.bf16.mxu0 %vm516_vm1, %v9185_v22  ;;  %v10418_v50 = vadd.f32 %v3453_v10, %v2844_v43  ;;  %v2849_v26 = vadd.f32 %v8546_v51, %v10102_v13  ;;  %8788 = vmatprep.mubr.msk.bf16.mxu1 %vm516_vm1, %v9184_v62  ;;  %v11138_v22 = vld [vmem:[#allocation15_spill] sm:$0xff] }
 0x20e   : > { %v3466_v39 = vpop.f32.mrf.mxu0  ;;  %v2772_v36 = vpop.f32.mrf.mxu1 }
 0x20f   : > { %11137 = vst [vmem:[#allocation10_spill] sm:$0xff] %v10418_v50  ;;  %v10422_v48 = vadd.f32 %v8614_v29, %v2849_v26  ;;  %v2847_v63 = vadd.f32 %v2772_v36, %v10108_v34  ;;  %v9188_v50 = vld [vmem:[%s9931_s23 + $0x90] sm:$0xff]  }
 0x210   : > { %v8615_v32 = vpop.f32.mrf.mxu0  ;;  %v8547_v8 = vpop.f32.mrf.mxu1 }
 0x211   : > { %v10428_v49 = vadd.f32 %v3466_v39, %v2847_v63  ;;  %v2850_v10 = vadd.f32 %v8547_v8, %v11138_v22 }
 0x212   : > { %v3469_v43 = vpop.f32.mrf.mxu0  ;;  %v2775_v13 = vpop.f32.mrf.mxu1 }
 0x213   : > { %v10432_v51 = vadd.f32 %v8615_v32, %v2850_v10  ;;  %v2848_v62 = vadd.f32 %v2775_v13, %v10118_v25  ;;  %v9190_v10 = vld [vmem:[%s9931_s23 + $0x98] sm:$0xff]  }
 0x214   : > { %v8690_v29 = vpop.f32.mrf.mxu0  ;;  %8857 = vmatmul.mubr.msk.bf16.gmra.mxu0 %vm516_vm1, %v9187_v37  ;;  %v8622_v34 = vpop.f32.mrf.mxu1  ;;  %8789 = vmatmul.mubr.msk.bf16.gmra.mxu1 %vm516_vm1, %v9186_v1  ;;  %v9191_v37 = vld [vmem:[%s9942_s6 + $0x98] sm:$0xff]   ;;  %v9193_v1 = vld [vmem:[%s9942_s6 + $0xa0] sm:$0xff]  }
 0x215   : > { %8860 = vmatprep.mubr.msk.bf16.mxu0 %vm516_vm1, %v9189_v59  ;;  %v10438_v26 = vadd.f32 %v3469_v43, %v2848_v62  ;;  %v4177_v39 = vadd.f32 %v8622_v34, %v10122_v27  ;;  %8792 = vmatprep.mubr.msk.bf16.mxu1 %vm516_vm1, %v9188_v50  ;;  %v9192_v62 = vld [vmem:[%s9931_s23 + $0xa0] sm:$0xff]  }
 0x216   : > { %v4614_v36 = vpop.f32.mrf.mxu0  ;;  %v3920_v63 = vpop.f32.mrf.mxu1 }
 0x217   : > { %v10442_v25 = vadd.f32 %v8690_v29, %v4177_v39  ;;  %v4175_v32 = vadd.f32 %v3920_v63, %v10128_v20 }
 0x218   : > { %v8691_v8 = vpop.f32.mrf.mxu0  ;;  %v8623_v22 = vpop.f32.mrf.mxu1 }
 0x219   : > { %v10448_v13 = vadd.f32 %v4614_v36, %v4175_v32  ;;  %v4178_v59 = vadd.f32 %v8623_v22, %v10132_v55 }
 0x21a   : > { %v4617_v43 = vpop.f32.mrf.mxu0  ;;  %v3923_v27 = vpop.f32.mrf.mxu1 }
 0x21b   : > { %v10452_v34 = vadd.f32 %v8691_v8, %v4178_v59  ;;  %v4176_v50 = vadd.f32 %v3923_v27, %v10138_v0  ;;  %v9194_v59 = vld [vmem:[%s9931_s23 + $0xa8] sm:$0xff]  }
 0x21c   : > { %v8694_v29 = vpop.f32.mrf.mxu0  ;;  %8861 = vmatmul.mubr.msk.bf16.gmra.mxu0 %vm516_vm1, %v9191_v37  ;;  %v8626_v20 = vpop.f32.mrf.mxu1  ;;  %8793 = vmatmul.mubr.msk.bf16.gmra.mxu1 %vm516_vm1, %v9190_v10  ;;  %v9195_v37 = vld [vmem:[%s9942_s6 + $0xa8] sm:$0xff]   ;;  %v9197_v10 = vld [vmem:[%s9942_s6 + $0xb0] sm:$0xff]  }
 0x21d   : > { %8864 = vmatprep.mubr.msk.bf16.mxu0 %vm516_vm1, %v9193_v1  ;;  %v10458_v55 = vadd.f32 %v4617_v43, %v4176_v50  ;;  %v4181_v39 = vadd.f32 %v8626_v20, %v10142_v2  ;;  %8796 = vmatprep.mubr.msk.bf16.mxu1 %vm516_vm1, %v9192_v62  ;;  %v9196_v50 = vld [vmem:[%s9931_s23 + $0xb0] sm:$0xff]  }
 0x21e   : > { %v4630_v36 = vpop.f32.mrf.mxu0  ;;  %v3936_v63 = vpop.f32.mrf.mxu1 }
 0x21f   : > { %v10462_v0 = vadd.f32 %v8694_v29, %v4181_v39  ;;  %v4179_v32 = vadd.f32 %v3936_v63, %v10148_v56 }
 0x220   : > { %v8695_v8 = vpop.f32.mrf.mxu0  ;;  %v8627_v22 = vpop.f32.mrf.mxu1 }
 0x221   : > { %v10468_v27 = vadd.f32 %v4630_v36, %v4179_v32  ;;  %v4182_v1 = vadd.f32 %v8627_v22, %v10152_v41 }
 0x222   : > { %v4633_v43 = vpop.f32.mrf.mxu0  ;;  %v3939_v2 = vpop.f32.mrf.mxu1 }
 0x223   : > { %v10472_v20 = vadd.f32 %v8695_v8, %v4182_v1  ;;  %v4180_v62 = vadd.f32 %v3939_v2, %v10158_v61  ;;  %v9198_v1 = vld [vmem:[%s9931_s23 + $0xb8] sm:$0xff]  }
 0x224   : > { %v8698_v29 = vpop.f32.mrf.mxu0  ;;  %8865 = vmatmul.mubr.msk.bf16.gmra.mxu0 %vm516_vm1, %v9195_v37  ;;  %v8630_v56 = vpop.f32.mrf.mxu1  ;;  %8797 = vmatmul.mubr.msk.bf16.gmra.mxu1 %vm516_vm1, %v9194_v59  ;;  %v9199_v37 = vld [vmem:[%s9942_s6 + $0xb8] sm:$0xff]   ;;  %v9201_v59 = vld [vmem:[%s9942_s6 + $0xc0] sm:$0xff]  }
 0x225   : > { %8868 = vmatprep.mubr.msk.bf16.mxu0 %vm516_vm1, %v9197_v10  ;;  %v10478_v41 = vadd.f32 %v4633_v43, %v4180_v62  ;;  %v4185_v39 = vadd.f32 %v8630_v56, %v10162_v16  ;;  %8800 = vmatprep.mubr.msk.bf16.mxu1 %vm516_vm1, %v9196_v50  ;;  %v9200_v62 = vld [vmem:[%s9931_s23 + $0xc0] sm:$0xff]  }
 0x226   : > { %v4646_v36 = vpop.f32.mrf.mxu0  ;;  %v3952_v63 = vpop.f32.mrf.mxu1 }
 0x227   : > { %v10482_v61 = vadd.f32 %v8698_v29, %v4185_v39  ;;  %v4183_v32 = vadd.f32 %v3952_v63, %v10168_v5 }
 0x228   : > { %v8699_v8 = vpop.f32.mrf.mxu0  ;;  %v8631_v22 = vpop.f32.mrf.mxu1 }
 0x229   : > { %v10488_v2 = vadd.f32 %v4646_v36, %v4183_v32  ;;  %v4186_v10 = vadd.f32 %v8631_v22, %v10172_v58 }
 0x22a   : > { %v4649_v43 = vpop.f32.mrf.mxu0  ;;  %v3955_v16 = vpop.f32.mrf.mxu1 }
 0x22b   : > { %v10492_v56 = vadd.f32 %v8699_v8, %v4186_v10  ;;  %v4184_v50 = vadd.f32 %v3955_v16, %v10178_v11  ;;  %v9202_v10 = vld [vmem:[%s9931_s23 + $0xc8] sm:$0xff]  }
 0x22c   : > { %v8702_v29 = vpop.f32.mrf.mxu0  ;;  %8869 = vmatmul.mubr.msk.bf16.gmra.mxu0 %vm516_vm1, %v9199_v37  ;;  %v8634_v5 = vpop.f32.mrf.mxu1  ;;  %8801 = vmatmul.mubr.msk.bf16.gmra.mxu1 %vm516_vm1, %v9198_v1  ;;  %v9203_v37 = vld [vmem:[%s9942_s6 + $0xc8] sm:$0xff]   ;;  %v9205_v1 = vld [vmem:[%s9942_s6 + $0xd0] sm:$0xff]  }
 0x22d   : > { %8872 = vmatprep.mubr.msk.bf16.mxu0 %vm516_vm1, %v9201_v59  ;;  %v10498_v58 = vadd.f32 %v4649_v43, %v4184_v50  ;;  %v4189_v39 = vadd.f32 %v8634_v5, %v10182_v28  ;;  %8804 = vmatprep.mubr.msk.bf16.mxu1 %vm516_vm1, %v9200_v62  ;;  %v9204_v50 = vld [vmem:[%s9931_s23 + $0xd0] sm:$0xff]  }
 0x22e   : > { %v4662_v36 = vpop.f32.mrf.mxu0  ;;  %v3968_v63 = vpop.f32.mrf.mxu1 }
 0x22f   : > { %v10502_v11 = vadd.f32 %v8702_v29, %v4189_v39  ;;  %v4187_v32 = vadd.f32 %v3968_v63, %v10188_v18 }
 0x230   : > { %v8703_v8 = vpop.f32.mrf.mxu0  ;;  %v8635_v22 = vpop.f32.mrf.mxu1 }
 0x231   : > { %v10508_v16 = vadd.f32 %v4662_v36, %v4187_v32  ;;  %v4190_v59 = vadd.f32 %v8635_v22, %v10192_v9 }
 0x232   : > { %v4665_v43 = vpop.f32.mrf.mxu0  ;;  %v3971_v28 = vpop.f32.mrf.mxu1 }
 0x233   : > { %v10512_v5 = vadd.f32 %v8703_v8, %v4190_v59  ;;  %v4188_v62 = vadd.f32 %v3971_v28, %v10198_v23  ;;  %v9206_v59 = vld [vmem:[%s9931_s23 + $0xd8] sm:$0xff]  }
 0x234   : > { %v8706_v29 = vpop.f32.mrf.mxu0  ;;  %8873 = vmatmul.mubr.msk.bf16.gmra.mxu0 %vm516_vm1, %v9203_v37  ;;  %v8638_v18 = vpop.f32.mrf.mxu1  ;;  %8805 = vmatmul.mubr.msk.bf16.gmra.mxu1 %vm516_vm1, %v9202_v10  ;;  %v9207_v37 = vld [vmem:[%s9942_s6 + $0xd8] sm:$0xff]   ;;  %v9209_v10 = vld [vmem:[%s9942_s6 + $0xe0] sm:$0xff]  }
 0x235   : > { %8876 = vmatprep.mubr.msk.bf16.mxu0 %vm516_vm1, %v9205_v1  ;;  %v10518_v9 = vadd.f32 %v4665_v43, %v4188_v62  ;;  %v4193_v39 = vadd.f32 %v8638_v18, %v10202_v40  ;;  %8808 = vmatprep.mubr.msk.bf16.mxu1 %vm516_vm1, %v9204_v50  ;;  %v9208_v62 = vld [vmem:[%s9931_s23 + $0xe0] sm:$0xff]  }
 0x236   : > { %v4678_v36 = vpop.f32.mrf.mxu0  ;;  %v3984_v63 = vpop.f32.mrf.mxu1 }
 0x237   : > { %v10522_v23 = vadd.f32 %v8706_v29, %v4193_v39  ;;  %v4191_v32 = vadd.f32 %v3984_v63, %v10208_v30 }
 0x238   : > { %v8707_v8 = vpop.f32.mrf.mxu0  ;;  %v8639_v22 = vpop.f32.mrf.mxu1 }
 0x239   : > { %v10528_v28 = vadd.f32 %v4678_v36, %v4191_v32  ;;  %v4194_v1 = vadd.f32 %v8639_v22, %v10212_v21 }
 0x23a   : > { %v4681_v43 = vpop.f32.mrf.mxu0  ;;  %v3987_v40 = vpop.f32.mrf.mxu1 }
 0x23b   : > { %v10532_v18 = vadd.f32 %v8707_v8, %v4194_v1  ;;  %v4192_v50 = vadd.f32 %v3987_v40, %v10218_v35  ;;  %v9210_v1 = vld [vmem:[%s9931_s23 + $0xe8] sm:$0xff]  }
 0x23c   : > { %v8710_v29 = vpop.f32.mrf.mxu0  ;;  %8877 = vmatmul.mubr.msk.bf16.gmra.mxu0 %vm516_vm1, %v9207_v37  ;;  %v8642_v30 = vpop.f32.mrf.mxu1  ;;  %8809 = vmatmul.mubr.msk.bf16.gmra.mxu1 %vm516_vm1, %v9206_v59  ;;  %v9211_v37 = vld [vmem:[%s9942_s6 + $0xe8] sm:$0xff]   ;;  %v9213_v59 = vld [vmem:[%s9942_s6 + $0xf0] sm:$0xff]  }
 0x23d   : > { %8880 = vmatprep.mubr.msk.bf16.mxu0 %vm516_vm1, %v9209_v10  ;;  %v10538_v21 = vadd.f32 %v4681_v43, %v4192_v50  ;;  %v4197_v39 = vadd.f32 %v8642_v30, %v10222_v52  ;;  %8812 = vmatprep.mubr.msk.bf16.mxu1 %vm516_vm1, %v9208_v62  ;;  %v9212_v50 = vld [vmem:[%s9931_s23 + $0xf0] sm:$0xff]  }
 0x23e   : > { %v4694_v36 = vpop.f32.mrf.mxu0  ;;  %v4000_v63 = vpop.f32.mrf.mxu1 }
 0x23f   : > { %v10542_v35 = vadd.f32 %v8710_v29, %v4197_v39  ;;  %v4195_v32 = vadd.f32 %v4000_v63, %v10228_v42 }
 0x240   : > { %v8711_v8 = vpop.f32.mrf.mxu0  ;;  %v8643_v22 = vpop.f32.mrf.mxu1 }
 0x241   : > { %v10548_v40 = vadd.f32 %v4694_v36, %v4195_v32  ;;  %v4198_v10 = vadd.f32 %v8643_v22, %v10232_v33  ;;  %v9215_v22 = vld [vmem:[%s9942_s6 + $0xf8] sm:$0xff]  }
 0x242   : > { %v4697_v43 = vpop.f32.mrf.mxu0  ;;  %v4003_v52 = vpop.f32.mrf.mxu1 }
 0x243   : > { %v10552_v30 = vadd.f32 %v8711_v8, %v4198_v10  ;;  %v4196_v62 = vadd.f32 %v4003_v52, %v10238_v47  ;;  %v9214_v10 = vld [vmem:[%s9931_s23 + $0xf8] sm:$0xff]  }
 0x244   : > { %v8714_v29 = vpop.f32.mrf.mxu0  ;;  %8881 = vmatmul.mubr.msk.bf16.gmra.mxu0 %vm516_vm1, %v9211_v37  ;;  %v8646_v42 = vpop.f32.mrf.mxu1  ;;  %8813 = vmatmul.mubr.msk.bf16.gmra.mxu1 %vm516_vm1, %v9210_v1 }
 0x245   : > { %8884 = vmatprep.mubr.msk.bf16.mxu0 %vm516_vm1, %v9213_v59  ;;  %v10558_v39 = vadd.f32 %v4697_v43, %v4196_v62  ;;  %v4201_v33 = vadd.f32 %v8646_v42, %v10242_v14  ;;  %8816 = vmatprep.mubr.msk.bf16.mxu1 %vm516_vm1, %v9212_v50 }
 0x246   : > { %v4710_v36 = vpop.f32.mrf.mxu0  ;;  %v4016_v63 = vpop.f32.mrf.mxu1 }
 0x247   : > { %v10562_v32 = vadd.f32 %v8714_v29, %v4201_v33  ;;  %v4199_v47 = vadd.f32 %v4016_v63, %v10248_v54 }
 0x248   : > { %v8715_v8 = vpop.f32.mrf.mxu0  ;;  %v8647_v37 = vpop.f32.mrf.mxu1 }
 0x249   : > { %v10567_v52 = vadd.f32 %v4710_v36, %v4199_v47  ;;  %v4202_v1 = vadd.f32 %v8647_v37, %v10252_v45 }
 0x24a   : > { %v4713_v59 = vpop.f32.mrf.mxu0  ;;  %v4019_v43 = vpop.f32.mrf.mxu1 }
 0x24b   : > { %v10570_v62 = vadd.f32 %v8715_v8, %v4202_v1  ;;  %v4200_v14 = vadd.f32 %v4019_v43, %v10258_v6 }
 0x24c   : > { %v8718_v50 = vpop.f32.mrf.mxu0  ;;  %8885 = vmatmul.mubr.msk.bf16.gmra.mxu0 %vm516_vm1, %v9215_v22  ;;  %v8650_v29 = vpop.f32.mrf.mxu1  ;;  %8817 = vmatmul.mubr.msk.bf16.gmra.mxu1 %vm516_vm1, %v9214_v10 }
 0x24d   : > { %v10575_v54 = vadd.f32 %v4713_v59, %v4200_v14  ;;  %v4205_v42 = vadd.f32 %v8650_v29, %v10262_v46 }
 0x24e   : > { %v4726_v33 = vpop.f32.mrf.mxu0  ;;  %v4032_v36 = vpop.f32.mrf.mxu1 }
 0x24f   : > { %v10578_v63 = vadd.f32 %v8718_v50, %v4205_v42  ;;  %v4203_v45 = vadd.f32 %v4032_v36, %v10268_v19 }
 0x250   : > { %v8719_v47 = vpop.f32.mrf.mxu0  ;;  %v8651_v8 = vpop.f32.mrf.mxu1 }
 0x251   : > { %v10581_v37 = vadd.f32 %v4726_v33, %v4203_v45  ;;  %v4206_v6 = vadd.f32 %v8651_v8, %v10272_v57 }
 0x252   : > { %v4729_v22 = vpop.f32.mrf.mxu0  ;;  %v4035_v1 = vpop.f32.mrf.mxu1 }
 0x253   : > { %v10584_v43 = vadd.f32 %v8719_v47, %v4206_v6  ;;  %v4204_v10 = vadd.f32 %v4035_v1, %v10278_v31 }
 0x254   : > { %v8722_v59 = vpop.f32.mrf.mxu0  ;;  %v8654_v46 = vpop.f32.mrf.mxu1 }
 0x255   : > { %v10587_v14 = vadd.f32 %v4729_v22, %v4204_v10  ;;  %v4209_v50 = vadd.f32 %v8654_v46, %v10282_v3 }
 0x256   : > { %v4742_v29 = vpop.f32.mrf.mxu0  ;;  %v4048_v19 = vpop.f32.mrf.mxu1 }
 0x257   : > { %v10590_v42 = vadd.f32 %v8722_v59, %v4209_v50  ;;  %v4207_v33 = vadd.f32 %v4048_v19, %v10288_v53 }
 0x258   : > { %v8723_v36 = vpop.f32.mrf.mxu0  ;;  %v8655_v57 = vpop.f32.mrf.mxu1 }
 0x259   : > { %v10593_v45 = vadd.f32 %v4742_v29, %v4207_v33  ;;  %v4210_v47 = vadd.f32 %v8655_v57, %v10292_v44 }
 0x25a   : > { %v4745_v8 = vpop.f32.mrf.mxu0  ;;  %v4051_v31 = vpop.f32.mrf.mxu1 }
 0x25b   : > { %v10596_v6 = vadd.f32 %v8723_v36, %v4210_v47  ;;  %v4208_v22 = vadd.f32 %v4051_v31, %v10298_v7 }
 0x25c   : > { %v8726_v1 = vpop.f32.mrf.mxu0  ;;  %v8658_v3 = vpop.f32.mrf.mxu1 }
 0x25d   : > { %v10599_v10 = vadd.f32 %v4745_v8, %v4208_v22  ;;  %v4213_v59 = vadd.f32 %v8658_v3, %v10302_v4  ;;  %v11142_v8 = vld [vmem:[#allocation16_spill] sm:$0xff] }
 0x25e   : > { %v4758_v46 = vpop.f32.mrf.mxu0  ;;  %v4064_v53 = vpop.f32.mrf.mxu1 }
 0x25f   : > { %v10602_v50 = vadd.f32 %v8726_v1, %v4213_v59  ;;  %v4211_v29 = vadd.f32 %v4064_v53, %v10308_v15  ;;  %v11144_v1 = vld [vmem:[#allocation17_spill] sm:$0xff] }
 0x260   : > { %v8727_v19 = vpop.f32.mrf.mxu0  ;;  %v8659_v44 = vpop.f32.mrf.mxu1 }
 0x261   : > { %11139 = vst [vmem:[#allocation11_spill] sm:$0xff] %v10602_v50  ;;  %v10605_v33 = vadd.f32 %v4758_v46, %v4211_v29  ;;  %v4214_v36 = vadd.f32 %v8659_v44, %v10312_v60  ;;  %v11146_v46 = vld [vmem:[#allocation18_spill] sm:$0xff] }
 0x262   : > { %v4761_v57 = vpop.f32.mrf.mxu0  ;;  %v4067_v7 = vpop.f32.mrf.mxu1 }
 0x263   : > { %11140 = vst [vmem:[#allocation12_spill] sm:$0xff] %v10605_v33  ;;  %v10608_v47 = vadd.f32 %v8727_v19, %v4214_v36  ;;  %v4212_v31 = vadd.f32 %v4067_v7, %v11142_v8  ;;  %v11148_v19 = vld [vmem:[#allocation19_spill] sm:$0xff] }
 0x264   : > { %v8730_v22 = vpop.f32.mrf.mxu0  ;;  %v8662_v4 = vpop.f32.mrf.mxu1 }
 0x265   : > { %11141 = vst [vmem:[#allocation13_spill] sm:$0xff] %v10608_v47  ;;  %v10611_v3 = vadd.f32 %v4761_v57, %v4212_v31  ;;  %v4217_v59 = vadd.f32 %v8662_v4, %v11144_v1  ;;  %v11150_v57 = vld [vmem:[#allocation20_spill] sm:$0xff] }
 0x266   : > { %v4774_v50 = vpop.f32.mrf.mxu0  ;;  %v4080_v15 = vpop.f32.mrf.mxu1 }
 0x267   : > { %11143 = vst [vmem:[#allocation14_spill] sm:$0xff] %v10611_v3  ;;  %v10614_v53 = vadd.f32 %v8730_v22, %v4217_v59  ;;  %v4215_v29 = vadd.f32 %v4080_v15, %v11146_v46  ;;  %v11152_v22 = vld [vmem:[#allocation21_spill] sm:$0xff] }
 0x268   : > { %v8731_v33 = vpop.f32.mrf.mxu0  ;;  %v8663_v60 = vpop.f32.mrf.mxu1 }
 0x269   : > { %11145 = vst [vmem:[#allocation15_spill] sm:$0xff] %v10614_v53  ;;  %v10617_v44 = vadd.f32 %v4774_v50, %v4215_v29  ;;  %v4218_v36 = vadd.f32 %v8663_v60, %v11148_v19  ;;  %v11153_v50 = vld [vmem:[#allocation22_spill] sm:$0xff] }
 0x26a   : > { %v4777_v47 = vpop.f32.mrf.mxu0  ;;  %v4083_v7 = vpop.f32.mrf.mxu1 }
 0x26b   : > { %11147 = vst [vmem:[#allocation16_spill] sm:$0xff] %v10617_v44  ;;  %v10620_v8 = vadd.f32 %v8731_v33, %v4218_v36  ;;  %v4216_v31 = vadd.f32 %v4083_v7, %v11150_v57  ;;  %v11154_v33 = vld [vmem:[#allocation23_spill] sm:$0xff] }
 0x26c   : > { %v8734_v3 = vpop.f32.mrf.mxu0  ;;  %v8666_v4 = vpop.f32.mrf.mxu1 }
 0x26d   : > { %11149 = vst [vmem:[#allocation17_spill] sm:$0xff] %v10620_v8  ;;  %v10623_v1 = vadd.f32 %v4777_v47, %v4216_v31  ;;  %v4221_v59 = vadd.f32 %v8666_v4, %v11152_v22  ;;  %v11156_v47 = vld [vmem:[#allocation2_spill] sm:$0xff] }
 0x26e   : > { %v4790_v53 = vpop.f32.mrf.mxu0  ;;  %v4096_v15 = vpop.f32.mrf.mxu1 }
 0x26f   : > { %11151 = vst [vmem:[#allocation18_spill] sm:$0xff] %v10623_v1  ;;  %v10626_v46 = vadd.f32 %v8734_v3, %v4221_v59  ;;  %v4219_v29 = vadd.f32 %v4096_v15, %v11153_v50 }
 0x270   : > { %v8735_v44 = vpop.f32.mrf.mxu0  ;;  %v8667_v60 = vpop.f32.mrf.mxu1 }
 0x271   : > { %v10629_v19 = vadd.f32 %v4790_v53, %v4219_v29  ;;  %v4222_v36 = vadd.f32 %v8667_v60, %v11154_v33 }
 0x272   : > { %v4793_v8 = vpop.f32.mrf.mxu0  ;;  %v4099_v7 = vpop.f32.mrf.mxu1 }
 0x273   : > { %v10632_v57 = vadd.f32 %v8735_v44, %v4222_v36  ;;  %v4220_v31 = vadd.f32 %v4099_v7, %v11156_v47  ;;  %v11160_v44 = vld [vmem:[#allocation3_spill] sm:$0xff] }
 0x274   : > { %v8738_v1 = vpop.f32.mrf.mxu0  ;;  %v8670_v4 = vpop.f32.mrf.mxu1 }
 0x275   : > { %11155 = vst [vmem:[#allocation19_spill] sm:$0xff] %v10632_v57  ;;  %v10635_v22 = vadd.f32 %v4793_v8, %v4220_v31  ;;  %v4225_v3 = vadd.f32 %v8670_v4, %v10362_v17  ;;  %v11162_v8 = vld [vmem:[#allocation4_spill] sm:$0xff] }
 0x276   : > { %v4806_v59 = vpop.f32.mrf.mxu0  ;;  %v4112_v15 = vpop.f32.mrf.mxu1 }
 0x277   : > { %11157 = vst [vmem:[#allocation20_spill] sm:$0xff] %v10635_v22  ;;  %v10638_v50 = vadd.f32 %v8738_v1, %v4225_v3  ;;  %v4223_v53 = vadd.f32 %v4112_v15, %v10368_v38  ;;  %v11164_v1 = vld [vmem:[#allocation5_spill] sm:$0xff] }
 0x278   : > { %v8739_v29 = vpop.f32.mrf.mxu0  ;;  %v8671_v60 = vpop.f32.mrf.mxu1 }
 0x279   : > { %11158 = vst [vmem:[#allocation21_spill] sm:$0xff] %v10638_v50  ;;  %v10641_v33 = vadd.f32 %v4806_v59, %v4223_v53  ;;  %v4226_v36 = vadd.f32 %v8671_v60, %v11160_v44  ;;  %v11165_v59 = vld [vmem:[#allocation6_spill] sm:$0xff] }
 0x27a   : > { %v4809_v57 = vpop.f32.mrf.mxu0  ;;  %v4115_v7 = vpop.f32.mrf.mxu1 }
 0x27b   : > { %11159 = vst [vmem:[#allocation22_spill] sm:$0xff] %v10641_v33  ;;  %v10644_v47 = vadd.f32 %v8739_v29, %v4226_v36  ;;  %v4224_v31 = vadd.f32 %v4115_v7, %v11162_v8  ;;  %v11166_v29 = vld [vmem:[#allocation7_spill] sm:$0xff] }
 0x27c   : > { %v8742_v22 = vpop.f32.mrf.mxu0  ;;  %v8674_v17 = vpop.f32.mrf.mxu1 }
 0x27d   : > { %11161 = vst [vmem:[#allocation23_spill] sm:$0xff] %v10644_v47  ;;  %v10647_v4 = vadd.f32 %v4809_v57, %v4224_v31  ;;  %v4229_v3 = vadd.f32 %v8674_v17, %v11164_v1  ;;  %v11167_v57 = vld [vmem:[#allocation8_spill] sm:$0xff] }
 0x27e   : > { %v4822_v38 = vpop.f32.mrf.mxu0  ;;  %v4128_v15 = vpop.f32.mrf.mxu1 }
 0x27f   : > { %11163 = vst [vmem:[#allocation2_spill] sm:$0xff] %v10647_v4  ;;  %v10650_v50 = vadd.f32 %v8742_v22, %v4229_v3  ;;  %v4227_v53 = vadd.f32 %v4128_v15, %v11165_v59 }
 0x280   : > { %v8743_v60 = vpop.f32.mrf.mxu0  ;;  %v8675_v44 = vpop.f32.mrf.mxu1 }
 0x281   : > { %v10653_v33 = vadd.f32 %v4822_v38, %v4227_v53  ;;  %v4230_v36 = vadd.f32 %v8675_v44, %v11166_v29  ;;  %v11170_v29 = vld [vmem:[#allocation9_spill] sm:$0xff] }
 0x282   : > { %v4825_v7 = vpop.f32.mrf.mxu0  ;;  %v4131_v8 = vpop.f32.mrf.mxu1 }
 0x283   : > { %v10656_v47 = vadd.f32 %v8743_v60, %v4230_v36  ;;  %v4228_v31 = vadd.f32 %v4131_v8, %v11167_v57 }
 0x284   : > { %v8746_v4 = vpop.f32.mrf.mxu0  ;;  %v8678_v17 = vpop.f32.mrf.mxu1 }
 0x285   : > { %v10661_v22 = vadd.f32 %v4825_v7, %v4228_v31  ;;  %v4233_v1 = vadd.f32 %v8678_v17, %v10402_v12  ;;  %v11172_v12 = vld [vmem:[#allocation10_spill] sm:$0xff] }
 0x286   : > { %v4838_v3 = vpop.f32.mrf.mxu0  ;;  %v4144_v15 = vpop.f32.mrf.mxu1 }
 0x287   : > { %v10664_v38 = vadd.f32 %v8746_v4, %v4233_v1  ;;  %v4231_v59 = vadd.f32 %v4144_v15, %v10408_v24 }
 0x288   : > { %v8747_v53 = vpop.f32.mrf.mxu0  ;;  %v8679_v60 = vpop.f32.mrf.mxu1 }
 0x289   : > { %11168 = vst [vmem:[#allocation3_spill] sm:$0xff] %v10664_v38  ;;  %v10667_v44 = vadd.f32 %v4838_v3, %v4231_v59  ;;  %v4234_v36 = vadd.f32 %v8679_v60, %v11170_v29 }
 0x28a   : > { %v4841_v8 = vpop.f32.mrf.mxu0  ;;  %v4147_v57 = vpop.f32.mrf.mxu1 }
 0x28b   : > { %11169 = vst [vmem:[#allocation4_spill] sm:$0xff] %v10667_v44  ;;  %v10672_v7 = vadd.f32 %v8747_v53, %v4234_v36  ;;  %v4232_v31 = vadd.f32 %v4147_v57, %v11172_v12 }
 0x28c   : > { %v8750_v4 = vpop.f32.mrf.mxu0  ;;  %v8682_v17 = vpop.f32.mrf.mxu1 }
 0x28d   : > { %11171 = vst [vmem:[#allocation5_spill] sm:$0xff] %v10672_v7  ;;  %v10675_v1 = vadd.f32 %v4841_v8, %v4232_v31  ;;  %v4237_v24 = vadd.f32 %v8682_v17, %v10422_v48 }
 0x28e   : > { %v4854_v3 = vpop.f32.mrf.mxu0  ;;  %v4160_v15 = vpop.f32.mrf.mxu1 }
 0x28f   : > { %11173 = vst [vmem:[#allocation6_spill] sm:$0xff] %v10675_v1  ;;  %v10679_v59 = vadd.f32 %v8750_v4, %v4237_v24  ;;  %v4235_v60 = vadd.f32 %v4160_v15, %v10428_v49  ;;  %v7939_v4 = vld [vmem:[%s10690_s17 + $0x8] sm:$0xff]   ;;  %v10702_v24 = vld [vmem:[%s11047_s2] ss:$0 sm:$0xff] }
 0x290   : > { %v8751_v29 = vpop.f32.mrf.mxu0  ;;  %v8683_v44 = vpop.f32.mrf.mxu1  ;;  %v7812_v15 = vld [vmem:[%s10690_s17] sm:$0xff]  }
 0x291   : > { %11174 = vst [vmem:[#allocation7_spill] sm:$0xff] %v10679_v59  ;;  %v10682_v53 = vadd.f32 %v4854_v3, %v4235_v60  ;;  %v4238_v36 = vadd.f32 %v8683_v44, %v10432_v51 }
 0x292   : > { %v4857_v57 = vpop.f32.mrf.mxu0  ;;  %v4163_v48 = vpop.f32.mrf.mxu1 }
 0x293   : > { %11175 = vst [vmem:[#allocation8_spill] sm:$0xff] %v10682_v53  ;;  %v10692_v8 = vadd.f32 %v8751_v29, %v4238_v36  ;;  %v4236_v49 = vadd.f32 %v4163_v48, %v10438_v26  ;;  %v7817_v29 = vunpack.c.l.bf16 %v7939_v4 }
 0x294   : > { %v8826_v12 = vpop.f32.mrf.mxu0  ;;  %v8758_v31 = vpop.f32.mrf.mxu1 }
 0x295   : > { %11176 = vst [vmem:[#allocation9_spill] sm:$0xff] %v10692_v8  ;;  %v10696_v17 = vadd.f32 %v4857_v57, %v4236_v49  ;;  %v5565_v51 = vadd.f32 %v8758_v31, %v10442_v25  ;;  %v7813_v49 = vunpack.c.l.bf16 %v7812_v15 }
 0x296   : > { %v6002_v44 = vpop.f32.mrf.mxu0  ;;  %v5308_v3 = vpop.f32.mrf.mxu1 }
 0x297   : > { %11177 = vst [vmem:[#allocation10_spill] sm:$0xff] %v10696_v17  ;;  %v6259_v60 = vadd.f32 %v8826_v12, %v5565_v51  ;;  %v5563_v36 = vadd.f32 %v5308_v3, %v10448_v13  ;;  %v7818_v17 = vunpack.c.h.bf16 %v7939_v4  ;;  %v7814_v3 = vunpack.c.h.bf16 %v7812_v15  ;;  %v7940_v15 = vld [vmem:[%s10690_s17 + $0x10] sm:$0xff]  }
 0x298   : > { %v8827_v26 = vpop.f32.mrf.mxu0  ;;  %v8759_v48 = vpop.f32.mrf.mxu1 }
 0x299   : > { %v6330_v8 = vadd.f32 %v10702_v24, %v6259_v60  ;;  %v6257_v57 = vadd.f32 %v6002_v44, %v5563_v36  ;;  %v5566_v25 = vadd.f32 %v8759_v48, %v10452_v34  ;;  %v7941_v34 = vld [vmem:[%s10690_s17 + $0x18] sm:$0xff]  }
 0x29a   : > { %v6005_v31 = vpop.f32.mrf.mxu0  ;;  %v5311_v53 = vpop.f32.mrf.mxu1 }
 0x29b   : > { %v6522_v59 = vadd.f32 %v7817_v29, %v6330_v8  ;;  %v6328_v1 = vadd.f32 %v10702_v24, %v6257_v57  ;;  %v6260_v12 = vadd.f32 %v8827_v26, %v5566_v25  ;;  %v5564_v51 = vadd.f32 %v5311_v53, %v10458_v55 }
 0x29c   : > { %v8830_v13 = vpop.f32.mrf.mxu0  ;;  %v8762_v7 = vpop.f32.mrf.mxu1  ;;  %v7825_v57 = vunpack.c.l.bf16 %v7941_v34 }
 0x29d   : > { %v6586_v60 = vmax.f32 %v6522_v59, 0.0  ;;  %v6520_v44 = vadd.f32 %v7813_v49, %v6328_v1  ;;  %v6331_v36 = vadd.f32 %v10702_v24, %v6260_v12  ;;  %v6258_v38 = vadd.f32 %v6005_v31, %v5564_v51 }
 0x29e   : > { %v6018_v48 = vpop.f32.mrf.mxu0  ;;  %v5569_v55 = vadd.f32 %v8762_v7, %v10462_v0  ;;  %v5324_v53 = vpop.f32.mrf.mxu1 }
 0x29f   : > { %v7749_v8 = vpack.c.bf16 %v6586_v60, %v6586_v60  ;;  %v6584_v4 = vmax.f32 %v6520_v44, 0.0  ;;  %v6523_v59 = vadd.f32 %v7818_v17, %v6331_v36  ;;  %v6329_v1 = vadd.f32 %v10702_v24, %v6258_v38 }
 0x2a0   : > { %v8831_v29 = vpop.f32.mrf.mxu0  ;;  %v6263_v26 = vadd.f32 %v8830_v13, %v5569_v55  ;;  %v5567_v49 = vadd.f32 %v5324_v53, %v10468_v27  ;;  %v8763_v25 = vpop.f32.mrf.mxu1  ;;  %v7821_v60 = vunpack.c.l.bf16 %v7940_v15  ;;  %v7826_v44 = vunpack.c.h.bf16 %v7941_v34 }
 0x2a1   : > { %6907 = vst.msk [vmem:[%s10717_s14 + $0x8] sm:$0xf] %vm6904_vm2, %v7749_v8  ;;  %v7747_v31 = vpack.c.bf16 %v6584_v4, %v6584_v4  ;;  %v6587_v12 = vmax.f32 %v6523_v59, 0.0  ;;  %v6521_v0 = vadd.f32 %v7814_v3, %v6329_v1  ;;  %v5570_v7 = vadd.f32 %v8763_v25, %v10472_v20  ;;  %v10731_v3 = vld [vmem:[%s10690_s17 + $0x28] sm:$0xff]   ;;  %v10739_v25 = vld [vmem:[%s10690_s17 + $0x20] sm:$0xff]  }
 0x2a2   : > { %v6021_v51 = vpop.f32.mrf.mxu0  ;;  %v6334_v17 = vadd.f32 %v10702_v24, %v6263_v26  ;;  %v6261_v38 = vadd.f32 %v6018_v48, %v5567_v49  ;;  %v5327_v13 = vpop.f32.mrf.mxu1  ;;  %v7822_v59 = vunpack.c.h.bf16 %v7940_v15 }
 0x2a3   : > { %6905 = vst.msk [vmem:[%s10717_s14] sm:$0xf] %vm6904_vm2, %v7747_v31  ;;  %v7750_v27 = vpack.c.bf16 %v6587_v12, %v6587_v12  ;;  %v6585_v36 = vmax.f32 %v6521_v0, 0.0  ;;  %v6264_v55 = vadd.f32 %v8831_v29, %v5570_v7  ;;  %v5568_v53 = vadd.f32 %v5327_v13, %v10478_v41 }
 0x2a4   : > { %v8834_v8 = vpop.f32.mrf.mxu0  ;;  %v6526_v20 = vadd.f32 %v7825_v57, %v6334_v17  ;;  %v6332_v4 = vadd.f32 %v10702_v24, %v6261_v38  ;;  %v8766_v48 = vpop.f32.mrf.mxu1  ;;  %v7833_v12 = vunpack.c.l.bf16 %v10731_v3  ;;  %v7829_v13 = vunpack.c.l.bf16 %v10739_v25 }
 0x2a5   : > { %6908 = vst.msk [vmem:[%s10717_s14 + $0xc] sm:$0xf] %vm6904_vm2, %v7750_v27  ;;  %v7748_v34 = vpack.c.bf16 %v6585_v36, %v6585_v36  ;;  %v6335_v1 = vadd.f32 %v10702_v24, %v6264_v55  ;;  %v6262_v26 = vadd.f32 %v6021_v51, %v5568_v53  ;;  %v5573_v49 = vadd.f32 %v8766_v48, %v10482_v61 }
 0x2a6   : > { %v6034_v29 = vpop.f32.mrf.mxu0  ;;  %v6590_v41 = vmax.f32 %v6526_v20, 0.0  ;;  %v6524_v31 = vadd.f32 %v7821_v60, %v6332_v4  ;;  %v5340_v57 = vpop.f32.mrf.mxu1 }
 0x2a7   : > { %6906 = vst.msk [vmem:[%s10717_s14 + $0x4] sm:$0xf] %vm6904_vm2, %v7748_v34  ;;  %v6527_v15 = vadd.f32 %v7826_v44, %v6335_v1  ;;  %v6333_v0 = vadd.f32 %v10702_v24, %v6262_v26  ;;  %v6267_v7 = vadd.f32 %v8834_v8, %v5573_v49  ;;  %v5571_v17 = vadd.f32 %v5340_v57, %v10488_v2  ;;  %v7945_v49 = vld [vmem:[%s10690_s17 + $0x38] sm:$0xff]  }
 0x2a8   : > { %v8835_v51 = vpop.f32.mrf.mxu0  ;;  %v7753_v38 = vpack.c.bf16 %v6590_v41, %v6590_v41  ;;  %v6588_v61 = vmax.f32 %v6524_v31, 0.0  ;;  %v8767_v27 = vpop.f32.mrf.mxu1 }
 0x2a9   : > { %v6591_v60 = vmax.f32 %v6527_v15, 0.0  ;;  %v6525_v36 = vadd.f32 %v7822_v59, %v6333_v0  ;;  %v6338_v55 = vadd.f32 %v10702_v24, %v6267_v7  ;;  %v6265_v53 = vadd.f32 %v6034_v29, %v5571_v17  ;;  %v7944_v7 = vld [vmem:[%s10690_s17 + $0x30] sm:$0xff]  }
 0x2aa   : > { %v6037_v20 = vpop.f32.mrf.mxu0  ;;  %6911 = vst.msk [vmem:[%s10717_s14 + $0x18] sm:$0xf] %vm6904_vm2, %v7753_v38  ;;  %v7751_v44 = vpack.c.bf16 %v6588_v61, %v6588_v61  ;;  %v5574_v2 = vadd.f32 %v8767_v27, %v10492_v56  ;;  %v5343_v8 = vpop.f32.mrf.mxu1  ;;  %v7834_v29 = vunpack.c.h.bf16 %v10731_v3  ;;  %v7841_v61 = vunpack.c.l.bf16 %v7945_v49 }
 0x2ab   : > { %v7754_v4 = vpack.c.bf16 %v6591_v60, %v6591_v60  ;;  %v6589_v48 = vmax.f32 %v6525_v36, 0.0  ;;  %v6530_v34 = vadd.f32 %v7833_v12, %v6338_v55  ;;  %v6336_v1 = vadd.f32 %v10702_v24, %v6265_v53 }
 0x2ac   : > { %v8838_v26 = vpop.f32.mrf.mxu0  ;;  %6909 = vst.msk [vmem:[%s10717_s14 + $0x10] sm:$0xf] %vm6904_vm2, %v7751_v44  ;;  %v6268_v59 = vadd.f32 %v8835_v51, %v5574_v2  ;;  %v5572_v41 = vadd.f32 %v5343_v8, %v10498_v58  ;;  %v8770_v31 = vpop.f32.mrf.mxu1  ;;  %v7830_v51 = vunpack.c.h.bf16 %v10739_v25  ;;  %v7837_v53 = vunpack.c.l.bf16 %v7944_v7 }
 0x2ad   : > { %6912 = vst.msk [vmem:[%s10717_s14 + $0x1c] sm:$0xf] %vm6904_vm2, %v7754_v4  ;;  %v7752_v56 = vpack.c.bf16 %v6589_v48, %v6589_v48  ;;  %v6594_v57 = vmax.f32 %v6530_v34, 0.0  ;;  %v6528_v15 = vadd.f32 %v7829_v13, %v6336_v1  ;;  %v5577_v12 = vadd.f32 %v8770_v31, %v10502_v11 }
 0x2ae   : > { %v6050_v0 = vpop.f32.mrf.mxu0  ;;  %v6339_v17 = vadd.f32 %v10702_v24, %v6268_v59  ;;  %v6266_v38 = vadd.f32 %v6037_v20, %v5572_v41  ;;  %v5356_v3 = vpop.f32.mrf.mxu1  ;;  %v7842_v1 = vunpack.c.h.bf16 %v7945_v49 }
 0x2af   : > { %6910 = vst.msk [vmem:[%s10717_s14 + $0x14] sm:$0xf] %vm6904_vm2, %v7752_v56  ;;  %v7757_v58 = vpack.c.bf16 %v6594_v57, %v6594_v57  ;;  %v6592_v27 = vmax.f32 %v6528_v15, 0.0  ;;  %v6271_v60 = vadd.f32 %v8838_v26, %v5577_v12  ;;  %v5575_v36 = vadd.f32 %v5356_v3, %v10508_v16 }
 0x2b0   : > { %v8839_v13 = vpop.f32.mrf.mxu0  ;;  %v6531_v11 = vadd.f32 %v7834_v29, %v6339_v17  ;;  %v6337_v55 = vadd.f32 %v10702_v24, %v6266_v38  ;;  %v8771_v44 = vpop.f32.mrf.mxu1  ;;  %v7838_v15 = vunpack.c.h.bf16 %v7944_v7  ;;  %v7947_v38 = vld [vmem:[%s10690_s17 + $0x48] sm:$0xff]  }
 0x2b1   : > { %6915 = vst.msk [vmem:[%s10717_s14 + $0x28] sm:$0xf] %vm6904_vm2, %v7757_v58  ;;  %v7755_v20 = vpack.c.bf16 %v6592_v27, %v6592_v27  ;;  %v6342_v25 = vadd.f32 %v10702_v24, %v6271_v60  ;;  %v6269_v2 = vadd.f32 %v6050_v0, %v5575_v36  ;;  %v5578_v8 = vadd.f32 %v8771_v44, %v10512_v5  ;;  %v7946_v36 = vld [vmem:[%s10690_s17 + $0x40] sm:$0xff]  }
 0x2b2   : > { %v6053_v4 = vpop.f32.mrf.mxu0  ;;  %v6595_v48 = vmax.f32 %v6531_v11, 0.0  ;;  %v6529_v34 = vadd.f32 %v7830_v51, %v6337_v55  ;;  %v5359_v16 = vpop.f32.mrf.mxu1  ;;  %v7849_v55 = vunpack.c.l.bf16 %v7947_v38 }
 0x2b3   : > { %6913 = vst.msk [vmem:[%s10717_s14 + $0x20] sm:$0xf] %vm6904_vm2, %v7755_v20  ;;  %v6534_v26 = vadd.f32 %v7841_v61, %v6342_v25  ;;  %v6340_v59 = vadd.f32 %v10702_v24, %v6269_v2  ;;  %v6272_v29 = vadd.f32 %v8839_v13, %v5578_v8  ;;  %v5576_v41 = vadd.f32 %v5359_v16, %v10518_v9 }
 0x2b4   : > { %v8842_v31 = vpop.f32.mrf.mxu0  ;;  %v7758_v56 = vpack.c.bf16 %v6595_v48, %v6595_v48  ;;  %v6593_v57 = vmax.f32 %v6529_v34, 0.0  ;;  %v8774_v5 = vpop.f32.mrf.mxu1  ;;  %v7845_v34 = vunpack.c.l.bf16 %v7946_v36 }
 0x2b5   : > { %v6598_v12 = vmax.f32 %v6534_v26, 0.0  ;;  %v6532_v49 = vadd.f32 %v7837_v53, %v6340_v59  ;;  %v6343_v0 = vadd.f32 %v10702_v24, %v6272_v29  ;;  %v6270_v17 = vadd.f32 %v6053_v4, %v5576_v41 }
 0x2b6   : > { %v6066_v51 = vpop.f32.mrf.mxu0  ;;  %6916 = vst.msk [vmem:[%s10717_s14 + $0x2c] sm:$0xf] %vm6904_vm2, %v7758_v56  ;;  %v7756_v61 = vpack.c.bf16 %v6593_v57, %v6593_v57  ;;  %v5581_v9 = vadd.f32 %v8774_v5, %v10522_v23  ;;  %v5372_v3 = vpop.f32.mrf.mxu1  ;;  %v7846_v57 = vunpack.c.h.bf16 %v7946_v36 }
 0x2b7   : > { %v7761_v58 = vpack.c.bf16 %v6598_v12, %v6598_v12  ;;  %v6596_v27 = vmax.f32 %v6532_v49, 0.0  ;;  %v6535_v7 = vadd.f32 %v7842_v1, %v6343_v0  ;;  %v6341_v60 = vadd.f32 %v10702_v24, %v6270_v17 }
 0x2b8   : > { %v8843_v13 = vpop.f32.mrf.mxu0  ;;  %6914 = vst.msk [vmem:[%s10717_s14 + $0x24] sm:$0xf] %vm6904_vm2, %v7756_v61  ;;  %v6275_v11 = vadd.f32 %v8842_v31, %v5581_v9  ;;  %v5579_v53 = vadd.f32 %v5372_v3, %v10528_v28  ;;  %v8775_v44 = vpop.f32.mrf.mxu1  ;;  %v7850_v1 = vunpack.c.h.bf16 %v7947_v38  ;;  %v10793_v31 = vld [vmem:[%s10690_s17 + $0x58] sm:$0xff]   ;;  %v10801_v38 = vld [vmem:[%s10690_s17 + $0x50] sm:$0xff]  }
 0x2b9   : > { %6919 = vst.msk [vmem:[%s10717_s14 + $0x38] sm:$0xf] %vm6904_vm2, %v7761_v58  ;;  %v7759_v20 = vpack.c.bf16 %v6596_v27, %v6596_v27  ;;  %v6599_v23 = vmax.f32 %v6535_v7, 0.0  ;;  %v6533_v25 = vadd.f32 %v7838_v15, %v6341_v60  ;;  %v5582_v2 = vadd.f32 %v8775_v44, %v10532_v18 }
 0x2ba   : > { %v6069_v8 = vpop.f32.mrf.mxu0  ;;  %v6346_v4 = vadd.f32 %v10702_v24, %v6275_v11  ;;  %v6273_v48 = vadd.f32 %v6066_v51, %v5579_v53  ;;  %v5375_v16 = vpop.f32.mrf.mxu1  ;;  %v7857_v61 = vunpack.c.l.bf16 %v10793_v31 }
 0x2bb   : > { %6917 = vst.msk [vmem:[%s10717_s14 + $0x30] sm:$0xf] %vm6904_vm2, %v7759_v20  ;;  %v7762_v28 = vpack.c.bf16 %v6599_v23, %v6599_v23  ;;  %v6597_v26 = vmax.f32 %v6533_v25, 0.0  ;;  %v6276_v59 = vadd.f32 %v8843_v13, %v5582_v2  ;;  %v5580_v29 = vadd.f32 %v5375_v16, %v10538_v21  ;;  %v7951_v16 = vld [vmem:[%s10690_s17 + $0x68] sm:$0xff]  }
 0x2bc   : > { %v8846_v41 = vpop.f32.mrf.mxu0  ;;  %v6538_v18 = vadd.f32 %v7849_v55, %v6346_v4  ;;  %v6344_v56 = vadd.f32 %v10702_v24, %v6273_v48  ;;  %v8778_v15 = vpop.f32.mrf.mxu1  ;;  %v7853_v13 = vunpack.c.l.bf16 %v10801_v38 }
 0x2bd   : > { %6920 = vst.msk [vmem:[%s10717_s14 + $0x3c] sm:$0xf] %vm6904_vm2, %v7762_v28  ;;  %v7760_v5 = vpack.c.bf16 %v6597_v26, %v6597_v26  ;;  %v6347_v12 = vadd.f32 %v10702_v24, %v6276_v59  ;;  %v6274_v49 = vadd.f32 %v6069_v8, %v5580_v29  ;;  %v5585_v0 = vadd.f32 %v8778_v15, %v10542_v35  ;;  %v7950_v15 = vld [vmem:[%s10690_s17 + $0x60] sm:$0xff]  }
 0x2be   : > { %v6082_v17 = vpop.f32.mrf.mxu0  ;;  %v6602_v21 = vmax.f32 %v6538_v18, 0.0  ;;  %v6536_v51 = vadd.f32 %v7845_v34, %v6344_v56  ;;  %v5388_v9 = vpop.f32.mrf.mxu1  ;;  %v7858_v26 = vunpack.c.h.bf16 %v10793_v31 }
 0x2bf   : > { %6918 = vst.msk [vmem:[%s10717_s14 + $0x34] sm:$0xf] %vm6904_vm2, %v7760_v5  ;;  %v6539_v3 = vadd.f32 %v7850_v1, %v6347_v12  ;;  %v6345_v58 = vadd.f32 %v10702_v24, %v6274_v49  ;;  %v6279_v27 = vadd.f32 %v8846_v41, %v5585_v0  ;;  %v5583_v7 = vadd.f32 %v5388_v9, %v10548_v40 }
 0x2c0   : > { %v8847_v60 = vpop.f32.mrf.mxu0  ;;  %v7765_v36 = vpack.c.bf16 %v6602_v21, %v6602_v21  ;;  %v6600_v35 = vmax.f32 %v6536_v51, 0.0  ;;  %v8779_v11 = vpop.f32.mrf.mxu1  ;;  %v7854_v49 = vunpack.c.h.bf16 %v10801_v38  ;;  %v7865_v0 = vunpack.c.l.bf16 %v7951_v16 }
 0x2c1   : > { %v6603_v55 = vmax.f32 %v6539_v3, 0.0  ;;  %v6537_v53 = vadd.f32 %v7846_v57, %v6345_v58  ;;  %v6350_v44 = vadd.f32 %v10702_v24, %v6279_v27  ;;  %v6277_v20 = vadd.f32 %v6082_v17, %v5583_v7 }
 0x2c2   : > { %v6085_v23 = vpop.f32.mrf.mxu0  ;;  %6923 = vst.msk [vmem:[%s10717_s14 + $0x48] sm:$0xf] %vm6904_vm2, %v7765_v36  ;;  %v7763_v25 = vpack.c.bf16 %v6600_v35, %v6600_v35  ;;  %v5586_v40 = vadd.f32 %v8779_v11, %v10552_v30  ;;  %v5391_v2 = vpop.f32.mrf.mxu1  ;;  %v7861_v3 = vunpack.c.l.bf16 %v7950_v15  ;;  %v7866_v11 = vunpack.c.h.bf16 %v7951_v16 }
 0x2c3   : > { %v7766_v8 = vpack.c.bf16 %v6603_v55, %v6603_v55  ;;  %v6601_v4 = vmax.f32 %v6537_v53, 0.0  ;;  %v6542_v48 = vadd.f32 %v7857_v61, %v6350_v44  ;;  %v6348_v34 = vadd.f32 %v10702_v24, %v6277_v20 }
 0x2c4   : > { %v8850_v1 = vpop.f32.mrf.mxu0  ;;  %6921 = vst.msk [vmem:[%s10717_s14 + $0x40] sm:$0xf] %vm6904_vm2, %v7763_v25  ;;  %v6280_v28 = vadd.f32 %v8847_v60, %v5586_v40  ;;  %v5584_v59 = vadd.f32 %v5391_v2, %v10558_v39  ;;  %v8782_v29 = vpop.f32.mrf.mxu1  ;;  %v7862_v2 = vunpack.c.h.bf16 %v7950_v15 }
 0x2c5   : > { %6924 = vst.msk [vmem:[%s10717_s14 + $0x4c] sm:$0xf] %vm6904_vm2, %v7766_v8  ;;  %v7764_v30 = vpack.c.bf16 %v6601_v4, %v6601_v4  ;;  %v6606_v41 = vmax.f32 %v6542_v48, 0.0  ;;  %v6540_v18 = vadd.f32 %v7853_v13, %v6348_v34  ;;  %v5589_v56 = vadd.f32 %v8782_v29, %v10562_v32 }
 0x2c6   : > { %v6098_v57 = vpop.f32.mrf.mxu0  ;;  %v6351_v5 = vadd.f32 %v10702_v24, %v6280_v28  ;;  %v6278_v12 = vadd.f32 %v6085_v23, %v5584_v59  ;;  %v5404_v31 = vpop.f32.mrf.mxu1 }
 0x2c7   : > { %6922 = vst.msk [vmem:[%s10717_s14 + $0x44] sm:$0xf] %vm6904_vm2, %v7764_v30  ;;  %v7769_v39 = vpack.c.bf16 %v6606_v41, %v6606_v41  ;;  %v6604_v17 = vmax.f32 %v6540_v18, 0.0  ;;  %v6283_v21 = vadd.f32 %v8850_v1, %v5589_v56  ;;  %v5587_v51 = vadd.f32 %v5404_v31, %v10567_v52  ;;  %v7953_v1 = vld [vmem:[%s10690_s17 + $0x78] sm:$0xff]   ;;  %v7952_v18 = vld [vmem:[%s10690_s17 + $0x70] sm:$0xff]  }
 0x2c8   : > { %v8851_v61 = vpop.f32.mrf.mxu0  ;;  %v6543_v32 = vadd.f32 %v7858_v26, %v6351_v5  ;;  %v6349_v9 = vadd.f32 %v10702_v24, %v6278_v12  ;;  %v8783_v58 = vpop.f32.mrf.mxu1  ;;  %v7873_v15 = vunpack.c.l.bf16 %v7953_v1 }
 0x2c9   : > { %6927 = vst.msk [vmem:[%s10717_s14 + $0x58] sm:$0xf] %vm6904_vm2, %v7769_v39  ;;  %v7767_v27 = vpack.c.bf16 %v6604_v17, %v6604_v17  ;;  %v6354_v38 = vadd.f32 %v10702_v24, %v6283_v21  ;;  %v6281_v7 = vadd.f32 %v6098_v57, %v5587_v51  ;;  %v5590_v60 = vadd.f32 %v8783_v58, %v10570_v62 }
 0x2ca   : > { %v6101_v36 = vpop.f32.mrf.mxu0  ;;  %v6607_v35 = vmax.f32 %v6543_v32, 0.0  ;;  %v6541_v13 = vadd.f32 %v7854_v49, %v6349_v9  ;;  %v5407_v52 = vpop.f32.mrf.mxu1  ;;  %v7869_v51 = vunpack.c.l.bf16 %v7952_v18 }
 0x2cb   : > { %6925 = vst.msk [vmem:[%s10717_s14 + $0x50] sm:$0xf] %vm6904_vm2, %v7767_v27  ;;  %v6546_v55 = vadd.f32 %v7865_v0, %v6354_v38  ;;  %v6352_v53 = vadd.f32 %v10702_v24, %v6281_v7  ;;  %v6284_v44 = vadd.f32 %v8851_v61, %v5590_v60  ;;  %v5588_v20 = vadd.f32 %v5407_v52, %v10575_v54  ;;  %v10855_v38 = vld [vmem:[%s10690_s17 + $0x88] sm:$0xff]  }
 0x2cc   : > { %v8854_v23 = vpop.f32.mrf.mxu0  ;;  %v7770_v25 = vpack.c.bf16 %v6607_v35, %v6607_v35  ;;  %v6605_v40 = vmax.f32 %v6541_v13, 0.0  ;;  %v8786_v62 = vpop.f32.mrf.mxu1  ;;  %v7874_v61 = vunpack.c.h.bf16 %v7953_v1  ;;  %v7870_v60 = vunpack.c.h.bf16 %v7952_v18 }
 0x2cd   : > { %v6610_v8 = vmax.f32 %v6546_v55, 0.0  ;;  %v6544_v4 = vadd.f32 %v7861_v3, %v6352_v53  ;;  %v6355_v48 = vadd.f32 %v10702_v24, %v6284_v44  ;;  %v6282_v34 = vadd.f32 %v6101_v36, %v5588_v20  ;;  %v10863_v53 = vld [vmem:[%s10690_s17 + $0x80] sm:$0xff]  }
 0x2ce   : > { %v6114_v16 = vpop.f32.mrf.mxu0  ;;  %6928 = vst.msk [vmem:[%s10717_s14 + $0x5c] sm:$0xf] %vm6904_vm2, %v7770_v25  ;;  %v7768_v28 = vpack.c.bf16 %v6605_v40, %v6605_v40  ;;  %v5593_v54 = vadd.f32 %v8786_v62, %v10578_v63  ;;  %v5420_v26 = vpop.f32.mrf.mxu1  ;;  %v7881_v20 = vunpack.c.l.bf16 %v10855_v38 }
 0x2cf   : > { %v7773_v59 = vpack.c.bf16 %v6610_v8, %v6610_v8  ;;  %v6608_v29 = vmax.f32 %v6544_v4, 0.0  ;;  %v6547_v30 = vadd.f32 %v7866_v11, %v6355_v48  ;;  %v6353_v41 = vadd.f32 %v10702_v24, %v6282_v34 }
 0x2d0   : > { %v8855_v56 = vpop.f32.mrf.mxu0  ;;  %6926 = vst.msk [vmem:[%s10717_s14 + $0x54] sm:$0xf] %vm6904_vm2, %v7768_v28  ;;  %v6287_v57 = vadd.f32 %v8854_v23, %v5593_v54  ;;  %v5591_v5 = vadd.f32 %v5420_v26, %v10581_v37  ;;  %v8787_v12 = vpop.f32.mrf.mxu1  ;;  %v7877_v48 = vunpack.c.l.bf16 %v10863_v53 }
 0x2d1   : > { %6931 = vst.msk [vmem:[%s10717_s14 + $0x68] sm:$0xf] %vm6904_vm2, %v7773_v59  ;;  %v7771_v49 = vpack.c.bf16 %v6608_v29, %v6608_v29  ;;  %v6611_v63 = vmax.f32 %v6547_v30, 0.0  ;;  %v6545_v0 = vadd.f32 %v7862_v2, %v6353_v41  ;;  %v5594_v31 = vadd.f32 %v8787_v12, %v10584_v43 }
 0x2d2   : > { %v6117_v39 = vpop.f32.mrf.mxu0  ;;  %v6358_v17 = vadd.f32 %v10702_v24, %v6287_v57  ;;  %v6285_v21 = vadd.f32 %v6114_v16, %v5591_v5  ;;  %v5423_v32 = vpop.f32.mrf.mxu1  ;;  %v7882_v12 = vunpack.c.h.bf16 %v10855_v38  ;;  %v11179_v38 = vld [vmem:[#allocation12_spill] sm:$0xff] }
 0x2d3   : > { %6929 = vst.msk [vmem:[%s10717_s14 + $0x60] sm:$0xf] %vm6904_vm2, %v7771_v49  ;;  %v7774_v37 = vpack.c.bf16 %v6611_v63, %v6611_v63  ;;  %v6609_v9 = vmax.f32 %v6545_v0, 0.0  ;;  %v6288_v3 = vadd.f32 %v8855_v56, %v5594_v31  ;;  %v5592_v58 = vadd.f32 %v5423_v32, %v10587_v14 }
 0x2d4   : > { %v8858_v27 = vpop.f32.mrf.mxu0  ;;  %v6550_v43 = vadd.f32 %v7873_v15, %v6358_v17  ;;  %v6356_v7 = vadd.f32 %v10702_v24, %v6285_v21  ;;  %v8790_v36 = vpop.f32.mrf.mxu1  ;;  %v7957_v15 = vld [vmem:[%s10690_s17 + $0x98] sm:$0xff]  }
 0x2d5   : > { %6932 = vst.msk [vmem:[%s10717_s14 + $0x6c] sm:$0xf] %vm6904_vm2, %v7774_v37  ;;  %v7772_v35 = vpack.c.bf16 %v6609_v9, %v6609_v9  ;;  %v6359_v13 = vadd.f32 %v10702_v24, %v6288_v3  ;;  %v6286_v11 = vadd.f32 %v6117_v39, %v5592_v58  ;;  %v5597_v52 = vadd.f32 %v8790_v36, %v10590_v42  ;;  %v11178_v39 = vld [vmem:[#allocation11_spill] sm:$0xff] }
 0x2d6   : > { %v6130_v55 = vpop.f32.mrf.mxu0  ;;  %v6614_v14 = vmax.f32 %v6550_v43, 0.0  ;;  %v6548_v44 = vadd.f32 %v7869_v51, %v6356_v7  ;;  %v5436_v23 = vpop.f32.mrf.mxu1  ;;  %v7956_v51 = vld [vmem:[%s10690_s17 + $0x90] sm:$0xff]   ;;  %v7878_v37 = vunpack.c.h.bf16 %v10863_v53  ;;  %v7889_v9 = vunpack.c.l.bf16 %v7957_v15  ;;  %v11180_v53 = vld [vmem:[#allocation13_spill] sm:$0xff] }
 0x2d7   : > { %6930 = vst.msk [vmem:[%s10717_s14 + $0x64] sm:$0xf] %vm6904_vm2, %v7772_v35  ;;  %v6551_v25 = vadd.f32 %v7874_v61, %v6359_v13  ;;  %v6357_v40 = vadd.f32 %v10702_v24, %v6286_v11  ;;  %v6291_v2 = vadd.f32 %v8858_v27, %v5597_v52  ;;  %v5595_v62 = vadd.f32 %v5436_v23, %v10593_v45 }
 0x2d8   : > { %v8859_v8 = vpop.f32.mrf.mxu0  ;;  %v7777_v4 = vpack.c.bf16 %v6614_v14, %v6614_v14  ;;  %v6612_v42 = vmax.f32 %v6548_v44, 0.0  ;;  %v8791_v34 = vpop.f32.mrf.mxu1  ;;  %v7885_v35 = vunpack.c.l.bf16 %v7956_v51 }
 0x2d9   : > { %v6615_v1 = vmax.f32 %v6551_v25, 0.0  ;;  %v6549_v16 = vadd.f32 %v7870_v60, %v6357_v40  ;;  %v6362_v28 = vadd.f32 %v10702_v24, %v6291_v2  ;;  %v6289_v54 = vadd.f32 %v6130_v55, %v5595_v62 }
 0x2da   : > { %v6133_v26 = vpop.f32.mrf.mxu0  ;;  %6935 = vst.msk [vmem:[%s10717_s14 + $0x78] sm:$0xf] %vm6904_vm2, %v7777_v4  ;;  %v7775_v59 = vpack.c.bf16 %v6612_v42, %v6612_v42  ;;  %v5598_v45 = vadd.f32 %v8791_v34, %v10596_v6  ;;  %v5439_v29 = vpop.f32.mrf.mxu1  ;;  %v7890_v25 = vunpack.c.h.bf16 %v7957_v15  ;;  %v11181_v4 = vld [vmem:[#allocation14_spill] sm:$0xff] }
 0x2db   : > { %v7778_v30 = vpack.c.bf16 %v6615_v1, %v6615_v1  ;;  %v6613_v41 = vmax.f32 %v6549_v16, 0.0  ;;  %v6554_v18 = vadd.f32 %v7881_v20, %v6362_v28  ;;  %v6360_v56 = vadd.f32 %v10702_v24, %v6289_v54 }
 0x2dc   : > { %v8862_v57 = vpop.f32.mrf.mxu0  ;;  %6933 = vst.msk [vmem:[%s10717_s14 + $0x70] sm:$0xf] %vm6904_vm2, %v7775_v59  ;;  %v6292_v5 = vadd.f32 %v8859_v8, %v5598_v45  ;;  %v5596_v49 = vadd.f32 %v5439_v29, %v10599_v10  ;;  %v8794_v63 = vpop.f32.mrf.mxu1  ;;  %v7886_v16 = vunpack.c.h.bf16 %v7956_v51  ;;  %v7959_v29 = vld [vmem:[%s10690_s17 + $0xa8] sm:$0xff]  }
 0x2dd   : > { %6936 = vst.msk [vmem:[%s10717_s14 + $0x7c] sm:$0xf] %vm6904_vm2, %v7778_v30  ;;  %v7776_v6 = vpack.c.bf16 %v6613_v41, %v6613_v41  ;;  %v6618_v0 = vmax.f32 %v6554_v18, 0.0  ;;  %v6552_v31 = vadd.f32 %v7877_v48, %v6360_v56  ;;  %v5601_v17 = vadd.f32 %v8794_v63, %v11178_v39  ;;  %v11182_v18 = vld [vmem:[#allocation15_spill] sm:$0xff]  ;;  %v7958_v63 = vld [vmem:[%s10690_s17 + $0xa0] sm:$0xff]   ;;  %v11183_v39 = vld [vmem:[#allocation16_spill] sm:$0xff] }
 0x2de   : > { %v6146_v21 = vpop.f32.mrf.mxu0  ;;  %v6363_v61 = vadd.f32 %v10702_v24, %v6292_v5  ;;  %v6290_v32 = vadd.f32 %v6133_v26, %v5596_v49  ;;  %v5452_v3 = vpop.f32.mrf.mxu1 }
 0x2df   : > { %6934 = vst.msk [vmem:[%s10717_s14 + $0x74] sm:$0xf] %vm6904_vm2, %v7776_v6  ;;  %v7781_v10 = vpack.c.bf16 %v6618_v0, %v6618_v0  ;;  %v6616_v58 = vmax.f32 %v6552_v31, 0.0  ;;  %v6295_v27 = vadd.f32 %v8862_v57, %v5601_v17  ;;  %v5599_v43 = vadd.f32 %v5452_v3, %v11179_v38 }
 0x2e0   : > { %v8863_v7 = vpop.f32.mrf.mxu0  ;;  %v6555_v60 = vadd.f32 %v7882_v12, %v6363_v61  ;;  %v6361_v36 = vadd.f32 %v10702_v24, %v6290_v32  ;;  %v8795_v13 = vpop.f32.mrf.mxu1  ;;  %v7897_v31 = vunpack.c.l.bf16 %v7959_v29  ;;  %v7898_v38 = vunpack.c.h.bf16 %v7959_v29 }
 0x2e1   : > { %6939 = vst.msk [vmem:[%s10717_s14 + $0x88] sm:$0xf] %vm6904_vm2, %v7781_v10  ;;  %v7779_v11 = vpack.c.bf16 %v6616_v58, %v6616_v58  ;;  %v6366_v52 = vadd.f32 %v10702_v24, %v6295_v27  ;;  %v6293_v55 = vadd.f32 %v6146_v21, %v5599_v43  ;;  %v5602_v14 = vadd.f32 %v8795_v13, %v11180_v53 }
 0x2e2   : > { %v6149_v44 = vpop.f32.mrf.mxu0  ;;  %v6619_v20 = vmax.f32 %v6555_v60, 0.0  ;;  %v6553_v23 = vadd.f32 %v7878_v37, %v6361_v36  ;;  %v5455_v40 = vpop.f32.mrf.mxu1  ;;  %v11184_v37 = vld [vmem:[#allocation17_spill] sm:$0xff]  ;;  %v7893_v27 = vunpack.c.l.bf16 %v7958_v63 }
 0x2e3   : > { %6937 = vst.msk [vmem:[%s10717_s14 + $0x80] sm:$0xf] %vm6904_vm2, %v7779_v11  ;;  %v6558_v2 = vadd.f32 %v7889_v9, %v6366_v52  ;;  %v6364_v62 = vadd.f32 %v10702_v24, %v6293_v55  ;;  %v6296_v8 = vadd.f32 %v8863_v7, %v5602_v14  ;;  %v5600_v42 = vadd.f32 %v5455_v40, %v11181_v4  ;;  %v10917_v52 = vld [vmem:[%s10690_s17 + $0xb8] sm:$0xff]  }
 0x2e4   : > { %v8866_v48 = vpop.f32.mrf.mxu0  ;;  %v7782_v34 = vpack.c.bf16 %v6619_v20, %v6619_v20  ;;  %v6617_v1 = vmax.f32 %v6553_v23, 0.0  ;;  %v8798_v28 = vpop.f32.mrf.mxu1  ;;  %v7894_v14 = vunpack.c.h.bf16 %v7958_v63 }
 0x2e5   : > { %v6622_v54 = vmax.f32 %v6558_v2, 0.0  ;;  %v6556_v26 = vadd.f32 %v7885_v35, %v6364_v62  ;;  %v6367_v59 = vadd.f32 %v10702_v24, %v6296_v8  ;;  %v6294_v45 = vadd.f32 %v6149_v44, %v5600_v42  ;;  %v11185_v35 = vld [vmem:[#allocation18_spill] sm:$0xff]  ;;  %v10925_v62 = vld [vmem:[%s10690_s17 + $0xb0] sm:$0xff]  }
 0x2e6   : > { %v6162_v30 = vpop.f32.mrf.mxu0  ;;  %6940 = vst.msk [vmem:[%s10717_s14 + $0x8c] sm:$0xf] %vm6904_vm2, %v7782_v34  ;;  %v7780_v41 = vpack.c.bf16 %v6617_v1, %v6617_v1  ;;  %v5605_v56 = vadd.f32 %v8798_v28, %v11182_v18  ;;  %v5468_v57 = vpop.f32.mrf.mxu1  ;;  %v7905_v42 = vunpack.c.l.bf16 %v10917_v52 }
 0x2e7   : > { %v7785_v15 = vpack.c.bf16 %v6622_v54, %v6622_v54  ;;  %v6620_v5 = vmax.f32 %v6556_v26, 0.0  ;;  %v6559_v12 = vadd.f32 %v7890_v25, %v6367_v59  ;;  %v6365_v49 = vadd.f32 %v10702_v24, %v6294_v45 }
 0x2e8   : > { %v8867_v6 = vpop.f32.mrf.mxu0  ;;  %6938 = vst.msk [vmem:[%s10717_s14 + $0x84] sm:$0xf] %vm6904_vm2, %v7780_v41  ;;  %v6299_v0 = vadd.f32 %v8866_v48, %v5605_v56  ;;  %v5603_v17 = vadd.f32 %v5468_v57, %v11183_v39  ;;  %v8799_v21 = vpop.f32.mrf.mxu1  ;;  %v7901_v59 = vunpack.c.l.bf16 %v10925_v62 }
 0x2e9   : > { %6943 = vst.msk [vmem:[%s10717_s14 + $0x98] sm:$0xf] %vm6904_vm2, %v7785_v15  ;;  %v7783_v51 = vpack.c.bf16 %v6620_v5, %v6620_v5  ;;  %v6623_v61 = vmax.f32 %v6559_v12, 0.0  ;;  %v6557_v32 = vadd.f32 %v7886_v16, %v6365_v49  ;;  %v5606_v9 = vadd.f32 %v8799_v21, %v11184_v37  ;;  %v11186_v15 = vld [vmem:[#allocation19_spill] sm:$0xff]  ;;  %v11187_v21 = vld [vmem:[#allocation20_spill] sm:$0xff] }
 0x2ea   : > { %v6165_v3 = vpop.f32.mrf.mxu0  ;;  %v6370_v10 = vadd.f32 %v10702_v24, %v6299_v0  ;;  %v6297_v58 = vadd.f32 %v6162_v30, %v5603_v17  ;;  %v5471_v43 = vpop.f32.mrf.mxu1  ;;  %v7906_v17 = vunpack.c.h.bf16 %v10917_v52  ;;  %v11189_v52 = vld [vmem:[#allocation22_spill] sm:$0xff] }
 0x2eb   : > { %6941 = vst.msk [vmem:[%s10717_s14 + $0x90] sm:$0xf] %vm6904_vm2, %v7783_v51  ;;  %v7786_v7 = vpack.c.bf16 %v6623_v61, %v6623_v61  ;;  %v6621_v60 = vmax.f32 %v6557_v32, 0.0  ;;  %v6300_v36 = vadd.f32 %v8867_v6, %v5606_v9  ;;  %v5604_v13 = vadd.f32 %v5471_v43, %v11185_v35 }
 0x2ec   : > { %v8870_v11 = vpop.f32.mrf.mxu0  ;;  %v6562_v55 = vadd.f32 %v7897_v31, %v6370_v10  ;;  %v6368_v53 = vadd.f32 %v10702_v24, %v6297_v58  ;;  %v8802_v44 = vpop.f32.mrf.mxu1  ;;  %v7963_v31 = vld [vmem:[%s10690_s17 + $0xc8] sm:$0xff]  }
 0x2ed   : > { %6944 = vst.msk [vmem:[%s10717_s14 + $0x9c] sm:$0xf] %vm6904_vm2, %v7786_v7  ;;  %v7784_v20 = vpack.c.bf16 %v6621_v60, %v6621_v60  ;;  %v6371_v23 = vadd.f32 %v10702_v24, %v6300_v36  ;;  %v6298_v25 = vadd.f32 %v6165_v3, %v5604_v13  ;;  %v5609_v40 = vadd.f32 %v8802_v44, %v10626_v46  ;;  %v11188_v3 = vld [vmem:[#allocation21_spill] sm:$0xff] }
 0x2ee   : > { %v6178_v2 = vpop.f32.mrf.mxu0  ;;  %v6626_v8 = vmax.f32 %v6562_v55, 0.0  ;;  %v6560_v4 = vadd.f32 %v7893_v27, %v6368_v53  ;;  %v5484_v48 = vpop.f32.mrf.mxu1  ;;  %v7962_v27 = vld [vmem:[%s10690_s17 + $0xc0] sm:$0xff]   ;;  %v7902_v7 = vunpack.c.h.bf16 %v10925_v62  ;;  %v7913_v60 = vunpack.c.l.bf16 %v7963_v31  ;;  %v11190_v62 = vld [vmem:[#allocation23_spill] sm:$0xff] }
 0x2ef   : > { %6942 = vst.msk [vmem:[%s10717_s14 + $0x94] sm:$0xf] %vm6904_vm2, %v7784_v20  ;;  %v6563_v34 = vadd.f32 %v7898_v38, %v6371_v23  ;;  %v6369_v1 = vadd.f32 %v10702_v24, %v6298_v25  ;;  %v6303_v16 = vadd.f32 %v8870_v11, %v5609_v40  ;;  %v5607_v28 = vadd.f32 %v5484_v48, %v10629_v19 }
 0x2f0   : > { %v8871_v54 = vpop.f32.mrf.mxu0  ;;  %v7789_v26 = vpack.c.bf16 %v6626_v8, %v6626_v8  ;;  %v6624_v46 = vmax.f32 %v6560_v4, 0.0  ;;  %v8803_v45 = vpop.f32.mrf.mxu1  ;;  %v7909_v20 = vunpack.c.l.bf16 %v7962_v27 }
 0x2f1   : > { %v6627_v29 = vmax.f32 %v6563_v34, 0.0  ;;  %v6561_v30 = vadd.f32 %v7894_v14, %v6369_v1  ;;  %v6374_v41 = vadd.f32 %v10702_v24, %v6303_v16  ;;  %v6301_v18 = vadd.f32 %v6178_v2, %v5607_v28  ;;  %v10962_v28 = vld [vmem:[%s11047_s2] ss:$0 sm:$0xff] }
 0x2f2   : > { %v6181_v56 = vpop.f32.mrf.mxu0  ;;  %6947 = vst.msk [vmem:[%s10717_s14 + $0xa8] sm:$0xf] %vm6904_vm2, %v7789_v26  ;;  %v7787_v57 = vpack.c.bf16 %v6624_v46, %v6624_v46  ;;  %v5610_v19 = vadd.f32 %v8803_v45, %v11186_v15  ;;  %v5487_v5 = vpop.f32.mrf.mxu1  ;;  %v7914_v34 = vunpack.c.h.bf16 %v7963_v31  ;;  %v11191_v26 = vld [vmem:[#allocation2_spill] sm:$0xff] }
 0x2f3   : > { %v7790_v12 = vpack.c.bf16 %v6627_v29, %v6627_v29  ;;  %v6625_v49 = vmax.f32 %v6561_v30, 0.0  ;;  %v6566_v63 = vadd.f32 %v7905_v42, %v6374_v41  ;;  %v6372_v6 = vadd.f32 %v10702_v24, %v6301_v18 }
 0x2f4   : > { %v8874_v0 = vpop.f32.mrf.mxu0  ;;  %6945 = vst.msk [vmem:[%s10717_s14 + $0xa0] sm:$0xf] %vm6904_vm2, %v7787_v57  ;;  %v6304_v39 = vadd.f32 %v8871_v54, %v5610_v19  ;;  %v5608_v51 = vadd.f32 %v5487_v5, %v11187_v21  ;;  %v8806_v61 = vpop.f32.mrf.mxu1  ;;  %v7910_v30 = vunpack.c.h.bf16 %v7962_v27  ;;  %v7965_v19 = vld [vmem:[%s10690_s17 + $0xd8] sm:$0xff]  }
 0x2f5   : > { %6948 = vst.msk [vmem:[%s10717_s14 + $0xac] sm:$0xf] %vm6904_vm2, %v7790_v12  ;;  %v7788_v32 = vpack.c.bf16 %v6625_v49, %v6625_v49  ;;  %v6630_v37 = vmax.f32 %v6566_v63, 0.0  ;;  %v6564_v9 = vadd.f32 %v7901_v59, %v6372_v6  ;;  %v5613_v10 = vadd.f32 %v8806_v61, %v11188_v3 }
 0x2f6   : > { %v6194_v58 = vpop.f32.mrf.mxu0  ;;  %v6375_v38 = vadd.f32 %v10702_v24, %v6304_v39  ;;  %v6302_v43 = vadd.f32 %v6181_v56, %v5608_v51  ;;  %v5500_v36 = vpop.f32.mrf.mxu1  ;;  %v7921_v61 = vunpack.c.l.bf16 %v7965_v19 }
 0x2f7   : > { %6946 = vst.msk [vmem:[%s10717_s14 + $0xa4] sm:$0xf] %vm6904_vm2, %v7788_v32  ;;  %v7793_v35 = vpack.c.bf16 %v6630_v37, %v6630_v37  ;;  %v6628_v13 = vmax.f32 %v6564_v9, 0.0  ;;  %v6307_v11 = vadd.f32 %v8874_v0, %v5613_v10  ;;  %v5611_v55 = vadd.f32 %v5500_v36, %v11189_v52  ;;  %v10984_v52 = vld [vmem:[%s10690_s17 + $0xe8] sm:$0xff]  }
 0x2f8   : > { %v8875_v53 = vpop.f32.mrf.mxu0  ;;  %v6567_v14 = vadd.f32 %v7906_v17, %v6375_v38  ;;  %v6373_v44 = vadd.f32 %v10702_v24, %v6302_v43  ;;  %v8807_v23 = vpop.f32.mrf.mxu1  ;;  %v7964_v17 = vld [vmem:[%s10690_s17 + $0xd0] sm:$0xff]  }
 0x2f9   : > { %6951 = vst.msk [vmem:[%s10717_s14 + $0xb8] sm:$0xf] %vm6904_vm2, %v7793_v35  ;;  %v7791_v25 = vpack.c.bf16 %v6628_v13, %v6628_v13  ;;  %v6378_v40 = vadd.f32 %v10702_v24, %v6307_v11  ;;  %v6305_v2 = vadd.f32 %v6194_v58, %v5611_v55  ;;  %v5614_v8 = vadd.f32 %v8807_v23, %v11190_v62  ;;  %v10992_v62 = vld [vmem:[%s10690_s17 + $0xe0] sm:$0xff]  }
 0x2fa   : > { %v6197_v4 = vpop.f32.mrf.mxu0  ;;  %v6631_v42 = vmax.f32 %v6567_v14, 0.0  ;;  %v6565_v48 = vadd.f32 %v7902_v7, %v6373_v44  ;;  %v5503_v1 = vpop.f32.mrf.mxu1  ;;  %v7917_v43 = vunpack.c.l.bf16 %v7964_v17  ;;  %v7922_v7 = vunpack.c.h.bf16 %v7965_v19 }
 0x2fb   : > { %6949 = vst.msk [vmem:[%s10717_s14 + $0xb0] sm:$0xf] %vm6904_vm2, %v7791_v25  ;;  %v6570_v16 = vadd.f32 %v7913_v60, %v6378_v40  ;;  %v6376_v24 = vadd.f32 %v10962_v28, %v6305_v2  ;;  %v6308_v54 = vadd.f32 %v8875_v53, %v5614_v8  ;;  %v5612_v46 = vadd.f32 %v5503_v1, %v11191_v26  ;;  %v11192_v25 = vld [vmem:[#allocation3_spill] sm:$0xff] }
 0x2fc   : > { %v8878_v59 = vpop.f32.mrf.mxu0  ;;  %v7794_v45 = vpack.c.bf16 %v6631_v42, %v6631_v42  ;;  %v6629_v29 = vmax.f32 %v6565_v48, 0.0  ;;  %v8810_v41 = vpop.f32.mrf.mxu1  ;;  %v7918_v53 = vunpack.c.h.bf16 %v7964_v17  ;;  %v7930_v17 = vunpack.c.h.bf16 %v10984_v52 }
 0x2fd   : > { %v6634_v18 = vmax.f32 %v6570_v16, 0.0  ;;  %v6568_v56 = vadd.f32 %v7909_v20, %v6376_v24  ;;  %v6379_v57 = vadd.f32 %v10962_v28, %v6308_v54  ;;  %v6306_v15 = vadd.f32 %v6197_v4, %v5612_v46  ;;  %v11193_v16 = vld [vmem:[#allocation4_spill] sm:$0xff] }
 0x2fe   : > { %v6210_v5 = vpop.f32.mrf.mxu0  ;;  %6952 = vst.msk [vmem:[%s10717_s14 + $0xbc] sm:$0xf] %vm6904_vm2, %v7794_v45  ;;  %v7792_v12 = vpack.c.bf16 %v6629_v29, %v6629_v29  ;;  %v5617_v49 = vadd.f32 %v8810_v41, %v10650_v50  ;;  %v5516_v63 = vpop.f32.mrf.mxu1  ;;  %v7929_v4 = vunpack.c.l.bf16 %v10984_v52 }
 0x2ff   : > { %v7797_v6 = vpack.c.bf16 %v6634_v18, %v6634_v18  ;;  %v6632_v0 = vmax.f32 %v6568_v56, 0.0  ;;  %v6571_v31 = vadd.f32 %v7914_v34, %v6379_v57  ;;  %v6377_v39 = vadd.f32 %v10962_v28, %v6306_v15  ;;  %v11194_v15 = vld [vmem:[#allocation5_spill] sm:$0xff] }
 0x300   : > { %v8879_v21 = vpop.f32.mrf.mxu0  ;;  %6950 = vst.msk [vmem:[%s10717_s14 + $0xb4] sm:$0xf] %vm6904_vm2, %v7792_v12  ;;  %v6311_v51 = vadd.f32 %v8878_v59, %v5617_v49  ;;  %v5615_v32 = vadd.f32 %v5516_v63, %v10653_v33  ;;  %v8811_v37 = vpop.f32.mrf.mxu1  ;;  %v7925_v59 = vunpack.c.l.bf16 %v10992_v62 }
 0x301   : > { %6955 = vst.msk [vmem:[%s10717_s14 + $0xc8] sm:$0xf] %vm6904_vm2, %v7797_v6  ;;  %v7795_v9 = vpack.c.bf16 %v6632_v0, %v6632_v0  ;;  %v6635_v50 = vmax.f32 %v6571_v31, 0.0  ;;  %v6569_v3 = vadd.f32 %v7910_v30, %v6377_v39  ;;  %v5618_v10 = vadd.f32 %v8811_v37, %v10656_v47  ;;  %v7969_v31 = vld [vmem:[%s10690_s17 + $0xf8] sm:$0xff]  }
 0x302   : > { %v6213_v58 = vpop.f32.mrf.mxu0  ;;  %v6382_v27 = vadd.f32 %v10962_v28, %v6311_v51  ;;  %v6309_v38 = vadd.f32 %v6210_v5, %v5615_v32  ;;  %v5519_v60 = vpop.f32.mrf.mxu1 }
 0x303   : > { %6953 = vst.msk [vmem:[%s10717_s14 + $0xc0] sm:$0xf] %vm6904_vm2, %v7795_v9  ;;  %v7798_v33 = vpack.c.bf16 %v6635_v50, %v6635_v50  ;;  %v6633_v36 = vmax.f32 %v6569_v3, 0.0  ;;  %v6312_v35 = vadd.f32 %v8879_v21, %v5618_v10  ;;  %v5616_v13 = vadd.f32 %v5519_v60, %v10661_v22  ;;  %v11195_v21 = vld [vmem:[#allocation6_spill] sm:$0xff]  ;;  %v11196_v50 = vld [vmem:[#allocation7_spill] sm:$0xff] }
 0x304   : > { %v8882_v11 = vpop.f32.mrf.mxu0  ;;  %v6574_v47 = vadd.f32 %v7921_v61, %v6382_v27  ;;  %v6380_v55 = vadd.f32 %v10962_v28, %v6309_v38  ;;  %v8814_v14 = vpop.f32.mrf.mxu1 }
 0x305   : > { %6956 = vst.msk [vmem:[%s10717_s14 + $0xcc] sm:$0xf] %vm6904_vm2, %v7798_v33  ;;  %v7796_v44 = vpack.c.bf16 %v6633_v36, %v6633_v36  ;;  %v6383_v20 = vadd.f32 %v10962_v28, %v6312_v35  ;;  %v6310_v23 = vadd.f32 %v6213_v58, %v5616_v13  ;;  %v5621_v40 = vadd.f32 %v8814_v14, %v11192_v25  ;;  %v7968_v58 = vld [vmem:[%s10690_s17 + $0xf0] sm:$0xff]   ;;  %v11198_v25 = vld [vmem:[#allocation9_spill] sm:$0xff] }
 0x306   : > { %v6226_v2 = vpop.f32.mrf.mxu0  ;;  %v6638_v22 = vmax.f32 %v6574_v47, 0.0  ;;  %v6572_v8 = vadd.f32 %v7917_v43, %v6380_v55  ;;  %v5532_v42 = vpop.f32.mrf.mxu1  ;;  %v7926_v43 = vunpack.c.h.bf16 %v10992_v62  ;;  %v11197_v13 = vld [vmem:[#allocation8_spill] sm:$0xff]  ;;  %v7933_v55 = vunpack.c.l.bf16 %v7968_v58 }
 0x307   : > { %6954 = vst.msk [vmem:[%s10717_s14 + $0xc4] sm:$0xf] %vm6904_vm2, %v7796_v44  ;;  %v6575_v48 = vadd.f32 %v7922_v7, %v6383_v20  ;;  %v6381_v34 = vadd.f32 %v10962_v28, %v6310_v23  ;;  %v6315_v1 = vadd.f32 %v8882_v11, %v5621_v40  ;;  %v5619_v24 = vadd.f32 %v5532_v42, %v11193_v16 }
 0x308   : > { %v8883_v54 = vpop.f32.mrf.mxu0  ;;  %v7801_v26 = vpack.c.bf16 %v6638_v22, %v6638_v22  ;;  %v6636_v46 = vmax.f32 %v6572_v8, 0.0  ;;  %v8815_v45 = vpop.f32.mrf.mxu1  ;;  %v7937_v7 = vunpack.c.l.bf16 %v7969_v31  ;;  %v7938_v22 = vunpack.c.h.bf16 %v7969_v31 }
 0x309   : > { %v6639_v29 = vmax.f32 %v6575_v48, 0.0  ;;  %v6573_v30 = vadd.f32 %v7918_v53, %v6381_v34  ;;  %v6386_v41 = vadd.f32 %v10962_v28, %v6315_v1  ;;  %v6313_v18 = vadd.f32 %v6226_v2, %v5619_v24  ;;  %v11199_v34 = vld [vmem:[#allocation10_spill] sm:$0xff] }
 0x30a   : > { %v6229_v56 = vpop.f32.mrf.mxu0  ;;  %6959 = vst.msk [vmem:[%s10717_s14 + $0xd8] sm:$0xf] %vm6904_vm2, %v7801_v26  ;;  %v7799_v57 = vpack.c.bf16 %v6636_v46, %v6636_v46  ;;  %v5622_v19 = vadd.f32 %v8815_v45, %v11194_v15  ;;  %v5535_v5 = vpop.f32.mrf.mxu1  ;;  %v7934_v26 = vunpack.c.h.bf16 %v7968_v58 }
 0x30b   : > { %v7802_v12 = vpack.c.bf16 %v6639_v29, %v6639_v29  ;;  %v6637_v49 = vmax.f32 %v6573_v30, 0.0  ;;  %v6578_v63 = vadd.f32 %v7929_v4, %v6386_v41  ;;  %v6384_v6 = vadd.f32 %v10962_v28, %v6313_v18 }
 0x30c   : > { %v8886_v0 = vpop.f32.mrf.mxu0  ;;  %6957 = vst.msk [vmem:[%s10717_s14 + $0xd0] sm:$0xf] %vm6904_vm2, %v7799_v57  ;;  %v6316_v39 = vadd.f32 %v8883_v54, %v5622_v19  ;;  %v5620_v51 = vadd.f32 %v5535_v5, %v11195_v21  ;;  %v8818_v61 = vpop.f32.mrf.mxu1 }
 0x30d   : > { %6960 = vst.msk [vmem:[%s10717_s14 + $0xdc] sm:$0xf] %vm6904_vm2, %v7802_v12  ;;  %v7800_v32 = vpack.c.bf16 %v6637_v49, %v6637_v49  ;;  %v6642_v37 = vmax.f32 %v6578_v63, 0.0  ;;  %v6576_v9 = vadd.f32 %v7925_v59, %v6384_v6  ;;  %v5625_v3 = vadd.f32 %v8818_v61, %v11196_v50 }
 0x30e   : > { %v6242_v10 = vpop.f32.mrf.mxu0  ;;  %v6387_v27 = vadd.f32 %v10962_v28, %v6316_v39  ;;  %v6314_v38 = vadd.f32 %v6229_v56, %v5620_v51  ;;  %v5548_v60 = vpop.f32.mrf.mxu1 }
 0x30f   : > { %6958 = vst.msk [vmem:[%s10717_s14 + $0xd4] sm:$0xf] %vm6904_vm2, %v7800_v32  ;;  %v7805_v33 = vpack.c.bf16 %v6642_v37, %v6642_v37  ;;  %v6640_v36 = vmax.f32 %v6576_v9, 0.0  ;;  %v6319_v35 = vadd.f32 %v8886_v0, %v5625_v3  ;;  %v5623_v11 = vadd.f32 %v5548_v60, %v11197_v13 }
 0x310   : > { %v6579_v52 = vadd.f32 %v7930_v17, %v6387_v27  ;;  %v6385_v47 = vadd.f32 %v10962_v28, %v6314_v38  ;;  %v8819_v53 = vpop.f32.mrf.mxu1  ;;  %v8887_v14 = vpop.f32.mrf.mxu0 }
 0x311   : > { %6963 = vst.msk [vmem:[%s10717_s14 + $0xe8] sm:$0xf] %vm6904_vm2, %v7805_v33  ;;  %v7803_v44 = vpack.c.bf16 %v6640_v36, %v6640_v36  ;;  %v6390_v20 = vadd.f32 %v10962_v28, %v6319_v35  ;;  %v6317_v23 = vadd.f32 %v6242_v10, %v5623_v11  ;;  %v5626_v40 = vadd.f32 %v8819_v53, %v11198_v25 }
 0x312   : > { %v6643_v2 = vmax.f32 %v6579_v52, 0.0  ;;  %v6577_v62 = vadd.f32 %v7926_v43, %v6385_v47  ;;  %v5551_v8 = vpop.f32.mrf.mxu1  ;;  %v6245_v54 = vpop.f32.mrf.mxu0 }
 0x313   : > { %6961 = vst.msk [vmem:[%s10717_s14 + $0xe0] sm:$0xf] %vm6904_vm2, %v7803_v44  ;;  %v6582_v4 = vadd.f32 %v7937_v7, %v6390_v20  ;;  %v6388_v42 = vadd.f32 %v10962_v28, %v6317_v23  ;;  %v6320_v48 = vadd.f32 %v8887_v14, %v5626_v40  ;;  %v5624_v1 = vadd.f32 %v5551_v8, %v11199_v34 }
 0x314   : > { %v7806_v16 = vpack.c.bf16 %v6643_v2, %v6643_v2  ;;  %v6641_v24 = vmax.f32 %v6577_v62, 0.0 }
 0x315   : > { %v6646_v46 = vmax.f32 %v6582_v4, 0.0  ;;  %v6580_v59 = vadd.f32 %v7933_v55, %v6388_v42  ;;  %v6391_v45 = vadd.f32 %v10962_v28, %v6320_v48  ;;  %v6318_v29 = vadd.f32 %v6245_v54, %v5624_v1 }
 0x316   : > { %6964 = vst.msk [vmem:[%s10717_s14 + $0xec] sm:$0xf] %vm6904_vm2, %v7806_v16  ;;  %v7804_v30 = vpack.c.bf16 %v6641_v24, %v6641_v24 }
 0x317   : > { %v7809_v41 = vpack.c.bf16 %v6646_v46, %v6646_v46  ;;  %v6644_v18 = vmax.f32 %v6580_v59, 0.0  ;;  %v6583_v56 = vadd.f32 %v7938_v22, %v6391_v45  ;;  %v6389_v57 = vadd.f32 %v10962_v28, %v6318_v29 }
 0x318   : > { %6962 = vst.msk [vmem:[%s10717_s14 + $0xe4] sm:$0xf] %vm6904_vm2, %v7804_v30 }
 0x319   : > { %6967 = vst.msk [vmem:[%s10717_s14 + $0xf8] sm:$0xf] %vm6904_vm2, %v7809_v41  ;;  %v7807_v15 = vpack.c.bf16 %v6644_v18, %v6644_v18  ;;  %v6647_v19 = vmax.f32 %v6583_v56, 0.0  ;;  %v6581_v5 = vadd.f32 %v7934_v26, %v6389_v57 }
 0x31b   : > { %6965 = vst.msk [vmem:[%s10717_s14 + $0xf0] sm:$0xf] %vm6904_vm2, %v7807_v15  ;;  %v7810_v12 = vpack.c.bf16 %v6647_v19, %v6647_v19  ;;  %v6645_v49 = vmax.f32 %v6581_v5, 0.0 }
 0x31d   : > { %6968 = vst.msk [vmem:[%s10717_s14 + $0xfc] sm:$0xf] %vm6904_vm2, %v7810_v12  ;;  %v7808_v63 = vpack.c.bf16 %v6645_v49, %v6645_v49 }
 0x31f   : > { %6966 = vst.msk [vmem:[%s10717_s14 + $0xf4] sm:$0xf] %vm6904_vm2, %v7808_v63 }
 0x320 PF: > { %s14_s15 = sadd.s32 1, %s9223_s15  }
 0x321   : > { %p11_p4 = scmp.ge.s32.totalorder %s14_s15, 4  }
 0x323   :  { %13 = sbr.rel (!%p11_p4) target bundleno = 1 (0x1), region = 83 }

</bundles_post_ra>
